<compile_context>
chip_gen: v5e
topology: v5e:2x2
jax: 0.10.0
libtpu: 0.0.40
codegen_flags: <defaults>
</compile_context>

<pallas_src>
import numpy as np
import jax
import jax.numpy as jnp
from jax.experimental import pallas as pl
from jax.experimental.pallas import tpu as pltpu

L = 500            # hidden size of feature_extractor_part2
D = 128            # attention hidden size
K_ATT = 1          # attention heads
P2IN = 50 * 4 * 4  # 800


# ---------------------------------------------------------------------------
# Pallas kernels
# ---------------------------------------------------------------------------
def _pick_tile(m, cap=512):
    """Largest lane tile <= cap that divides m and is a multiple of 128."""
    best = None
    t = 128
    while t <= min(m, cap):
        if m % t == 0:
            best = t
        t += 128
    return best if best is not None else m


def conv_relu_pool_T(patches, w_oi, b):
    """maxpool2x2(relu(conv(x))) in a transposed, lane-dense layout.

    patches: (4, Kd, M) bf16 -- axis0 = 2x2-pool sub-position, axis1 = im2col
             column (C-major, then kh, kw -- matches an OIHW weight flatten),
             axis2 = pooled output pixel (n, hp, wp).
    w_oi:    (Co, Kd) f32    -- conv weight reshaped from OIHW.
    b:       (Co,)    f32
    returns  (Co, M)  bf16
    """
    _, Kd, M = patches.shape
    Co = w_oi.shape[0]
    tile_m = _pick_tile(M)
    assert M % tile_m == 0
    b2 = b.reshape(Co, 1)

    def kernel(p_ref, w_ref, b_ref, o_ref):
        w = w_ref[...].astype(jnp.bfloat16)
        bias = b_ref[...]

        def conv_d(d):
            acc = jnp.dot(w, p_ref[d].astype(jnp.bfloat16),
                          preferred_element_type=jnp.float32)
            return jnp.maximum(acc + bias, 0.0)

        r = jnp.maximum(jnp.maximum(conv_d(0), conv_d(1)),
                        jnp.maximum(conv_d(2), conv_d(3)))
        o_ref[...] = r.astype(o_ref.dtype)

    return pl.pallas_call(
        kernel,
        out_shape=jax.ShapeDtypeStruct((Co, M), jnp.bfloat16),
        grid=(M // tile_m,),
        in_specs=[
            pl.BlockSpec((4, Kd, tile_m), lambda i: (0, 0, i)),
            pl.BlockSpec((Co, Kd), lambda i: (0, 0)),
            pl.BlockSpec((Co, 1), lambda i: (0, 0)),
        ],
        out_specs=pl.BlockSpec((Co, tile_m), lambda i: (0, i)),
        compiler_params=pltpu.CompilerParams(
            dimension_semantics=("parallel",)),
    )(patches, w_oi, b2)


def mil_head(h, w1, b1, w2, b2, wa1, ba1, wa2, ba2, wc, bc):
    """Fused fc1+ReLU, fc2+ReLU, attention MLP, softmax over instances,
    weighted pooling M = A @ H, and the linear classifier.  One pallas_call;
    H stays resident in VMEM for the whole head."""
    Ni, Fin = h.shape
    Lh = w1.shape[1]
    Dd = wa1.shape[1]
    Nc = wc.shape[1]

    def kernel(h_ref, w1_ref, b1_ref, w2_ref, b2_ref,
               wa1_ref, ba1_ref, wa2_ref, ba2_ref, wc_ref, bc_ref, o_ref):
        bf = jnp.bfloat16
        z1 = jnp.maximum(
            jnp.dot(h_ref[...].astype(bf), w1_ref[...].astype(bf),
                    preferred_element_type=jnp.float32) + b1_ref[...], 0.0)
        z2 = jnp.maximum(
            jnp.dot(z1.astype(bf), w2_ref[...].astype(bf),
                    preferred_element_type=jnp.float32) + b2_ref[...], 0.0)
        a1 = jnp.tanh(
            jnp.dot(z2.astype(bf), wa1_ref[...].astype(bf),
                    preferred_element_type=jnp.float32) + ba1_ref[...])
        # second attention layer (D -> 1) as broadcast-multiply + lane reduction
        logits = jnp.sum(a1 * wa2_ref[...], axis=1, keepdims=True) + ba2_ref[...]
        # softmax over the instance axis (== softmax(A^T, dim=1) in PyTorch)
        logits = logits - jnp.max(logits, axis=0, keepdims=True)
        e = jnp.exp(logits)
        wts = e / jnp.sum(e, axis=0, keepdims=True)              # (Ni, 1)
        m = jnp.sum(wts * z2, axis=0, keepdims=True)             # (1, Lh) == A @ H
        y = jnp.dot(m, wc_ref[...], preferred_element_type=jnp.float32) + bc_ref[...]
        o_ref[...] = y.astype(o_ref.dtype)

    return pl.pallas_call(
        kernel,
        out_shape=jax.ShapeDtypeStruct((1, Nc), jnp.float32),
        grid=(1,),
        in_specs=[
            pl.BlockSpec((Ni, Fin), lambda i: (0, 0)),
            pl.BlockSpec((Fin, Lh), lambda i: (0, 0)),
            pl.BlockSpec((1, Lh), lambda i: (0, 0)),
            pl.BlockSpec((Lh, Lh), lambda i: (0, 0)),
            pl.BlockSpec((1, Lh), lambda i: (0, 0)),
            pl.BlockSpec((Lh, Dd), lambda i: (0, 0)),
            pl.BlockSpec((1, Dd), lambda i: (0, 0)),
            pl.BlockSpec((1, Dd), lambda i: (0, 0)),
            pl.BlockSpec((1, 1), lambda i: (0, 0)),
            pl.BlockSpec((Lh, Nc), lambda i: (0, 0)),
            pl.BlockSpec((1, Nc), lambda i: (0, 0)),
        ],
        out_specs=pl.BlockSpec((1, Nc), lambda i: (0, 0)),
    )(h, w1, b1.reshape(1, Lh), w2, b2.reshape(1, Lh),
      wa1, ba1.reshape(1, Dd), wa2.reshape(1, Dd), ba2.reshape(1, 1),
      wc, bc.reshape(1, Nc))


# ---------------------------------------------------------------------------
# Glue (im2col with pooling sub-positions, channel-first) in plain JAX
# ---------------------------------------------------------------------------
def im2col_pool_T_cf(x_cf, k):
    """x_cf: (C, N, H, W) -> (4, C*k*k, N*Hp*Wp).
    axis0 = 2x2 max-pool sub-position (dp*2+dq) applied AFTER a valid kxk conv,
    axis1 = im2col column (c*k*k + kh*k + kw),
    axis2 = pooled pixel (n*Hp*Wp + hp*Wp + wp)."""
    C, N, H, W = x_cf.shape
    Hc, Wc = H - k + 1, W - k + 1
    Hp, Wp = Hc // 2, Wc // 2
    cols = []
    for kh in range(k):
        for kw in range(k):
            s = x_cf[:, :, kh:kh + Hc, kw:kw + Wc]        # (C, N, Hc, Wc)
            cols.append(s.reshape(C, N, Hp, 2, Wp, 2))
    p = jnp.stack(cols, axis=0).reshape(k, k, C, N, Hp, 2, Wp, 2)
    p = p.transpose(5, 7, 2, 0, 1, 3, 4, 6)               # (dp,dq,C,kh,kw,N,Hp,Wp)
    return p.reshape(4, C * k * k, N * Hp * Wp)


def custom_mil_forward(x, p):
    # x: (1, N, 1, 28, 28); x.squeeze(0)
    x = x[0]
    Ni = x.shape[0]

    # feature_extractor_part1: Conv(1->20,5)+ReLU+MaxPool2 (fused kernel)
    x_cf = x.transpose(1, 0, 2, 3)                                 # (1, N, 28, 28)
    p1 = im2col_pool_T_cf(x_cf, 5).astype(jnp.bfloat16)            # (4, 25, N*144)
    a1 = conv_relu_pool_T(p1, p["conv1_w"].reshape(20, 25), p["conv1_b"])
    a1 = a1.reshape(20, Ni, 12, 12)                                # CNHW, no transpose

    #                          Conv(20->50,5)+ReLU+MaxPool2 (fused kernel)
    p2 = im2col_pool_T_cf(a1, 5)                                   # (4, 500, N*16) bf16
    a2 = conv_relu_pool_T(p2, p["conv2_w"].reshape(50, 500), p["conv2_b"])

    # H.view(-1, p2in): NCHW flatten order (matches torch .view)
    h = a2.reshape(50, Ni, 16).transpose(1, 0, 2).reshape(Ni, P2IN)  # (N, 800) bf16

    # fc1 + fc2 + attention + softmax + pooling + classifier (one fused kernel)
    return mil_head(h, p["fc1_w"], p["fc1_b"], p["fc2_w"], p["fc2_b"],
                    p["att1_w"], p["att1_b"], p["att2_w"], p["att2_b"],
                    p["cls_w"], p["cls_b"])


# ---------------------------------------------------------------------------
# Deterministic parameter init (PyTorch-style uniform(-1/sqrt(fan_in), ...))
# ---------------------------------------------------------------------------
def _uniform(key, shape, fan_in):
    bound = 1.0 / np.sqrt(fan_in)
    return jax.random.uniform(key, shape, jnp.float32, -bound, bound)


def init_params(key):
    ks = jax.random.split(key, 14)
    p = {}
    p["conv1_w"] = _uniform(ks[0], (20, 1, 5, 5), 1 * 5 * 5)
    p["conv1_b"] = _uniform(ks[1], (20,), 1 * 5 * 5)
    p["conv2_w"] = _uniform(ks[2], (50, 20, 5, 5), 20 * 5 * 5)
    p["conv2_b"] = _uniform(ks[3], (50,), 20 * 5 * 5)
    p["fc1_w"] = _uniform(ks[4], (P2IN, L), P2IN)
    p["fc1_b"] = _uniform(ks[5], (L,), P2IN)
    p["fc2_w"] = _uniform(ks[6], (L, L), L)
    p["fc2_b"] = _uniform(ks[7], (L,), L)
    p["att1_w"] = _uniform(ks[8], (L, D), L)
    p["att1_b"] = _uniform(ks[9], (D,), L)
    p["att2_w"] = _uniform(ks[10], (D, K_ATT), D)
    p["att2_b"] = _uniform(ks[11], (K_ATT,), D)
    p["cls_w"] = _uniform(ks[12], (L * K_ATT, 2), L * K_ATT)
    p["cls_b"] = _uniform(ks[13], (2,), L * K_ATT)
    return p


# ---------------------------------------------------------------------------
# Pure-JAX reference (for correctness check only)
# ---------------------------------------------------------------------------
def ref_forward(x, p):
    hp = jax.lax.Precision.HIGHEST
    x = x[0]
    h = jax.lax.conv_general_dilated(
        x, p["conv1_w"], (1, 1), "VALID",
        dimension_numbers=("NCHW", "OIHW", "NCHW"), precision=hp)
    h = jnp.maximum(h + p["conv1_b"][None, :, None, None], 0.0)
    h = jax.lax.reduce_window(h, -jnp.inf, jax.lax.max, (1, 1, 2, 2), (1, 1, 2, 2), "VALID")
    h = jax.lax.conv_general_dilated(
        h, p["conv2_w"], (1, 1), "VALID",
        dimension_numbers=("NCHW", "OIHW", "NCHW"), precision=hp)
    h = jnp.maximum(h + p["conv2_b"][None, :, None, None], 0.0)
    h = jax.lax.reduce_window(h, -jnp.inf, jax.lax.max, (1, 1, 2, 2), (1, 1, 2, 2), "VALID")
    h = h.reshape(-1, P2IN)
    h = jnp.maximum(jnp.dot(h, p["fc1_w"], precision=hp) + p["fc1_b"], 0.0)
    h = jnp.maximum(jnp.dot(h, p["fc2_w"], precision=hp) + p["fc2_b"], 0.0)
    a = jnp.dot(jnp.tanh(jnp.dot(h, p["att1_w"], precision=hp) + p["att1_b"]),
                p["att2_w"], precision=hp) + p["att2_b"]
    a = jax.nn.softmax(a.T, axis=1)
    m = jnp.dot(a, h, precision=hp)
    return jnp.dot(m, p["cls_w"], precision=hp) + p["cls_b"]


if __name__ == "__main__":
    key = jax.random.PRNGKey(0)
    pkey, xkey = jax.random.split(key)
    params = init_params(pkey)

    N_INSTANCES = 8
    x = jax.random.normal(xkey, (1, N_INSTANCES, 1, 28, 28), jnp.float32)

    y_prob = jax.jit(custom_mil_forward)(x, params)
    y_prob = jax.block_until_ready(y_prob)
    assert y_prob.shape == (1, 2)

    y_ref = ref_forward(x, params)
    np.testing.assert_allclose(np.asarray(y_prob), np.asarray(y_ref), rtol=5e-2, atol=5e-2)

    print("KERNEL_OK")
</pallas_src>

<mosaic_0001>
module attributes {stable_mosaic.version = 11 : i64} {
  func.func @kernel(%arg0: i32, %arg1: memref<4x25x384xbf16, #tpu.memory_space<vmem>>, %arg2: memref<20x25xf32, #tpu.memory_space<vmem>>, %arg3: memref<20x1xf32, #tpu.memory_space<vmem>>, %arg4: memref<20x384xbf16, #tpu.memory_space<vmem>>) attributes {dimension_semantics = [#tpu.dimension_semantics<parallel>], iteration_bounds = array<i64: 3>, scalar_prefetch = 0 : i64, scratch_operands = 0 : i64, tpu.core_type = #tpu.core_type<tc>, window_params = [{transform_indices = @transform_0, window_bounds = array<i64: 4, 25, 384>}, {pipeline_mode = #tpu.pipeline_mode<synchronous>, transform_indices = @transform_1, window_bounds = array<i64: 20, 25>}, {pipeline_mode = #tpu.pipeline_mode<synchronous>, transform_indices = @transform_2, window_bounds = array<i64: 20, 1>}, {transform_indices = @transform_3, window_bounds = array<i64: 20, 384>}]} {
    %c0 = arith.constant 0 : index
    %c0_0 = arith.constant 0 : index
    %0 = vector.load %arg2[%c0, %c0_0] : memref<20x25xf32, #tpu.memory_space<vmem>>, vector<20x25xf32>
    %1 = arith.truncf %0 : vector<20x25xf32> to vector<20x25xbf16>
    %c0_1 = arith.constant 0 : index
    %c0_2 = arith.constant 0 : index
    %2 = vector.load %arg3[%c0_1, %c0_2] : memref<20x1xf32, #tpu.memory_space<vmem>>, vector<20x1xf32>
    %c0_3 = arith.constant 0 : index
    %c0_4 = arith.constant 0 : index
    %c0_5 = arith.constant 0 : index
    %3 = vector.load %arg1[%c0_3, %c0_4, %c0_5] : memref<4x25x384xbf16, #tpu.memory_space<vmem>>, vector<1x25x384xbf16>
    %4 = vector.shape_cast %3 : vector<1x25x384xbf16> to vector<25x384xbf16>
    %cst = arith.constant dense<0.000000e+00> : vector<20x384xf32>
    %5 = tpu.matmul %1, %4, %cst {dimension_numbers = #tpu.dot_dimension_numbers<[1], [0], [0], [1], [0, 0, 1, 1], [], []>} : vector<20x25xbf16>, vector<25x384xbf16>, vector<20x384xf32> -> vector<20x384xf32>
    %6 = vector.broadcast %2 : vector<20x1xf32> to vector<20x384xf32>
    %7 = arith.addf %5, %6 : vector<20x384xf32>
    %cst_6 = arith.constant 0.000000e+00 : f32
    %8 = vector.broadcast %cst_6 : f32 to vector<20x384xf32>
    %9 = arith.maximumf %7, %8 : vector<20x384xf32>
    %c1 = arith.constant 1 : index
    %c0_7 = arith.constant 0 : index
    %c0_8 = arith.constant 0 : index
    %10 = vector.load %arg1[%c1, %c0_7, %c0_8] : memref<4x25x384xbf16, #tpu.memory_space<vmem>>, vector<1x25x384xbf16>
    %11 = vector.shape_cast %10 : vector<1x25x384xbf16> to vector<25x384xbf16>
    %cst_9 = arith.constant dense<0.000000e+00> : vector<20x384xf32>
    %12 = tpu.matmul %1, %11, %cst_9 {dimension_numbers = #tpu.dot_dimension_numbers<[1], [0], [0], [1], [0, 0, 1, 1], [], []>} : vector<20x25xbf16>, vector<25x384xbf16>, vector<20x384xf32> -> vector<20x384xf32>
    %13 = vector.broadcast %2 : vector<20x1xf32> to vector<20x384xf32>
    %14 = arith.addf %12, %13 : vector<20x384xf32>
    %cst_10 = arith.constant 0.000000e+00 : f32
    %15 = vector.broadcast %cst_10 : f32 to vector<20x384xf32>
    %16 = arith.maximumf %14, %15 : vector<20x384xf32>
    %17 = arith.maximumf %9, %16 : vector<20x384xf32>
    %c2 = arith.constant 2 : index
    %c0_11 = arith.constant 0 : index
    %c0_12 = arith.constant 0 : index
    %18 = vector.load %arg1[%c2, %c0_11, %c0_12] : memref<4x25x384xbf16, #tpu.memory_space<vmem>>, vector<1x25x384xbf16>
    %19 = vector.shape_cast %18 : vector<1x25x384xbf16> to vector<25x384xbf16>
    %cst_13 = arith.constant dense<0.000000e+00> : vector<20x384xf32>
    %20 = tpu.matmul %1, %19, %cst_13 {dimension_numbers = #tpu.dot_dimension_numbers<[1], [0], [0], [1], [0, 0, 1, 1], [], []>} : vector<20x25xbf16>, vector<25x384xbf16>, vector<20x384xf32> -> vector<20x384xf32>
    %21 = vector.broadcast %2 : vector<20x1xf32> to vector<20x384xf32>
    %22 = arith.addf %20, %21 : vector<20x384xf32>
    %cst_14 = arith.constant 0.000000e+00 : f32
    %23 = vector.broadcast %cst_14 : f32 to vector<20x384xf32>
    %24 = arith.maximumf %22, %23 : vector<20x384xf32>
    %c3 = arith.constant 3 : index
    %c0_15 = arith.constant 0 : index
    %c0_16 = arith.constant 0 : index
    %25 = vector.load %arg1[%c3, %c0_15, %c0_16] : memref<4x25x384xbf16, #tpu.memory_space<vmem>>, vector<1x25x384xbf16>
    %26 = vector.shape_cast %25 : vector<1x25x384xbf16> to vector<25x384xbf16>
    %cst_17 = arith.constant dense<0.000000e+00> : vector<20x384xf32>
    %27 = tpu.matmul %1, %26, %cst_17 {dimension_numbers = #tpu.dot_dimension_numbers<[1], [0], [0], [1], [0, 0, 1, 1], [], []>} : vector<20x25xbf16>, vector<25x384xbf16>, vector<20x384xf32> -> vector<20x384xf32>
    %28 = vector.broadcast %2 : vector<20x1xf32> to vector<20x384xf32>
    %29 = arith.addf %27, %28 : vector<20x384xf32>
    %cst_18 = arith.constant 0.000000e+00 : f32
    %30 = vector.broadcast %cst_18 : f32 to vector<20x384xf32>
    %31 = arith.maximumf %29, %30 : vector<20x384xf32>
    %32 = arith.maximumf %24, %31 : vector<20x384xf32>
    %33 = arith.maximumf %17, %32 : vector<20x384xf32>
    %34 = arith.truncf %33 : vector<20x384xf32> to vector<20x384xbf16>
    %c0_19 = arith.constant 0 : index
    %c0_20 = arith.constant 0 : index
    %35 = vector.load %arg4[%c0_19, %c0_20] : memref<20x384xbf16, #tpu.memory_space<vmem>>, vector<20x384xbf16>
    tpu.vector_store %arg4[%c0_19, %c0_20], %34 {strides = array<i32>} : memref<20x384xbf16, #tpu.memory_space<vmem>>, vector<20x384xbf16>,
    return
  }
  func.func @transform_0(%arg0: i32) -> (i32, i32, i32) {
    %c0_i32 = arith.constant 0 : i32
    %c0_i32_0 = arith.constant 0 : i32
    %c0_i32_1 = arith.constant 0 : i32
    return %c0_i32, %c0_i32_0, %arg0 : i32, i32, i32
  }
  func.func @transform_1(%arg0: i32) -> (i32, i32) {
    %c0_i32 = arith.constant 0 : i32
    %c0_i32_0 = arith.constant 0 : i32
    %c0_i32_1 = arith.constant 0 : i32
    return %c0_i32, %c0_i32_0 : i32, i32
  }
  func.func @transform_2(%arg0: i32) -> (i32, i32) {
    %c0_i32 = arith.constant 0 : i32
    %c0_i32_0 = arith.constant 0 : i32
    %c0_i32_1 = arith.constant 0 : i32
    return %c0_i32, %c0_i32_0 : i32, i32
  }
  func.func @transform_3(%arg0: i32) -> (i32, i32) {
    %c0_i32 = arith.constant 0 : i32
    %c0_i32_0 = arith.constant 0 : i32
    return %c0_i32, %arg0 : i32, i32
  }
}

module attributes {stable_mosaic.version = 11 : i64} {
  func.func @kernel(%arg0: i32, %arg1: memref<4x500x128xbf16, #tpu.memory_space<vmem>>, %arg2: memref<50x500xf32, #tpu.memory_space<vmem>>, %arg3: memref<50x1xf32, #tpu.memory_space<vmem>>, %arg4: memref<50x128xbf16, #tpu.memory_space<vmem>>) attributes {dimension_semantics = [#tpu.dimension_semantics<parallel>], iteration_bounds = array<i64: 1>, scalar_prefetch = 0 : i64, scratch_operands = 0 : i64, tpu.core_type = #tpu.core_type<tc>, window_params = [{transform_indices = @transform_0, window_bounds = array<i64: 4, 500, 128>}, {pipeline_mode = #tpu.pipeline_mode<synchronous>, transform_indices = @transform_1, window_bounds = array<i64: 50, 500>}, {pipeline_mode = #tpu.pipeline_mode<synchronous>, transform_indices = @transform_2, window_bounds = array<i64: 50, 1>}, {transform_indices = @transform_3, window_bounds = array<i64: 50, 128>}]} {
    %c0 = arith.constant 0 : index
    %c0_0 = arith.constant 0 : index
    %0 = vector.load %arg2[%c0, %c0_0] : memref<50x500xf32, #tpu.memory_space<vmem>>, vector<50x500xf32>
    %1 = arith.truncf %0 : vector<50x500xf32> to vector<50x500xbf16>
    %c0_1 = arith.constant 0 : index
    %c0_2 = arith.constant 0 : index
    %2 = vector.load %arg3[%c0_1, %c0_2] : memref<50x1xf32, #tpu.memory_space<vmem>>, vector<50x1xf32>
    %c0_3 = arith.constant 0 : index
    %c0_4 = arith.constant 0 : index
    %c0_5 = arith.constant 0 : index
    %3 = vector.load %arg1[%c0_3, %c0_4, %c0_5] : memref<4x500x128xbf16, #tpu.memory_space<vmem>>, vector<1x500x128xbf16>
    %4 = vector.shape_cast %3 : vector<1x500x128xbf16> to vector<500x128xbf16>
    %cst = arith.constant dense<0.000000e+00> : vector<50x128xf32>
    %5 = tpu.matmul %1, %4, %cst {dimension_numbers = #tpu.dot_dimension_numbers<[1], [0], [0], [1], [0, 0, 1, 1], [], []>} : vector<50x500xbf16>, vector<500x128xbf16>, vector<50x128xf32> -> vector<50x128xf32>
    %6 = vector.broadcast %2 : vector<50x1xf32> to vector<50x128xf32>
    %7 = arith.addf %5, %6 : vector<50x128xf32>
    %cst_6 = arith.constant 0.000000e+00 : f32
    %8 = vector.broadcast %cst_6 : f32 to vector<50x128xf32>
    %9 = arith.maximumf %7, %8 : vector<50x128xf32>
    %c1 = arith.constant 1 : index
    %c0_7 = arith.constant 0 : index
    %c0_8 = arith.constant 0 : index
    %10 = vector.load %arg1[%c1, %c0_7, %c0_8] : memref<4x500x128xbf16, #tpu.memory_space<vmem>>, vector<1x500x128xbf16>
    %11 = vector.shape_cast %10 : vector<1x500x128xbf16> to vector<500x128xbf16>
    %cst_9 = arith.constant dense<0.000000e+00> : vector<50x128xf32>
    %12 = tpu.matmul %1, %11, %cst_9 {dimension_numbers = #tpu.dot_dimension_numbers<[1], [0], [0], [1], [0, 0, 1, 1], [], []>} : vector<50x500xbf16>, vector<500x128xbf16>, vector<50x128xf32> -> vector<50x128xf32>
    %13 = vector.broadcast %2 : vector<50x1xf32> to vector<50x128xf32>
    %14 = arith.addf %12, %13 : vector<50x128xf32>
    %cst_10 = arith.constant 0.000000e+00 : f32
    %15 = vector.broadcast %cst_10 : f32 to vector<50x128xf32>
    %16 = arith.maximumf %14, %15 : vector<50x128xf32>
    %17 = arith.maximumf %9, %16 : vector<50x128xf32>
    %c2 = arith.constant 2 : index
    %c0_11 = arith.constant 0 : index
    %c0_12 = arith.constant 0 : index
    %18 = vector.load %arg1[%c2, %c0_11, %c0_12] : memref<4x500x128xbf16, #tpu.memory_space<vmem>>, vector<1x500x128xbf16>
    %19 = vector.shape_cast %18 : vector<1x500x128xbf16> to vector<500x128xbf16>
    %cst_13 = arith.constant dense<0.000000e+00> : vector<50x128xf32>
    %20 = tpu.matmul %1, %19, %cst_13 {dimension_numbers = #tpu.dot_dimension_numbers<[1], [0], [0], [1], [0, 0, 1, 1], [], []>} : vector<50x500xbf16>, vector<500x128xbf16>, vector<50x128xf32> -> vector<50x128xf32>
    %21 = vector.broadcast %2 : vector<50x1xf32> to vector<50x128xf32>
    %22 = arith.addf %20, %21 : vector<50x128xf32>
    %cst_14 = arith.constant 0.000000e+00 : f32
    %23 = vector.broadcast %cst_14 : f32 to vector<50x128xf32>
    %24 = arith.maximumf %22, %23 : vector<50x128xf32>
    %c3 = arith.constant 3 : index
    %c0_15 = arith.constant 0 : index
    %c0_16 = arith.constant 0 : index
    %25 = vector.load %arg1[%c3, %c0_15, %c0_16] : memref<4x500x128xbf16, #tpu.memory_space<vmem>>, vector<1x500x128xbf16>
    %26 = vector.shape_cast %25 : vector<1x500x128xbf16> to vector<500x128xbf16>
    %cst_17 = arith.constant dense<0.000000e+00> : vector<50x128xf32>
    %27 = tpu.matmul %1, %26, %cst_17 {dimension_numbers = #tpu.dot_dimension_numbers<[1], [0], [0], [1], [0, 0, 1, 1], [], []>} : vector<50x500xbf16>, vector<500x128xbf16>, vector<50x128xf32> -> vector<50x128xf32>
    %28 = vector.broadcast %2 : vector<50x1xf32> to vector<50x128xf32>
    %29 = arith.addf %27, %28 : vector<50x128xf32>
    %cst_18 = arith.constant 0.000000e+00 : f32
    %30 = vector.broadcast %cst_18 : f32 to vector<50x128xf32>
    %31 = arith.maximumf %29, %30 : vector<50x128xf32>
    %32 = arith.maximumf %24, %31 : vector<50x128xf32>
    %33 = arith.maximumf %17, %32 : vector<50x128xf32>
    %34 = arith.truncf %33 : vector<50x128xf32> to vector<50x128xbf16>
    %c0_19 = arith.constant 0 : index
    %c0_20 = arith.constant 0 : index
    %35 = vector.load %arg4[%c0_19, %c0_20] : memref<50x128xbf16, #tpu.memory_space<vmem>>, vector<50x128xbf16>
    tpu.vector_store %arg4[%c0_19, %c0_20], %34 {strides = array<i32>} : memref<50x128xbf16, #tpu.memory_space<vmem>>, vector<50x128xbf16>,
    return
  }
  func.func @transform_0(%arg0: i32) -> (i32, i32, i32) {
    %c0_i32 = arith.constant 0 : i32
    %c0_i32_0 = arith.constant 0 : i32
    %c0_i32_1 = arith.constant 0 : i32
    return %c0_i32, %c0_i32_0, %arg0 : i32, i32, i32
  }
  func.func @transform_1(%arg0: i32) -> (i32, i32) {
    %c0_i32 = arith.constant 0 : i32
    %c0_i32_0 = arith.constant 0 : i32
    %c0_i32_1 = arith.constant 0 : i32
    return %c0_i32, %c0_i32_0 : i32, i32
  }
  func.func @transform_2(%arg0: i32) -> (i32, i32) {
    %c0_i32 = arith.constant 0 : i32
    %c0_i32_0 = arith.constant 0 : i32
    %c0_i32_1 = arith.constant 0 : i32
    return %c0_i32, %c0_i32_0 : i32, i32
  }
  func.func @transform_3(%arg0: i32) -> (i32, i32) {
    %c0_i32 = arith.constant 0 : i32
    %c0_i32_0 = arith.constant 0 : i32
    return %c0_i32, %arg0 : i32, i32
  }
}

module attributes {stable_mosaic.version = 11 : i64} {
  func.func @kernel(%arg0: i32, %arg1: memref<8x800xbf16, #tpu.memory_space<vmem>>, %arg2: memref<800x500xf32, #tpu.memory_space<vmem>>, %arg3: memref<1x500xf32, #tpu.memory_space<vmem>>, %arg4: memref<500x500xf32, #tpu.memory_space<vmem>>, %arg5: memref<1x500xf32, #tpu.memory_space<vmem>>, %arg6: memref<500x128xf32, #tpu.memory_space<vmem>>, %arg7: memref<1x128xf32, #tpu.memory_space<vmem>>, %arg8: memref<1x128xf32, #tpu.memory_space<vmem>>, %arg9: memref<1x1xf32, #tpu.memory_space<vmem>>, %arg10: memref<500x2xf32, #tpu.memory_space<vmem>>, %arg11: memref<1x2xf32, #tpu.memory_space<vmem>>, %arg12: memref<1x2xf32, #tpu.memory_space<vmem>>) attributes {dimension_semantics = [#tpu.dimension_semantics<arbitrary>], iteration_bounds = array<i64: 1>, scalar_prefetch = 0 : i64, scratch_operands = 0 : i64, tpu.core_type = #tpu.core_type<tc>, window_params = [{pipeline_mode = #tpu.pipeline_mode<synchronous>, transform_indices = @transform_0, window_bounds = array<i64: 8, 800>}, {pipeline_mode = #tpu.pipeline_mode<synchronous>, transform_indices = @transform_1, window_bounds = array<i64: 800, 500>}, {pipeline_mode = #tpu.pipeline_mode<synchronous>, transform_indices = @transform_2, window_bounds = array<i64: 1, 500>}, {pipeline_mode = #tpu.pipeline_mode<synchronous>, transform_indices = @transform_3, window_bounds = array<i64: 500, 500>}, {pipeline_mode = #tpu.pipeline_mode<synchronous>, transform_indices = @transform_4, window_bounds = array<i64: 1, 500>}, {pipeline_mode = #tpu.pipeline_mode<synchronous>, transform_indices = @transform_5, window_bounds = array<i64: 500, 128>}, {pipeline_mode = #tpu.pipeline_mode<synchronous>, transform_indices = @transform_6, window_bounds = array<i64: 1, 128>}, {pipeline_mode = #tpu.pipeline_mode<synchronous>, transform_indices = @transform_7, window_bounds = array<i64: 1, 128>}, {pipeline_mode = #tpu.pipeline_mode<synchronous>, transform_indices = @transform_8, window_bounds = array<i64: 1, 1>}, {pipeline_mode = #tpu.pipeline_mode<synchronous>, transform_indices = @transform_9, window_bounds = array<i64: 500, 2>}, {pipeline_mode = #tpu.pipeline_mode<synchronous>, transform_indices = @transform_10, window_bounds = array<i64: 1, 2>}, {pipeline_mode = #tpu.pipeline_mode<synchronous>, transform_indices = @transform_11, window_bounds = array<i64: 1, 2>}]} {
    %c0 = arith.constant 0 : index
    %c0_0 = arith.constant 0 : index
    %0 = vector.load %arg1[%c0, %c0_0] : memref<8x800xbf16, #tpu.memory_space<vmem>>, vector<8x800xbf16>
    %c0_1 = arith.constant 0 : index
    %c0_2 = arith.constant 0 : index
    %1 = vector.load %arg2[%c0_1, %c0_2] : memref<800x500xf32, #tpu.memory_space<vmem>>, vector<800x500xf32>
    %2 = arith.truncf %1 : vector<800x500xf32> to vector<800x500xbf16>
    %cst = arith.constant dense<0.000000e+00> : vector<8x500xf32>
    %3 = tpu.matmul %0, %2, %cst {dimension_numbers = #tpu.dot_dimension_numbers<[1], [0], [0], [1], [0, 0, 1, 1], [], []>} : vector<8x800xbf16>, vector<800x500xbf16>, vector<8x500xf32> -> vector<8x500xf32>
    %c0_3 = arith.constant 0 : index
    %c0_4 = arith.constant 0 : index
    %4 = vector.load %arg3[%c0_3, %c0_4] : memref<1x500xf32, #tpu.memory_space<vmem>>, vector<1x500xf32>
    %5 = vector.broadcast %4 : vector<1x500xf32> to vector<8x500xf32>
    %6 = arith.addf %3, %5 : vector<8x500xf32>
    %cst_5 = arith.constant 0.000000e+00 : f32
    %7 = vector.broadcast %cst_5 : f32 to vector<8x500xf32>
    %8 = arith.maximumf %6, %7 : vector<8x500xf32>
    %9 = arith.truncf %8 : vector<8x500xf32> to vector<8x500xbf16>
    %c0_6 = arith.constant 0 : index
    %c0_7 = arith.constant 0 : index
    %10 = vector.load %arg4[%c0_6, %c0_7] : memref<500x500xf32, #tpu.memory_space<vmem>>, vector<500x500xf32>
    %11 = arith.truncf %10 : vector<500x500xf32> to vector<500x500xbf16>
    %cst_8 = arith.constant dense<0.000000e+00> : vector<8x500xf32>
    %12 = tpu.matmul %9, %11, %cst_8 {dimension_numbers = #tpu.dot_dimension_numbers<[1], [0], [0], [1], [0, 0, 1, 1], [], []>} : vector<8x500xbf16>, vector<500x500xbf16>, vector<8x500xf32> -> vector<8x500xf32>
    %c0_9 = arith.constant 0 : index
    %c0_10 = arith.constant 0 : index
    %13 = vector.load %arg5[%c0_9, %c0_10] : memref<1x500xf32, #tpu.memory_space<vmem>>, vector<1x500xf32>
    %14 = vector.broadcast %13 : vector<1x500xf32> to vector<8x500xf32>
    %15 = arith.addf %12, %14 : vector<8x500xf32>
    %cst_11 = arith.constant 0.000000e+00 : f32
    %16 = vector.broadcast %cst_11 : f32 to vector<8x500xf32>
    %17 = arith.maximumf %15, %16 : vector<8x500xf32>
    %18 = arith.truncf %17 : vector<8x500xf32> to vector<8x500xbf16>
    %c0_12 = arith.constant 0 : index
    %c0_13 = arith.constant 0 : index
    %19 = vector.load %arg6[%c0_12, %c0_13] : memref<500x128xf32, #tpu.memory_space<vmem>>, vector<500x128xf32>
    %20 = arith.truncf %19 : vector<500x128xf32> to vector<500x128xbf16>
    %cst_14 = arith.constant dense<0.000000e+00> : vector<8x128xf32>
    %21 = tpu.matmul %18, %20, %cst_14 {dimension_numbers = #tpu.dot_dimension_numbers<[1], [0], [0], [1], [0, 0, 1, 1], [], []>} : vector<8x500xbf16>, vector<500x128xbf16>, vector<8x128xf32> -> vector<8x128xf32>
    %c0_15 = arith.constant 0 : index
    %c0_16 = arith.constant 0 : index
    %22 = vector.load %arg7[%c0_15, %c0_16] : memref<1x128xf32, #tpu.memory_space<vmem>>, vector<1x128xf32>
    %23 = vector.broadcast %22 : vector<1x128xf32> to vector<8x128xf32>
    %24 = arith.addf %21, %23 : vector<8x128xf32>
    %25 = math.tanh %24 : vector<8x128xf32>
    %c0_17 = arith.constant 0 : index
    %c0_18 = arith.constant 0 : index
    %26 = vector.load %arg8[%c0_17, %c0_18] : memref<1x128xf32, #tpu.memory_space<vmem>>, vector<1x128xf32>
    %27 = vector.broadcast %26 : vector<1x128xf32> to vector<8x128xf32>
    %28 = arith.mulf %25, %27 : vector<8x128xf32>
    %cst_19 = arith.constant dense<0.000000e+00> : vector<8xf32>
    %29 = vector.multi_reduction <add>, %28, %cst_19 [1] : vector<8x128xf32> to vector<8xf32>
    %30 = vector.shape_cast %29 : vector<8xf32> to vector<8x1xf32>
    %c0_20 = arith.constant 0 : index
    %c0_21 = arith.constant 0 : index
    %31 = vector.load %arg9[%c0_20, %c0_21] : memref<1x1xf32, #tpu.memory_space<vmem>>, vector<1x1xf32>
    %32 = vector.broadcast %31 : vector<1x1xf32> to vector<8x1xf32>
    %33 = arith.addf %30, %32 : vector<8x1xf32>
    %cst_22 = arith.constant dense<0xFF800000> : vector<1xf32>
    %34 = vector.multi_reduction <maximumf>, %33, %cst_22 [0] : vector<8x1xf32> to vector<1xf32>
    %35 = vector.shape_cast %34 : vector<1xf32> to vector<1x1xf32>
    %36 = vector.broadcast %35 : vector<1x1xf32> to vector<8x1xf32>
    %37 = arith.subf %33, %36 : vector<8x1xf32>
    %38 = math.exp %37 : vector<8x1xf32>
    %cst_23 = arith.constant dense<0.000000e+00> : vector<1xf32>
    %39 = vector.multi_reduction <add>, %38, %cst_23 [0] : vector<8x1xf32> to vector<1xf32>
    %40 = vector.shape_cast %39 : vector<1xf32> to vector<1x1xf32>
    %41 = vector.broadcast %40 : vector<1x1xf32> to vector<8x1xf32>
    %42 = arith.divf %38, %41 : vector<8x1xf32>
    %43 = vector.broadcast %42 : vector<8x1xf32> to vector<8x500xf32>
    %44 = arith.mulf %43, %17 : vector<8x500xf32>
    %cst_24 = arith.constant dense<0.000000e+00> : vector<500xf32>
    %45 = vector.multi_reduction <add>, %44, %cst_24 [0] : vector<8x500xf32> to vector<500xf32>
    %46 = vector.shape_cast %45 : vector<500xf32> to vector<1x500xf32>
    %c0_25 = arith.constant 0 : index
    %c0_26 = arith.constant 0 : index
    %47 = vector.load %arg10[%c0_25, %c0_26] : memref<500x2xf32, #tpu.memory_space<vmem>>, vector<500x2xf32>
    %cst_27 = arith.constant dense<0.000000e+00> : vector<1x2xf32>
    %48 = tpu.matmul %46, %47, %cst_27 {dimension_numbers = #tpu.dot_dimension_numbers<[1], [0], [0], [1], [0, 0, 1, 1], [], []>} : vector<1x500xf32>, vector<500x2xf32>, vector<1x2xf32> -> vector<1x2xf32>
    %c0_28 = arith.constant 0 : index
    %c0_29 = arith.constant 0 : index
    %49 = vector.load %arg11[%c0_28, %c0_29] : memref<1x2xf32, #tpu.memory_space<vmem>>, vector<1x2xf32>
    %50 = arith.addf %48, %49 : vector<1x2xf32>
    %c0_30 = arith.constant 0 : index
    %c0_31 = arith.constant 0 : index
    %51 = vector.load %arg12[%c0_30, %c0_31] : memref<1x2xf32, #tpu.memory_space<vmem>>, vector<1x2xf32>
    tpu.vector_store %arg12[%c0_30, %c0_31], %50 {strides = array<i32>} : memref<1x2xf32, #tpu.memory_space<vmem>>, vector<1x2xf32>,
    return
  }
  func.func @transform_0(%arg0: i32) -> (i32, i32) {
    %c0_i32 = arith.constant 0 : i32
    %c0_i32_0 = arith.constant 0 : i32
    %c0_i32_1 = arith.constant 0 : i32
    return %c0_i32, %c0_i32_0 : i32, i32
  }
  func.func @transform_1(%arg0: i32) -> (i32, i32) {
    %c0_i32 = arith.constant 0 : i32
    %c0_i32_0 = arith.constant 0 : i32
    %c0_i32_1 = arith.constant 0 : i32
    return %c0_i32, %c0_i32_0 : i32, i32
  }
  func.func @transform_2(%arg0: i32) -> (i32, i32) {
    %c0_i32 = arith.constant 0 : i32
    %c0_i32_0 = arith.constant 0 : i32
    %c0_i32_1 = arith.constant 0 : i32
    return %c0_i32, %c0_i32_0 : i32, i32
  }
  func.func @transform_3(%arg0: i32) -> (i32, i32) {
    %c0_i32 = arith.constant 0 : i32
    %c0_i32_0 = arith.constant 0 : i32
    %c0_i32_1 = arith.constant 0 : i32
    return %c0_i32, %c0_i32_0 : i32, i32
  }
  func.func @transform_4(%arg0: i32) -> (i32, i32) {
    %c0_i32 = arith.constant 0 : i32
    %c0_i32_0 = arith.constant 0 : i32
    %c0_i32_1 = arith.constant 0 : i32
    return %c0_i32, %c0_i32_0 : i32, i32
  }
  func.func @transform_5(%arg0: i32) -> (i32, i32) {
    %c0_i32 = arith.constant 0 : i32
    %c0_i32_0 = arith.constant 0 : i32
    %c0_i32_1 = arith.constant 0 : i32
    return %c0_i32, %c0_i32_0 : i32, i32
  }
  func.func @transform_6(%arg0: i32) -> (i32, i32) {
    %c0_i32 = arith.constant 0 : i32
    %c0_i32_0 = arith.constant 0 : i32
    %c0_i32_1 = arith.constant 0 : i32
    return %c0_i32, %c0_i32_0 : i32, i32
  }
  func.func @transform_7(%arg0: i32) -> (i32, i32) {
    %c0_i32 = arith.constant 0 : i32
    %c0_i32_0 = arith.constant 0 : i32
    %c0_i32_1 = arith.constant 0 : i32
    return %c0_i32, %c0_i32_0 : i32, i32
  }
  func.func @transform_8(%arg0: i32) -> (i32, i32) {
    %c0_i32 = arith.constant 0 : i32
    %c0_i32_0 = arith.constant 0 : i32
    %c0_i32_1 = arith.constant 0 : i32
    return %c0_i32, %c0_i32_0 : i32, i32
  }
  func.func @transform_9(%arg0: i32) -> (i32, i32) {
    %c0_i32 = arith.constant 0 : i32
    %c0_i32_0 = arith.constant 0 : i32
    %c0_i32_1 = arith.constant 0 : i32
    return %c0_i32, %c0_i32_0 : i32, i32
  }
  func.func @transform_10(%arg0: i32) -> (i32, i32) {
    %c0_i32 = arith.constant 0 : i32
    %c0_i32_0 = arith.constant 0 : i32
    %c0_i32_1 = arith.constant 0 : i32
    return %c0_i32, %c0_i32_0 : i32, i32
  }
  func.func @transform_11(%arg0: i32) -> (i32, i32) {
    %c0_i32 = arith.constant 0 : i32
    %c0_i32_0 = arith.constant 0 : i32
    %c0_i32_1 = arith.constant 0 : i32
    return %c0_i32, %c0_i32_0 : i32, i32
  }
}

</mosaic_0001>

<bundles_post_ra>
// kernel: custom_mil_forward.3
= control target key start
LH: loop header
LB: loop body
LE: loop exit
PB: predicated region body
PF: predicated region fallthrough
CT: control target
= control target key end

     0   :  { %s1177_s12 = smov 0   ;;  %s1179_s13 = smov 0   ;;  %s1513_s0 = inlined_call_operand.vmem [shape: bf16[4,25,1152], index: 0, kind: input, shape index: {}]   ;;  %s1514_s1 = inlined_call_operand.vmem [shape: f32[20,25], index: 1, kind: input, shape index: {}]   ;;  %s1515_s2 = inlined_call_operand.vmem [shape: f32[20,1], index: 2, kind: input, shape index: {}]   ;;  %s1516_s3 = inlined_call_operand.vmem [shape: bf16[20,1152], index: 3, kind: output, shape index: {}]  }
   0x1   :  { %s1181_s14 = smov 0  }
   0x2 LB: > { %s883_s15 = sadd.s32 4294967295, %s1153_s14   ;;  %s1194_s16 = sadd.s32 1, %s1153_s14   ;;  %s1153_s14 = sphi %s1181_s14, %s1520_s14   ;;  %s1149_s13 = sphi %s1179_s13, %s1519_s13   ;;  %s1145_s12 = sphi %s1177_s12, %s1518_s12  }
   0x3   : > { %s17_s17 = ssub.s32 %s1153_s14, %s1194_s16  ;;  %s20_s18 = sadd.s32 1, %s1149_s13 }
   0x4   : > { %p18_p0 = scmp.eq.s32.totalorder %s17_s17, 0  ;;  %p27_p1 = scmp.ne.s32.totalorder %s1149_s13, %s1145_s12 }
   0x5   : > { %p28_p2 = scmp.eq.s32.totalorder %s1153_s14, 0  ;;  %p99_p3 = scmp.eq.s32.totalorder %s883_s15, 2 }
   0x6   : > { %s1205_s19 = scalar_select %p18_p0, %s1149_s13, %s20_s18  }
   0x7   : > { %p29_p4 = por %p28_p2, %p27_p1  ;;  %p1207_p5 = por %p99_p3, %p27_p1 }
   0x8   : > { %p886_p6 = scmp.ge.s32.totalorder %s1153_s14, 3 }
   0xa   : > { %127 = sbr.rel (%p886_p6) target bundleno = 52 (0x34), region = 24 }
   0xf   : > { %130 = sbr.rel (!%p29_p4) target bundleno = 52 (0x34), region = 28  ;;  %s132_s21 = sand.u32 (%p29_p4), 1, %s1149_s13  }
  0x10   : > { %s1074_s22 = smul.u32 (%p29_p4), 12, %s1153_s14 }
  0x11   : > { %s1100_s23 = smul.u32 (%p29_p4), 192, %s132_s21 }
  0x12   : > { %s1217_s26 = scalar_lea.vmem (%p29_p4), %s1513_s0, %s1074_s22 }
  0x13   : > { %v152_v0 = vld [vmem:[%s1217_s26] sm:$0xff] (%p29_p4)  ;;  %v156_v2 = vld [vmem:[%s1217_s26 + $0x48] sm:$0xff] (%p29_p4)  ;;  %s1222_s27 = scalar_lea.vmem (%p29_p4), [#allocation2], %s1100_s23  ;;  %v160_v4 = vld [vmem:[%s1217_s26 + $0x90] sm:$0xff] (%p29_p4) }
  0x14   : > { %v154_v1 = vld [vmem:[%s1217_s26 + $0x24] sm:$0xff]  ;;  %153 = vst [vmem:[%s1222_s27] sm:$0xff] %v152_v0  ;;  %v158_v3 = vld [vmem:[%s1217_s26 + $0x6c] sm:$0xff]  ;;  %v162_v5 = vld [vmem:[%s1217_s26 + $0xb4] sm:$0xff] }
  0x15   : > { %155 = vst [vmem:[%s1222_s27 + $0xc] sm:$0xff] %v154_v1  ;;  %v164_v6 = vld [vmem:[%s1217_s26 + $0xd8] sm:$0xff]  ;;  %v168_v8 = vld [vmem:[%s1217_s26 + $0x120] sm:$0xff]  ;;  %v172_v10 = vld [vmem:[%s1217_s26 + $0x168] sm:$0xff] }
  0x16   : > { %157 = vst [vmem:[%s1222_s27 + $0x18] sm:$0xff] %v156_v2  ;;  %v166_v7 = vld [vmem:[%s1217_s26 + $0xfc] sm:$0xff]  ;;  %v170_v9 = vld [vmem:[%s1217_s26 + $0x144] sm:$0xff]  ;;  %v174_v11 = vld [vmem:[%s1217_s26 + $0x18c] sm:$0xff] }
  0x17   : > { %159 = vst [vmem:[%s1222_s27 + $0x24] sm:$0xff] %v158_v3  ;;  %v176_v12 = vld [vmem:[%s1217_s26 + $0x1b0] sm:$0xff]  ;;  %v180_v14 = vld [vmem:[%s1217_s26 + $0x1f8] sm:$0xff]  ;;  %v888_v16 = vld [vmem:[%s1217_s26 + $0x8] sm:$0xf] }
  0x18   : > { %161 = vst [vmem:[%s1222_s27 + $0x30] sm:$0xff] %v160_v4  ;;  %v178_v13 = vld [vmem:[%s1217_s26 + $0x1d4] sm:$0xff]  ;;  %v182_v15 = vld [vmem:[%s1217_s26 + $0x21c] sm:$0xff]  ;;  %v890_v17 = vld [vmem:[%s1217_s26 + $0x2c] sm:$0xf] }
  0x19   : > { %163 = vst [vmem:[%s1222_s27 + $0x3c] sm:$0xff] %v162_v5  ;;  %v892_v18 = vld [vmem:[%s1217_s26 + $0x50] sm:$0xf]  ;;  %v894_v19 = vld [vmem:[%s1217_s26 + $0x74] sm:$0xf] }
  0x1a   : > { %165 = vst [vmem:[%s1222_s27 + $0x48] sm:$0xff] %v164_v6  ;;  %v896_v20 = vld [vmem:[%s1217_s26 + $0x98] sm:$0xf]  ;;  %v898_v21 = vld [vmem:[%s1217_s26 + $0xbc] sm:$0xf] }
  0x1b   : > { %167 = vst [vmem:[%s1222_s27 + $0x54] sm:$0xff] %v166_v7  ;;  %v900_v22 = vld [vmem:[%s1217_s26 + $0xe0] sm:$0xf]  ;;  %v902_v23 = vld [vmem:[%s1217_s26 + $0x104] sm:$0xf] }
  0x1c   : > { %169 = vst [vmem:[%s1222_s27 + $0x60] sm:$0xff] %v168_v8  ;;  %v904_v24 = vld [vmem:[%s1217_s26 + $0x128] sm:$0xf]  ;;  %v906_v25 = vld [vmem:[%s1217_s26 + $0x14c] sm:$0xf] }
  0x1d   : > { %171 = vst [vmem:[%s1222_s27 + $0x6c] sm:$0xff] %v170_v9  ;;  %v908_v26 = vld [vmem:[%s1217_s26 + $0x170] sm:$0xf]  ;;  %v910_v27 = vld [vmem:[%s1217_s26 + $0x194] sm:$0xf] }
  0x1e   : > { %173 = vst [vmem:[%s1222_s27 + $0x78] sm:$0xff] %v172_v10  ;;  %v912_v28 = vld [vmem:[%s1217_s26 + $0x1b8] sm:$0xf]  ;;  %v914_v29 = vld [vmem:[%s1217_s26 + $0x1dc] sm:$0xf] }
  0x1f   : > { %175 = vst [vmem:[%s1222_s27 + $0x84] sm:$0xff] %v174_v11  ;;  %v916_v30 = vld [vmem:[%s1217_s26 + $0x200] sm:$0xf]  ;;  %v918_v31 = vld [vmem:[%s1217_s26 + $0x224] sm:$0xf] }
  0x20   : > { %177 = vst [vmem:[%s1222_s27 + $0x90] sm:$0xff] %v176_v12 }
  0x21   : > { %179 = vst [vmem:[%s1222_s27 + $0x9c] sm:$0xff] %v178_v13 }
  0x22   : > { %181 = vst [vmem:[%s1222_s27 + $0xa8] sm:$0xff] %v180_v14 }
  0x23   : > { %183 = vst [vmem:[%s1222_s27 + $0xb4] sm:$0xff] %v182_v15 }
  0x24   : > { %889 = vst [vmem:[%s1222_s27 + $0x8] sm:$0xf] %v888_v16 }
  0x25   : > { %891 = vst [vmem:[%s1222_s27 + $0x14] sm:$0xf] %v890_v17 }
  0x26   : > { %893 = vst [vmem:[%s1222_s27 + $0x20] sm:$0xf] %v892_v18 }
  0x27   : > { %895 = vst [vmem:[%s1222_s27 + $0x2c] sm:$0xf] %v894_v19 }
  0x28   : > { %897 = vst [vmem:[%s1222_s27 + $0x38] sm:$0xf] %v896_v20 }
  0x29   : > { %899 = vst [vmem:[%s1222_s27 + $0x44] sm:$0xf] %v898_v21 }
  0x2a   : > { %901 = vst [vmem:[%s1222_s27 + $0x50] sm:$0xf] %v900_v22 }
  0x2b   : > { %903 = vst [vmem:[%s1222_s27 + $0x5c] sm:$0xf] %v902_v23 }
  0x2c   : > { %905 = vst [vmem:[%s1222_s27 + $0x68] sm:$0xf] %v904_v24 }
  0x2d   : > { %907 = vst [vmem:[%s1222_s27 + $0x74] sm:$0xf] %v906_v25 }
  0x2e   : > { %909 = vst [vmem:[%s1222_s27 + $0x80] sm:$0xf] %v908_v26 }
  0x2f   : > { %911 = vst [vmem:[%s1222_s27 + $0x8c] sm:$0xf] %v910_v27 }
  0x30   : > { %913 = vst [vmem:[%s1222_s27 + $0x98] sm:$0xf] %v912_v28 }
  0x31   : > { %915 = vst [vmem:[%s1222_s27 + $0xa4] sm:$0xf] %v914_v29 }
  0x32   : > { %917 = vst [vmem:[%s1222_s27 + $0xb0] sm:$0xf] %v916_v30 }
  0x33   : > { %919 = vst [vmem:[%s1222_s27 + $0xbc] sm:$0xf] %v918_v31 }
  0x34 PF: > { %p920_p7 = scmp.ge.s32.totalorder %s1153_s14, 1  ;;  %p228_p8 = scmp.lt.s32.totalorder %s1153_s14, 4 }
  0x36   : > { %p229_p9 = pnand %p920_p7, %p228_p8 }
  0x37   : > { %s235_s28 = sand.u32 (!%p229_p9), 1, %s1145_s12  }
  0x38   : > { %232 = sbr.rel (%p229_p9) target bundleno = 308 (0x134), region = 54 }
  0x39   : > { %s1101_s29 = smul.u32 (!%p229_p9), 192, %s235_s28 }
  0x3a   : > { %s1449_s23 = smul.u32 (!%p229_p9), 36, %s235_s28 }
  0x3b   : > { %s1295_s5 = scalar_lea.vmem (!%p229_p9), [#allocation2], %s1101_s29 }
  0x3c   : > { %s1465_s12 = scalar_lea.vmem (!%p229_p9), [#allocation3], %s1449_s23 }
  0x3d   : > { %vm327_vm0 = vcmask 1043456   ;;  %vm328_vm1 = vcmask 1044480   ;;  %v1155_v32 = vmov 65535   ;;  %v265_v34 = vld [vmem:[%s1515_s2] sm:$0xff]  ;;  %v1156_v35 = vmov 0   ;;  %v266_v49 = vld [vmem:[%s1515_s2 + $0x8] sm:$0xff] }
  0x3e   : > { %v329_v33 = vsel %vm327_vm0, 4294967295, %v1155_v32  ;;  %1129 = vset.pattern.permute.xlu0 %v1156_v35  ;;  %1130 = vset.pattern.permute.xlu1 %v1156_v35  ;;  %v935_v37 = vld [vmem:[%s1295_s5 + $0x18] sm:$0xf]  ;;  %v1079_v38 = vld [vmem:[%s1295_s5 + $0x20] sm:$0x10]  ;;  %v261_v56 = vld [vmem:[%s1514_s1 + $0x8] sm:$0xff] }
  0x3f   : > { %v1293_v36 = vsel %vm328_vm1, %v329_v33, 0  ;;  %278 = vperm.xlu0 %1129, %v265_v34   ;;  %v1078_v39 = vld [vmem:[%s1295_s5 + $0x1c] sm:$0xf]  ;;  %v936_v40 = vor.u32 %v1079_v38, %v935_v37  ;;  %v937_v41 = vld [vmem:[%s1295_s5 + $0x24] sm:$0x10]  ;;  %v260_v55 = vld [vmem:[%s1514_s1] sm:$0xff] }
  0x40   : > { %v943_v42 = vld [vmem:[%s1295_s5 + $0x20] sm:$0xf]  ;;  %v1080_v43 = vld [vmem:[%s1295_s5 + $0x28] sm:$0x10]  ;;  %v940_v44 = vor.u32 %v1078_v39, %v937_v41  ;;  %v973_v46 = vld [vmem:[%s1295_s5 + $0x48] sm:$0xf]  ;;  %v1334_v14 = vpack.c.bf16 %v261_v56, %v260_v55 }
  0x41   : > { %v944_v45 = vor.u32 %v1080_v43, %v943_v42  ;;  %v1085_v47 = vld [vmem:[%s1295_s5 + $0x50] sm:$0x10]  ;;  %v923_v48 = vld [vmem:[%s1295_s5] sm:$0xf]  ;;  %v332_v50 = vand.u32 %v936_v40, %v1293_v36  ;;  %v1076_v52 = vld [vmem:[%s1295_s5 + $0x8] sm:$0xf0] }
  0x42   : > { %v974_v51 = vor.u32 %v1085_v47, %v973_v46  ;;  %v1075_v53 = vld [vmem:[%s1295_s5 + $0x4] sm:$0xf]  ;;  %v925_v54 = vld [vmem:[%s1295_s5 + $0xc] sm:$0xf0]  ;;  %v335_v57 = vand.u32 %v940_v44, %v1293_v36  ;;  %v931_v59 = vld [vmem:[%s1295_s5 + $0x8] sm:$0xf]  ;;  %v924_v63 = vor.u32 %v1076_v52, %v923_v48 }
  0x43   : > { %v338_v58 = vand.u32 %v944_v45, %v1293_v36  ;;  %v1077_v60 = vld [vmem:[%s1295_s5 + $0x10] sm:$0xf0]  ;;  %v961_v61 = vld [vmem:[%s1295_s5 + $0x30] sm:$0xf]  ;;  %346 = vmatpush.bf16.msra.mxu0 %v332_v50  ;;  %v1082_v0 = vld [vmem:[%s1295_s5 + $0x38] sm:$0xf0]  ;;  %v928_v3 = vor.u32 %v1075_v53, %v925_v54 }
  0x44   : > { %v442_v62 = vand.u32 %v974_v51, %v1293_v36  ;;  %v1011_v1 = vld [vmem:[%s1295_s5 + $0x78] sm:$0xf]  ;;  %v1091_v2 = vld [vmem:[%s1295_s5 + $0x80] sm:$0x10]  ;;  %364 = vmatpush.bf16.msra.mxu1 %v335_v57  ;;  %v932_v4 = vor.u32 %v1077_v60, %v931_v59  ;;  %v1090_v6 = vld [vmem:[%s1295_s5 + $0x7c] sm:$0xf]  ;;  %v962_v9 = vor.u32 %v1082_v0, %v961_v61 }
  0x45   : > { %382 = vmatpush.bf16.msra.mxu2 %v338_v58  ;;  %v1012_v5 = vor.u32 %v1091_v2, %v1011_v1  ;;  %v1013_v7 = vld [vmem:[%s1295_s5 + $0x84] sm:$0x10]  ;;  %v1084_v8 = vld [vmem:[%s1295_s5 + $0x4c] sm:$0xf]  ;;  %v975_v11 = vld [vmem:[%s1295_s5 + $0x54] sm:$0x10] }
  0x46   : > { %456 = vmatpush.bf16.msra.mxu3 %v442_v62  ;;  %v1016_v10 = vor.u32 %v1090_v6, %v1013_v7  ;;  %v981_v12 = vld [vmem:[%s1295_s5 + $0x50] sm:$0xf]  ;;  %v1086_v13 = vld [vmem:[%s1295_s5 + $0x58] sm:$0x10]  ;;  %v978_v16 = vor.u32 %v1084_v8, %v975_v11  ;;  %v999_v18 = vld [vmem:[%s1295_s5 + $0x60] sm:$0xf] }
  0x47   : > { %283 = vperm.xlu0 %1129, %v266_v49   ;;  %v561_v15 = vand.u32 %v1012_v5, %v1293_v36  ;;  %v982_v17 = vor.u32 %v1086_v13, %v981_v12  ;;  %v1088_v19 = vld [vmem:[%s1295_s5 + $0x68] sm:$0xf0]  ;;  %347 = vmatpush.bf16.msra.mxu0 %v924_v63  ;;  %vm320_vm2 = vcmask 203776   ;;  %v1087_v21 = vld [vmem:[%s1295_s5 + $0x64] sm:$0xf]  ;;  %s1099_s24 = smul.u32 (%p1207_p5), 12, %s883_s15 }
  0x48   : > { %v564_v20 = vand.u32 %v1016_v10, %v1293_v36  ;;  %v1001_v22 = vld [vmem:[%s1295_s5 + $0x6c] sm:$0xf0]  ;;  %365 = vmatpush.bf16.msra.mxu1 %v928_v3  ;;  %v445_v23 = vand.u32 %v978_v16, %v1293_v36  ;;  %v1000_v25 = vor.u32 %v1088_v19, %v999_v18  ;;  %v1081_v26 = vld [vmem:[%s1295_s5 + $0x34] sm:$0xf]  ;;  %v963_v27 = vld [vmem:[%s1295_s5 + $0x3c] sm:$0xf0] }
  0x49   : > { %383 = vmatpush.bf16.msra.mxu2 %v932_v4  ;;  %v448_v24 = vand.u32 %v982_v17, %v1293_v36  ;;  %v1004_v28 = vor.u32 %v1087_v21, %v1001_v22  ;;  %v969_v29 = vld [vmem:[%s1295_s5 + $0x38] sm:$0xf]  ;;  %v1083_v30 = vld [vmem:[%s1295_s5 + $0x40] sm:$0xf0]  ;;  %v966_v31 = vor.u32 %v1081_v26, %v963_v27  ;;  %v1096_v32 = vld [vmem:[%s1295_s5 + $0xac] sm:$0xf]  ;;  %s781_s27 = scalar_lea.vmem (%p1207_p5), %s1516_s3, %s1099_s24 }
  0x4a   : > { %457 = vmatpush.bf16.msra.mxu3 %v962_v9  ;;  %945 = vmatmul.msk.bf16.vlgmr.msra.gmra.mxu0 %vm320_vm2, %v1334_v14  ;;  %v1051_v33 = vld [vmem:[%s1295_s5 + $0xb4] sm:$0x10]  ;;  %v1057_v34 = vld [vmem:[%s1295_s5 + $0xb0] sm:$0xf]  ;;  %v970_v35 = vor.u32 %v1083_v30, %v969_v29  ;;  %v1098_v38 = vld [vmem:[%s1295_s5 + $0xb8] sm:$0x10] }
  0x4b   : > { %947 = vmatmul.msk.bf16.vlgmr.msra.gmra.mxu1 %vm320_vm2, %v1334_v14  ;;  %474 = vmatpush.bf16.msrb.mxu0 %v445_v23  ;;  %v1054_v37 = vor.u32 %v1096_v32, %v1051_v33  ;;  %v267_v39 = vld [vmem:[%s1515_s2 + $0x10] sm:$0xf]  ;;  %v1019_v40 = vld [vmem:[%s1295_s5 + $0x80] sm:$0xf]  ;;  %v1058_v41 = vor.u32 %v1098_v38, %v1057_v34  ;;  %v1092_v42 = vld [vmem:[%s1295_s5 + $0x88] sm:$0x10] }
  0x4c   : > { %949 = vmatmul.msk.bf16.vlgmr.msra.gmra.mxu2 %vm320_vm2, %v1334_v14  ;;  %492 = vmatpush.bf16.msrb.mxu1 %v448_v24  ;;  %v1049_v43 = vld [vmem:[%s1295_s5 + $0xa8] sm:$0xf]  ;;  %v1097_v44 = vld [vmem:[%s1295_s5 + $0xb0] sm:$0x10]  ;;  %v1020_v46 = vor.u32 %v1092_v42, %v1019_v40  ;;  %v262_v51 = vld [vmem:[%s1514_s1 + $0x10] sm:$0xf] }
  0x4d   : > { %575 = vmatpush.bf16.msrb.mxu2 %v561_v15  ;;  %983 = vmatmul.msk.bf16.vlgmr.msra.gmra.mxu3 %vm320_vm2, %v1334_v14  ;;  %v674_v45 = vand.u32 %v1054_v37, %v1293_v36  ;;  %v1050_v47 = vor.u32 %v1097_v44, %v1049_v43  ;;  %v677_v48 = vand.u32 %v1058_v41, %v1293_v36  ;;  %v1039_v53 = vld [vmem:[%s1295_s5 + $0x9c] sm:$0xf0]  ;;  %v1045_v54 = vld [vmem:[%s1295_s5 + $0x98] sm:$0xf]  ;;  %v1095_v56 = vld [vmem:[%s1295_s5 + $0xa0] sm:$0xf0] }
  0x4e   : > { %593 = vmatpush.bf16.msrb.mxu3 %v564_v20  ;;  %288 = vperm.xlu1 %1130, %v267_v39   ;;  %v567_v49 = vand.u32 %v1020_v46, %v1293_v36  ;;  %v264_v52 = vpack.c.bf16 %v262_v51, %v262_v51  ;;  %v1007_v57 = vld [vmem:[%s1295_s5 + $0x68] sm:$0xf]  ;;  %v1089_v58 = vld [vmem:[%s1295_s5 + $0x70] sm:$0xf0]  ;;  %v1046_v59 = vor.u32 %v1095_v56, %v1045_v54  ;;  %v1037_v61 = vld [vmem:[%s1295_s5 + $0x90] sm:$0xf] }
  0x4f   : > { %475 = vmatpush.bf16.msrb.mxu0 %v966_v31  ;;  %v671_v50 = vand.u32 %v1050_v47, %v1293_v36  ;;  %v1093_v36 = vld [vmem:[%s1295_s5 + $0x94] sm:$0xf]  ;;  %v1008_v60 = vor.u32 %v1089_v58, %v1007_v57  ;;  %v1094_v62 = vld [vmem:[%s1295_s5 + $0x98] sm:$0xf0] }
  0x50   : > { %493 = vmatpush.bf16.msrb.mxu1 %v970_v35  ;;  %v1042_v55 = vor.u32 %v1093_v36, %v1039_v53  ;;  %v1038_v63 = vor.u32 %v1094_v62, %v1037_v61 }
  0x51   : > { %576 = vmatpush.bf16.msrb.mxu2 %v1000_v25 }
  0x52   : > { %594 = vmatpush.bf16.msrb.mxu3 %v1004_v28 }
  0x53   : > { %611 = vmatpush.bf16.msra.mxu0 %v567_v49 }
  0x54   : > { %685 = vmatpush.bf16.msra.mxu1 %v671_v50 }
  0x55   : > { %703 = vmatpush.bf16.msra.mxu2 %v674_v45 }
  0x56   : > { %721 = vmatpush.bf16.msra.mxu3 %v677_v48 }
  0x57   : > { %612 = vmatpush.bf16.msra.mxu0 %v1008_v60 }
  0x58   : > { %686 = vmatpush.bf16.msra.mxu1 %v1038_v63 }
  0x59   : > { %704 = vmatpush.bf16.msra.mxu2 %v1042_v55 }
  0x5a   : > { %946 = vmatmul.msk.bf16.gmra.mxu0 %vm320_vm2, %v264_v52  ;;  %722 = vmatpush.bf16.msra.mxu3 %v1046_v59 }
  0x5b   : > { %948 = vmatmul.msk.bf16.gmra.mxu1 %vm320_vm2, %v264_v52 }
  0x5c   : > { %950 = vmatmul.msk.bf16.gmra.mxu2 %vm320_vm2, %v264_v52 }
  0x5d   : > { %984 = vmatmul.msk.bf16.gmra.mxu3 %vm320_vm2, %v264_v52 }
  0x6a   : > { %985 = vmatmul.msk.bf16.vlgmr.msrb.gmra.mxu0 %vm320_vm2, %v1334_v14 }
  0x6b   : > { %987 = vmatmul.msk.bf16.vlgmr.msrb.gmra.mxu1 %vm320_vm2, %v1334_v14 }
  0x6c   : > { %1021 = vmatmul.msk.bf16.vlgmr.msrb.gmra.mxu2 %vm320_vm2, %v1334_v14 }
  0x6d   : > { %1023 = vmatmul.msk.bf16.vlgmr.msrb.gmra.mxu3 %vm320_vm2, %v1334_v14 }
  0x7a   : > { %986 = vmatmul.msk.bf16.gmra.mxu0 %vm320_vm2, %v264_v52 }
  0x7b   : > { %988 = vmatmul.msk.bf16.gmra.mxu1 %vm320_vm2, %v264_v52 }
  0x7c   : > { %1022 = vmatmul.msk.bf16.gmra.mxu2 %vm320_vm2, %v264_v52 }
  0x7d   : > { %1024 = vmatmul.msk.bf16.gmra.mxu3 %vm320_vm2, %v264_v52 }
  0x8a   : > { %1025 = vmatmul.msk.bf16.vlgmr.msra.gmra.mxu0 %vm320_vm2, %v1334_v14 }
  0x8b   : > { %1059 = vmatmul.msk.bf16.vlgmr.msra.gmra.mxu1 %vm320_vm2, %v1334_v14 }
  0x8c   : > { %1061 = vmatmul.msk.bf16.vlgmr.msra.gmra.mxu2 %vm320_vm2, %v1334_v14 }
  0x8d   : > { %1063 = vmatmul.msk.bf16.vlgmr.msra.gmra.mxu3 %vm320_vm2, %v1334_v14 }
  0x9a   : > { %1026 = vmatmul.msk.bf16.gmra.mxu0 %vm320_vm2, %v264_v52 }
  0x9b   : > { %1060 = vmatmul.msk.bf16.gmra.mxu1 %vm320_vm2, %v264_v52 }
  0x9c   : > { %1062 = vmatmul.msk.bf16.gmra.mxu2 %vm320_vm2, %v264_v52 }
  0x9d   : > { %1064 = vmatmul.msk.bf16.gmra.mxu3 %vm320_vm2, %v264_v52 }
  0xb1   : > { %v279_v26 = vpop.permute.xlu0 %278 }
  0xb9   : > { %v1430_v34 = vpop.permute.xlu0 %283 }
  0xc7   : > { %v349_v0 = vpop.f32.mrf.mxu0 }
  0xc8   : > { %v367_v1 = vpop.f32.mrf.mxu1  ;;  %v350_v38 = vadd.f32 %v349_v0, %v279_v26 }
  0xc9   : > { %v368_v39 = vadd.f32 %v367_v1, %v279_v26  ;;  %v1440_v1 = vpop.permute.xlu1 %288 }
  0xca   : > { %v394_v50 = vmax.f32 %v350_v38, 0.0 }
  0xcb   : > { %v395_v51 = vmax.f32 %v368_v39, 0.0 }
  0xcf   : > { %v385_v2 = vpop.f32.mrf.mxu2  ;;  %v351_v4 = vpop.f32.mrf.mxu0 }
  0xd0   : > { %v459_v3 = vpop.f32.mrf.mxu3  ;;  %v369_v5 = vpop.f32.mrf.mxu1  ;;  %v386_v40 = vadd.f32 %v385_v2, %v279_v26  ;;  %v1433_v42 = vadd.f32 %v351_v4, %v1430_v34 }
  0xd1   : > { %v460_v41 = vadd.f32 %v459_v3, %v279_v26  ;;  %v1436_v45 = vadd.f32 %v369_v5, %v1430_v34 }
  0xd2   : > { %v396_v52 = vmax.f32 %v386_v40, 0.0  ;;  %v397_v54 = vmax.f32 %v1433_v42, 0.0 }
  0xd3   : > { %v504_v36 = vmax.f32 %v460_v41, 0.0  ;;  %v398_v60 = vmax.f32 %v1436_v45, 0.0 }
  0xd7   : > { %v1410_v6 = vpop.f32.mrf.mxu2  ;;  %v1414_v8 = vpop.f32.mrf.mxu0 }
  0xd8   : > { %v1412_v7 = vpop.f32.mrf.mxu3  ;;  %v1416_v9 = vpop.f32.mrf.mxu1 }
  0xdf   : > { %v1418_v10 = vpop.f32.mrf.mxu2  ;;  %v356_v12 = vpop.f32.mrf.mxu0 }
  0xe0   : > { %v1420_v11 = vpop.f32.mrf.mxu3  ;;  %v374_v13 = vpop.f32.mrf.mxu1  ;;  %v513_v12 = vmax.f32 %v394_v50, %v504_v36 }
  0xe1   : > { %v388_v13 = vadd.f32 %v1410_v6, %v1430_v34 }
  0xe7   : > { %v392_v14 = vpop.f32.mrf.mxu2  ;;  %v477_v16 = vpop.f32.mrf.mxu0 }
  0xe8   : > { %v466_v15 = vpop.f32.mrf.mxu3  ;;  %v495_v17 = vpop.f32.mrf.mxu1  ;;  %v478_v43 = vadd.f32 %v477_v16, %v279_v26  ;;  %v462_v14 = vadd.f32 %v1412_v7, %v1430_v34 }
  0xe9   : > { %v496_v46 = vadd.f32 %v495_v17, %v279_v26 }
  0xea   : > { %v505_v55 = vmax.f32 %v478_v43, 0.0 }
  0xeb   : > { %v506_v61 = vmax.f32 %v496_v46, 0.0 }
  0xec   : > { %v514_v16 = vmax.f32 %v395_v51, %v505_v55 }
  0xef   : > { %v578_v18 = vpop.f32.mrf.mxu2  ;;  %v479_v20 = vpop.f32.mrf.mxu0 }
  0xf0   : > { %v596_v19 = vpop.f32.mrf.mxu3  ;;  %v497_v21 = vpop.f32.mrf.mxu1  ;;  %v579_v44 = vadd.f32 %v578_v18, %v279_v26  ;;  %v480_v17 = vadd.f32 %v479_v20, %v1430_v34 }
  0xf1   : > { %v597_v48 = vadd.f32 %v596_v19, %v279_v26  ;;  %v498_v6 = vadd.f32 %v497_v21, %v1430_v34 }
  0xf2   : > { %v623_v56 = vmax.f32 %v579_v44, 0.0  ;;  %v508_v39 = vmax.f32 %v480_v17, 0.0 }
  0xf3   : > { %v624_v2 = vmax.f32 %v597_v48, 0.0  ;;  %v509_v43 = vmax.f32 %v498_v6, 0.0 }
  0xf7   : > { %v580_v22 = vpop.f32.mrf.mxu2  ;;  %v1422_v24 = vpop.f32.mrf.mxu0 }
  0xf8   : > { %v598_v23 = vpop.f32.mrf.mxu3  ;;  %v1424_v25 = vpop.f32.mrf.mxu1  ;;  %v581_v18 = vadd.f32 %v580_v22, %v1430_v34 }
  0xf9   : > { %v599_v7 = vadd.f32 %v598_v23, %v1430_v34  ;;  %v373_v23 = vadd.f32 %v1416_v9, %v1440_v1 }
  0xfa   : > { %v626_v40 = vmax.f32 %v581_v18, 0.0 }
  0xfb   : > { %v401_v17 = vmax.f32 %v373_v23, 0.0 }
  0xff   : > { %v1426_v27 = vpop.f32.mrf.mxu2  ;;  %v484_v29 = vpop.f32.mrf.mxu0 }
 0x100   : > { %v1428_v28 = vpop.f32.mrf.mxu3  ;;  %v502_v30 = vpop.f32.mrf.mxu1  ;;  %v515_v29 = vmax.f32 %v396_v52, %v506_v61  ;;  %v465_v52 = vadd.f32 %v1420_v11, %v1440_v1  ;;  %v584_v55 = vadd.f32 %v1426_v27, %v1440_v1 }
 0x101   : > { %v602_v11 = vadd.f32 %v1428_v28, %v1440_v1 }
 0x102   : > { %v510_v27 = vmax.f32 %v465_v52, 0.0 }
 0x103   : > { %v630_v18 = vmax.f32 %v602_v11, 0.0 }
 0x107   : > { %v585_v31 = vpop.f32.mrf.mxu2  ;;  %v614_v33 = vpop.f32.mrf.mxu0 }
 0x108   : > { %v603_v32 = vpop.f32.mrf.mxu3  ;;  %v688_v35 = vpop.f32.mrf.mxu1  ;;  %v615_v47 = vadd.f32 %v614_v33, %v279_v26 }
 0x109   : > { %v689_v37 = vadd.f32 %v688_v35, %v279_v26  ;;  %v399_v35 = vmax.f32 %v388_v13, 0.0 }
 0x10a   : > { %v625_v62 = vmax.f32 %v615_v47, 0.0  ;;  %v627_v47 = vmax.f32 %v599_v7, 0.0 }
 0x10b   : > { %v733_v49 = vmax.f32 %v689_v37, 0.0  ;;  %v507_v37 = vmax.f32 %v462_v14, 0.0 }
 0x10d   : > { %v742_v3 = vmax.f32 %v623_v56, %v733_v49  ;;  %v516_v51 = vmax.f32 %v397_v54, %v507_v37 }
 0x10f   : > { %v706_v53 = vpop.f32.mrf.mxu2  ;;  %v616_v59 = vpop.f32.mrf.mxu0  ;;  %v751_v31 = vmax.f32 %v513_v12, %v742_v3 }
 0x110   : > { %v707_v57 = vadd.f32 %v706_v53, %v279_v26  ;;  %v724_v58 = vpop.f32.mrf.mxu3  ;;  %v690_v0 = vpop.f32.mrf.mxu1  ;;  %v617_v22 = vadd.f32 %v616_v59, %v1430_v34  ;;  %v517_v53 = vmax.f32 %v398_v60, %v508_v39 }
 0x111   : > { %v725_v63 = vadd.f32 %v724_v58, %v279_v26  ;;  %v691_v5 = vadd.f32 %v690_v0, %v1430_v34  ;;  %v1455_v26 = vadd.f32 %v1414_v8, %v1440_v1  ;;  %v501_v58 = vadd.f32 %v1424_v25, %v1440_v1 }
 0x112   : > { %v734_v4 = vmax.f32 %v707_v57, 0.0  ;;  %v628_v9 = vmax.f32 %v617_v22, 0.0  ;;  %v518_v57 = vmax.f32 %v399_v35, %v509_v43  ;;  %v629_v25 = vmax.f32 %v584_v55, 0.0 }
 0x113   : > { %v735_v15 = vmax.f32 %v725_v63, 0.0  ;;  %v736_v33 = vmax.f32 %v691_v5, 0.0  ;;  %v400_v63 = vmax.f32 %v1455_v26, 0.0  ;;  %v512_v13 = vmax.f32 %v501_v58, 0.0 }
 0x114   : > { %v743_v19 = vmax.f32 %v624_v2, %v734_v4 }
 0x115   : > { %v744_v30 = vmax.f32 %v625_v62, %v735_v15  ;;  %v745_v48 = vmax.f32 %v626_v40, %v736_v33 }
 0x116   : > { %v752_v32 = vmax.f32 %v514_v16, %v743_v19 }
 0x117   : > { %v753_v20 = vmax.f32 %v515_v29, %v744_v30  ;;  %v708_v38 = vpop.f32.mrf.mxu2  ;;  %v619_v21 = vpop.f32.mrf.mxu0  ;;  %v754_v61 = vmax.f32 %v516_v51, %v745_v48  ;;  %v519_v30 = vmax.f32 %v400_v63, %v510_v27 }
 0x118   : > { %v760_v8 = vpack.c.bf16 %v752_v32, %v751_v31  ;;  %v709_v41 = vadd.f32 %v708_v38, %v1430_v34  ;;  %v726_v42 = vpop.f32.mrf.mxu3  ;;  %v693_v46 = vpop.f32.mrf.mxu1  ;;  %v620_v54 = vadd.f32 %v619_v21, %v1440_v1 }
 0x119   : > { %v761_v44 = vpack.c.bf16 %v753_v20, %v753_v20  ;;  %v727_v45 = vadd.f32 %v726_v42, %v1430_v34  ;;  %v694_v50 = vadd.f32 %v693_v46, %v1440_v1  ;;  %v483_v34 = vadd.f32 %v1422_v24, %v1440_v1 }
 0x11a   : > { %766 = vst [vmem:[%s1465_s12] sm:$0xff] %v760_v8  ;;  %v737_v49 = vmax.f32 %v709_v41, 0.0  ;;  %v391_v24 = vadd.f32 %v1418_v10, %v1440_v1  ;;  %v631_v15 = vmax.f32 %v620_v54, 0.0 }
 0x11b   : > { %767 = vst [vmem:[%s1465_s12 + $0x8] sm:$0xf] %v761_v44  ;;  %v738_v36 = vmax.f32 %v727_v45, 0.0  ;;  %v739_v60 = vmax.f32 %v694_v50, 0.0  ;;  %v511_v3 = vmax.f32 %v483_v34, 0.0 }
 0x11c   : > { %v746_v56 = vmax.f32 %v627_v47, %v737_v49  ;;  %v402_v29 = vmax.f32 %v391_v24, 0.0 }
 0x11d   : > { %v747_v59 = vmax.f32 %v628_v9, %v738_v36  ;;  %v748_v19 = vmax.f32 %v629_v25, %v739_v60  ;;  %v520_v7 = vmax.f32 %v401_v17, %v511_v3 }
 0x11e   : > { %v755_v62 = vmax.f32 %v517_v53, %v746_v56  ;;  %v521_v32 = vmax.f32 %v402_v29, %v512_v13 }
 0x11f   : > { %v756_v0 = vmax.f32 %v518_v57, %v747_v59  ;;  %v711_v2 = vpop.f32.mrf.mxu2  ;;  %v621_v28 = vpop.f32.mrf.mxu0  ;;  %v757_v35 = vmax.f32 %v519_v30, %v748_v19 }
 0x120   : > { %v762_v4 = vpack.c.bf16 %v755_v62, %v754_v61  ;;  %v712_v5 = vadd.f32 %v711_v2, %v1440_v1  ;;  %v729_v12 = vpop.f32.mrf.mxu3  ;;  %v695_v10 = vpop.f32.mrf.mxu1 }
 0x121   : > { %v763_v14 = vpack.c.bf16 %v756_v0, %v756_v0  ;;  %v730_v16 = vadd.f32 %v729_v12, %v1440_v1  ;;  %v796_v40 = vld [vmem:[%s1465_s12] sm:$0xff] (%p1207_p5) }
 0x122   : > { %768 = vst [vmem:[%s1465_s12 + $0xc] sm:$0xff] %v762_v4  ;;  %v740_v26 = vmax.f32 %v712_v5, 0.0  ;;  %v1066_v42 = vld [vmem:[%s1465_s12 + $0x8] sm:$0xf] (%p1207_p5) }
 0x123   : > { %769 = vst [vmem:[%s1465_s12 + $0x14] sm:$0xf] %v763_v14  ;;  %v741_v6 = vmax.f32 %v730_v16, 0.0 }
 0x124   : > { %v749_v31 = vmax.f32 %v630_v18, %v740_v26  ;;  %797 = vst [vmem:[%s781_s27] sm:$0xff] (%p1207_p5), %v796_v40 }
 0x125   : > { %v750_v33 = vmax.f32 %v631_v15, %v741_v6  ;;  %1067 = vst [vmem:[%s781_s27 + $0x8] sm:$0xf] (%p1207_p5), %v1066_v42 }
 0x126   : > { %v758_v37 = vmax.f32 %v520_v7, %v749_v31 }
 0x127   : > { %v759_v20 = vmax.f32 %v521_v32, %v750_v33  ;;  %v713_v1 = vpop.f32.mrf.mxu2  ;;  %778 = sbr.rel (!%p1207_p5) target bundleno = 308 (0x134), region = 62 }
 0x128   : > { %v764_v22 = vpack.c.bf16 %v758_v37, %v757_v35  ;;  %v731_v38 = vpop.f32.mrf.mxu3 }
 0x129   : > { %v765_v39 = vpack.c.bf16 %v759_v20, %v759_v20  ;;  %v798_v8 = vld [vmem:[%s1465_s12 + $0xc] sm:$0xff] (%p1207_p5) }
 0x12a   : > { %770 = vst [vmem:[%s1465_s12 + $0x18] sm:$0x33] %v764_v22  ;;  %v1068_v21 = vld [vmem:[%s1465_s12 + $0x14] sm:$0xf] (%p1207_p5) }
 0x12b   : > { %771 = vst [vmem:[%s1465_s12 + $0x20] sm:$0x3] %v765_v39 }
 0x12c   : > { %799 = vst [vmem:[%s781_s27 + $0x24] sm:$0xff] %v798_v8 }
 0x12d   : > { %1069 = vst [vmem:[%s781_s27 + $0x2c] sm:$0xf] %v1068_v21 }
 0x131   : > { %v800_v41 = vld [vmem:[%s1465_s12 + $0x18] sm:$0xff] }
 0x132   : > { %801 = vst [vmem:[%s781_s27 + $0x48] sm:$0xff] %v800_v41  ;;  %v1070_v43 = vld [vmem:[%s1465_s12 + $0x20] sm:$0xf] }
 0x133   : > { %1071 = vst [vmem:[%s781_s27 + $0x50] sm:$0xf] %v1070_v43 }
 0x134 PF: > { %p10_p10 = scmp.ge.s32.totalorder %s1194_s16, 5   ;;  %s1518_s12 = smov %s1149_s13 }
 0x135   : > { %s1519_s13 = smov %s1205_s19  ;;  %s1520_s14 = smov %s1194_s16 }
 0x136   :  { %12 = sbr.rel (!%p10_p10) target bundleno = 2 (0x2), region = 134 }

// kernel: custom_mil_forward.4
= control target key start
LH: loop header
LB: loop body
LE: loop exit
PB: predicated region body
PF: predicated region fallthrough
CT: control target
= control target key end

     0   :  { %vm365_vm0 = vcmask 1041408   ;;  %v2498_v14 = vmov 0   ;;  %vm352_vm1 = vcmask 949248   ;;  %s3241_s0 = inlined_call_operand.vmem [shape: bf16[4,500,128], index: 0, kind: input, shape index: {}]   ;;  %s3242_s2 = inlined_call_operand.vmem [shape: f32[50,1], index: 2, kind: input, shape index: {}]   ;;  %s3243_s1 = inlined_call_operand.vmem [shape: f32[50,500], index: 1, kind: input, shape index: {}]   ;;  %s3244_s3 = inlined_call_operand.vmem [shape: bf16[50,128], index: 3, kind: output, shape index: {}]  }
   0x1   :  { %v2360_v0 = vld [vmem:[%s3241_s0 + $0x38] sm:$0xff]  ;;  %v2359_v5 = vld [vmem:[%s3241_s0 + $0x30] sm:$0xff]  ;;  %v2358_v10 = vld [vmem:[%s3241_s0 + $0x28] sm:$0xff]  ;;  %2495 = vset.pattern.permute.xlu0 %v2498_v14  ;;  %2496 = vset.pattern.permute.xlu1 %v2498_v14 }
   0x2   :  { %v2368_v1 = vld [vmem:[%s3241_s0 + $0x78] sm:$0xff]  ;;  %369 = vmatpush.bf16.msra.mxu0 %v2360_v0  ;;  %v2367_v6 = vld [vmem:[%s3241_s0 + $0x70] sm:$0xff]  ;;  %v2366_v11 = vld [vmem:[%s3241_s0 + $0x68] sm:$0xff]  ;;  %2497 = vset.pattern.permute.xlu2 %v2498_v14 }
   0x3   :  { %v2376_v2 = vld [vmem:[%s3241_s0 + $0xb8] sm:$0xff]  ;;  %397 = vmatpush.bf16.msra.mxu1 %v2368_v1  ;;  %v2375_v7 = vld [vmem:[%s3241_s0 + $0xb0] sm:$0xff]  ;;  %v2374_v13 = vld [vmem:[%s3241_s0 + $0xa8] sm:$0xff] }
   0x4   :  { %v127_v3 = vld [vmem:[%s3241_s0 + $0xf8] sm:$0x3]  ;;  %425 = vmatpush.bf16.msra.mxu2 %v2376_v2  ;;  %v2383_v12 = vld [vmem:[%s3241_s0 + $0xf0] sm:$0xff]  ;;  %v2357_v15 = vld [vmem:[%s3241_s0 + $0x20] sm:$0xff] }
   0x5   :  { %v288_v4 = vunpack.c.l.b16 %v127_v3  ;;  %v2365_v16 = vld [vmem:[%s3241_s0 + $0x60] sm:$0xff]  ;;  %v2382_v17 = vld [vmem:[%s3241_s0 + $0xe8] sm:$0xff]  ;;  %v2356_v19 = vld [vmem:[%s3241_s0 + $0x18] sm:$0xff] }
   0x6   :  { %370 = vmatpush.bf16.msra.mxu0 %v2359_v5  ;;  %v2373_v18 = vld [vmem:[%s3241_s0 + $0xa0] sm:$0xff]  ;;  %v2364_v20 = vld [vmem:[%s3241_s0 + $0x58] sm:$0xff]  ;;  %v2355_v24 = vld [vmem:[%s3241_s0 + $0x10] sm:$0xff] }
   0x7   :  { %v320_v8 = vpack.c.b16 %v288_v4, %v288_v4  ;;  %398 = vmatpush.bf16.msra.mxu1 %v2367_v6  ;;  %v2381_v21 = vld [vmem:[%s3241_s0 + $0xe0] sm:$0xff]  ;;  %v2372_v22 = vld [vmem:[%s3241_s0 + $0x98] sm:$0xff]  ;;  %v2363_v25 = vld [vmem:[%s3241_s0 + $0x50] sm:$0xff] }
   0x8   :  { %426 = vmatpush.bf16.msra.mxu2 %v2375_v7  ;;  %v58_v23 = vld [vmem:[%s3242_s2] sm:$0xff]  ;;  %v2380_v26 = vld [vmem:[%s3241_s0 + $0xd8] sm:$0xff]  ;;  %v2371_v27 = vld [vmem:[%s3241_s0 + $0x90] sm:$0xff] }
   0x9   :  { %v367_v9 = vsel %vm365_vm0, %v320_v8, 0  ;;  %130 = vperm.xlu0 %2495, %v58_v23   ;;  %v59_v28 = vld [vmem:[%s3242_s2 + $0x8] sm:$0xff]  ;;  %v1842_v31 = vld [vmem:[%s3241_s0 + $0x1f4] sm:$0x3]  ;;  %v2353_v36 = vld [vmem:[%s3241_s0] sm:$0xff] }
   0xa   :  { %453 = vmatpush.bf16.msra.mxu3 %v367_v9  ;;  %371 = vmatpush.bf16.msra.mxu0 %v2358_v10  ;;  %v2354_v29 = vld [vmem:[%s3241_s0 + $0x8] sm:$0xff]  ;;  %v2379_v32 = vld [vmem:[%s3241_s0 + $0xd0] sm:$0xff]  ;;  %v2361_v37 = vld [vmem:[%s3241_s0 + $0x40] sm:$0xff]  ;;  %v677_v39 = vunpack.c.l.b16 %v1842_v31 }
   0xb   :  { %399 = vmatpush.bf16.msra.mxu1 %v2366_v11  ;;  %v2362_v30 = vld [vmem:[%s3241_s0 + $0x48] sm:$0xff]  ;;  %v60_v34 = vld [vmem:[%s3242_s2 + $0x10] sm:$0xff]  ;;  %v14_v38 = vld [vmem:[%s3243_s1] sm:$0xff] }
   0xc   :  { %427 = vmatpush.bf16.msra.mxu2 %v2374_v13  ;;  %v2370_v33 = vld [vmem:[%s3241_s0 + $0x88] sm:$0xff]  ;;  %140 = vperm.xlu1 %2496, %v60_v34   ;;  %v18_v40 = vld [vmem:[%s3243_s1 + $0x20] sm:$0xff]  ;;  %v16_v44 = vld [vmem:[%s3243_s1 + $0x10] sm:$0xff]  ;;  %v709_v50 = vpack.c.b16 %v677_v39, %v677_v39 }
   0xd   :  { %v2378_v35 = vld [vmem:[%s3241_s0 + $0xc8] sm:$0xff]  ;;  %v2369_v43 = vld [vmem:[%s3241_s0 + $0x80] sm:$0xff]  ;;  %v20_v45 = vld [vmem:[%s3243_s1 + $0x30] sm:$0xff]  ;;  %v2649_v48 = vpack.c.bf16 %v18_v40, %v14_v38 }
   0xe   :  { %454 = vmatpush.bf16.msra.mxu3 %v2383_v12  ;;  %372 = vmatpush.bf16.msra.mxu0 %v2357_v15  ;;  %v15_v41 = vld [vmem:[%s3243_s1 + $0x8] sm:$0xff]  ;;  %v2407_v46 = vld [vmem:[%s3241_s0 + $0x1b4] sm:$0xff]  ;;  %v2653_v51 = vpack.c.bf16 %v20_v45, %v16_v44  ;;  %v2377_v53 = vld [vmem:[%s3241_s0 + $0xc0] sm:$0xff]  ;;  %v742_v57 = vsel %vm365_vm0, %v709_v50, 0 }
   0xf   :  { %400 = vmatpush.bf16.msra.mxu1 %v2365_v16  ;;  %v19_v42 = vld [vmem:[%s3243_s1 + $0x28] sm:$0xff]  ;;  %v2391_v47 = vld [vmem:[%s3241_s0 + $0x134] sm:$0xff]  ;;  %v2404_v3 = vld [vmem:[%s3241_s0 + $0x19c] sm:$0xff] }
  0x10   :  { %428 = vmatpush.bf16.msra.mxu2 %v2373_v18  ;;  %v2651_v49 = vpack.c.bf16 %v19_v42, %v15_v41  ;;  %v2399_v52 = vld [vmem:[%s3241_s0 + $0x174] sm:$0xff]  ;;  %v2406_v56 = vld [vmem:[%s3241_s0 + $0x1ac] sm:$0xff]  ;;  %v2405_v63 = vld [vmem:[%s3241_s0 + $0x1a4] sm:$0xff] }
  0x11   :  { %135 = vperm.xlu0 %2495, %v59_v28   ;;  %v17_v54 = vld [vmem:[%s3243_s1 + $0x18] sm:$0xff]  ;;  %v2390_v58 = vld [vmem:[%s3241_s0 + $0x12c] sm:$0xff]  ;;  %v2389_v0 = vld [vmem:[%s3241_s0 + $0x124] sm:$0xff] }
  0x12   :  { %455 = vmatpush.bf16.msra.mxu3 %v2382_v17  ;;  %373 = vmatpush.bf16.msra.mxu0 %v2356_v19  ;;  %v21_v55 = vld [vmem:[%s3243_s1 + $0x38] sm:$0xff]  ;;  %v2398_v60 = vld [vmem:[%s3241_s0 + $0x16c] sm:$0xff]  ;;  %v2397_v1 = vld [vmem:[%s3241_s0 + $0x164] sm:$0xff] }
  0x13   :  { %401 = vmatpush.bf16.msra.mxu1 %v2364_v20  ;;  %v2677_v59 = vpack.c.bf16 %v21_v55, %v17_v54  ;;  %v61_v61 = vld [vmem:[%s3242_s2 + $0x18] sm:$0xff]  ;;  %v2414_v62 = vld [vmem:[%s3241_s0 + $0x1ec] sm:$0xff]  ;;  %v2413_v2 = vld [vmem:[%s3241_s0 + $0x1e4] sm:$0xff] }
  0x14   :  { %429 = vmatpush.bf16.msra.mxu2 %v2372_v22  ;;  %145 = vperm.xlu1 %2496, %v61_v61   ;;  %v22_v4 = vld [vmem:[%s3243_s1 + $0x40] sm:$0xff]  ;;  %v23_v7 = vld [vmem:[%s3243_s1 + $0x48] sm:$0xff]  ;;  %v24_v10 = vld [vmem:[%s3243_s1 + $0x50] sm:$0xff] }
  0x15   :  { %v26_v5 = vld [vmem:[%s3243_s1 + $0x60] sm:$0xff]  ;;  %v27_v8 = vld [vmem:[%s3243_s1 + $0x68] sm:$0xff]  ;;  %v28_v11 = vld [vmem:[%s3243_s1 + $0x70] sm:$0xff] }
  0x16   :  { %456 = vmatpush.bf16.msra.mxu3 %v2381_v21  ;;  %374 = vmatpush.bf16.msra.mxu0 %v2355_v24  ;;  %v2388_v6 = vld [vmem:[%s3241_s0 + $0x11c] sm:$0xff]  ;;  %v2403_v13 = vld [vmem:[%s3241_s0 + $0x194] sm:$0xff]  ;;  %v2735_v14 = vpack.c.bf16 %v26_v5, %v22_v4  ;;  %v2737_v15 = vpack.c.bf16 %v27_v8, %v23_v7  ;;  %v2739_v16 = vpack.c.bf16 %v28_v11, %v24_v10  ;;  %v2402_v22 = vld [vmem:[%s3241_s0 + $0x18c] sm:$0xff] }
  0x17   :  { %402 = vmatpush.bf16.msra.mxu1 %v2363_v25  ;;  %v2396_v9 = vld [vmem:[%s3241_s0 + $0x15c] sm:$0xff]  ;;  %v2387_v17 = vld [vmem:[%s3241_s0 + $0x114] sm:$0xff]  ;;  %v2386_v24 = vld [vmem:[%s3241_s0 + $0x10c] sm:$0xff] }
  0x18   :  { %430 = vmatpush.bf16.msra.mxu2 %v2371_v27  ;;  %v2412_v12 = vld [vmem:[%s3241_s0 + $0x1dc] sm:$0xff]  ;;  %v2395_v20 = vld [vmem:[%s3241_s0 + $0x154] sm:$0xff]  ;;  %v2394_v25 = vld [vmem:[%s3241_s0 + $0x14c] sm:$0xff] }
  0x19   :  { %v25_v18 = vld [vmem:[%s3243_s1 + $0x58] sm:$0xff]  ;;  %v2401_v27 = vld [vmem:[%s3241_s0 + $0x184] sm:$0xff]  ;;  %v32_v38 = vld [vmem:[%s3243_s1 + $0x90] sm:$0xff] }
  0x1a   :  { %457 = vmatpush.bf16.msra.mxu3 %v2380_v26  ;;  %375 = vmatpush.bf16.msra.mxu0 %v2354_v29  ;;  %v29_v19 = vld [vmem:[%s3243_s1 + $0x78] sm:$0xff]  ;;  %v2410_v26 = vld [vmem:[%s3241_s0 + $0x1cc] sm:$0xff]  ;;  %v2385_v28 = vld [vmem:[%s3241_s0 + $0x104] sm:$0xff] }
  0x1b   :  { %403 = vmatpush.bf16.msra.mxu1 %v2362_v30  ;;  %v2411_v21 = vld [vmem:[%s3241_s0 + $0x1d4] sm:$0xff]  ;;  %v2762_v23 = vpack.c.bf16 %v29_v19, %v25_v18  ;;  %v2393_v29 = vld [vmem:[%s3241_s0 + $0x144] sm:$0xff]  ;;  %v2400_v31 = vld [vmem:[%s3241_s0 + $0x17c] sm:$0xff] }
  0x1c   :  { %431 = vmatpush.bf16.msra.mxu2 %v2370_v33  ;;  %v2409_v30 = vld [vmem:[%s3241_s0 + $0x1c4] sm:$0xff]  ;;  %v36_v39 = vld [vmem:[%s3243_s1 + $0xb0] sm:$0xff]  ;;  %v2392_v40 = vld [vmem:[%s3241_s0 + $0x13c] sm:$0xff] }
  0x1d   :  { %v30_v33 = vld [vmem:[%s3243_s1 + $0x80] sm:$0xff]  ;;  %v2824_v44 = vpack.c.bf16 %v36_v39, %v32_v38  ;;  %v33_v45 = vld [vmem:[%s3243_s1 + $0x98] sm:$0xff]  ;;  %v2438_v50 = vld [vmem:[%s3241_s0 + $0x2b0] sm:$0xff] }
  0x1e   :  { %458 = vmatpush.bf16.msra.mxu3 %v2379_v32  ;;  %376 = vmatpush.bf16.msra.mxu0 %v2353_v36  ;;  %v64_v32 = vld [vmem:[%s3242_s2 + $0x30] sm:$0x3]  ;;  %v34_v34 = vld [vmem:[%s3243_s1 + $0xa0] sm:$0xff]  ;;  %v35_v36 = vld [vmem:[%s3243_s1 + $0xa8] sm:$0xff] }
  0x1f   :  { %404 = vmatpush.bf16.msra.mxu1 %v2361_v37  ;;  %160 = vperm.xlu0 %2495, %v64_v32   ;;  %v2384_v37 = vld [vmem:[%s3241_s0 + $0xfc] sm:$0xff]  ;;  %v2820_v42 = vpack.c.bf16 %v34_v34, %v30_v33  ;;  %v2033_v54 = vld [vmem:[%s3241_s0 + $0x2f0] sm:$0x3]  ;;  %v41_v7 = vld [vmem:[%s3243_s1 + $0xd8] sm:$0x3] }
  0x20   :  { %432 = vmatpush.bf16.msra.mxu2 %v2369_v43  ;;  %v2408_v41 = vld [vmem:[%s3241_s0 + $0x1bc] sm:$0xff]  ;;  %v2430_v55 = vld [vmem:[%s3241_s0 + $0x270] sm:$0xff]  ;;  %v2891_v8 = vpack.c.bf16 %v41_v7, %v41_v7  ;;  %v2224_v39 = vld [vmem:[%s3241_s0 + $0x3ec] sm:$0x3] }
  0x21   :  { %377 = vmatmul.bf16.vlgmr.msra.gmra.mxu0 %v2649_v48  ;;  %v2420_v10 = vld [vmem:[%s3241_s0 + $0x220] sm:$0xff]  ;;  %v2443_v18 = vld [vmem:[%s3241_s0 + $0x2d8] sm:$0xff]  ;;  %v2453_v38 = vld [vmem:[%s3241_s0 + $0x32c] sm:$0xff] }
  0x22   :  { %459 = vmatpush.bf16.msra.mxu3 %v2378_v35  ;;  %744 = vmatpush.bf16.msrb.mxu0 %v2391_v47  ;;  %v31_v35 = vld [vmem:[%s3243_s1 + $0x88] sm:$0xff]  ;;  %v2444_v11 = vld [vmem:[%s3241_s0 + $0x2e0] sm:$0xff]  ;;  %v2427_v19 = vld [vmem:[%s3241_s0 + $0x258] sm:$0xff] }
  0x23   :  { %405 = vmatmul.bf16.vlgmr.msra.gmra.mxu1 %v2651_v49  ;;  %433 = vmatmul.bf16.vlgmr.msra.gmra.mxu2 %v2653_v51  ;;  %v2822_v43 = vpack.c.bf16 %v35_v36, %v31_v35  ;;  %v2424_v32 = vld [vmem:[%s3241_s0 + $0x240] sm:$0xff]  ;;  %v2431_v33 = vld [vmem:[%s3241_s0 + $0x278] sm:$0xff] }
  0x24   :  { %800 = vmatpush.bf16.msrb.mxu2 %v2407_v46  ;;  %772 = vmatpush.bf16.msrb.mxu1 %v2399_v52  ;;  %v37_v46 = vld [vmem:[%s3243_s1 + $0xb8] sm:$0xff]  ;;  %v62_v52 = vld [vmem:[%s3242_s2 + $0x20] sm:$0xff] }
  0x25   :  { %v2835_v47 = vpack.c.bf16 %v37_v46, %v33_v45  ;;  %150 = vperm.xlu2 %2497, %v62_v52   ;;  %v2415_v34 = vld [vmem:[%s3241_s0 + $0x1f8] sm:$0xff]  ;;  %v2461_v45 = vld [vmem:[%s3241_s0 + $0x36c] sm:$0xff]  ;;  %v2452_v52 = vld [vmem:[%s3241_s0 + $0x324] sm:$0xff] }
  0x26   :  { %460 = vmatpush.bf16.msra.mxu3 %v2377_v53  ;;  %745 = vmatpush.bf16.msrb.mxu0 %v2390_v58  ;;  %v2422_v53 = vld [vmem:[%s3241_s0 + $0x230] sm:$0xff]  ;;  %v63_v58 = vld [vmem:[%s3242_s2 + $0x28] sm:$0xff]  ;;  %v2439_v35 = vld [vmem:[%s3241_s0 + $0x2b8] sm:$0xff] }
  0x27   :  { %v2423_v36 = vld [vmem:[%s3241_s0 + $0x238] sm:$0xff] }
  0x28   :  { %801 = vmatpush.bf16.msrb.mxu2 %v2406_v56  ;;  %773 = vmatpush.bf16.msrb.mxu1 %v2398_v60  ;;  %v1059_v56 = vunpack.c.l.b16 %v2033_v54  ;;  %v2421_v60 = vld [vmem:[%s3241_s0 + $0x228] sm:$0xff]  ;;  %v2458_v7 = vld [vmem:[%s3241_s0 + $0x354] sm:$0xff] }
  0x29   :  { %1776 = vmatmul.msk.bf16.vlgmr.msra.gmra.mxu3 %vm352_vm1, %v2677_v59  ;;  %v2460_v54 = vld [vmem:[%s3241_s0 + $0x364] sm:$0xff] }
  0x2a   :  { %828 = vmatpush.bf16.msrb.mxu3 %v742_v57  ;;  %746 = vmatpush.bf16.msrb.mxu0 %v2389_v0  ;;  %v2437_v57 = vld [vmem:[%s3241_s0 + $0x2a8] sm:$0xff]  ;;  %v1091_v61 = vpack.c.b16 %v1059_v56, %v1059_v56  ;;  %v2451_v56 = vld [vmem:[%s3241_s0 + $0x31c] sm:$0xff] }
  0x2b   :  { %v39_v0 = vld [vmem:[%s3243_s1 + $0xc8] sm:$0x3] }
  0x2c   :  { %802 = vmatpush.bf16.msrb.mxu2 %v2405_v63  ;;  %774 = vmatpush.bf16.msrb.mxu1 %v2397_v1  ;;  %v38_v63 = vld [vmem:[%s3243_s1 + $0xc0] sm:$0x3]  ;;  %v40_v1 = vld [vmem:[%s3243_s1 + $0xd0] sm:$0x3]  ;;  %v2881_v5 = vpack.c.bf16 %v39_v0, %v39_v0  ;;  %v2450_v0 = vld [vmem:[%s3241_s0 + $0x314] sm:$0xff] }
  0x2d   :  { %155 = vperm.xlu2 %2497, %v63_v58   ;;  %v2879_v4 = vpack.c.bf16 %v38_v63, %v38_v63  ;;  %v2459_v58 = vld [vmem:[%s3241_s0 + $0x35c] sm:$0xff] }
  0x2e   :  { %829 = vmatpush.bf16.msrb.mxu3 %v2414_v62  ;;  %747 = vmatpush.bf16.msrb.mxu0 %v2388_v6  ;;  %v2429_v62 = vld [vmem:[%s3241_s0 + $0x268] sm:$0xff]  ;;  %v2883_v6 = vpack.c.bf16 %v40_v1, %v40_v1  ;;  %v2474_v1 = vld [vmem:[%s3241_s0 + $0x3d4] sm:$0xff] }
  0x30   :  { %803 = vmatpush.bf16.msrb.mxu2 %v2404_v3  ;;  %775 = vmatpush.bf16.msrb.mxu1 %v2396_v9  ;;  %v2445_v3 = vld [vmem:[%s3241_s0 + $0x2e8] sm:$0xff]  ;;  %v2436_v9 = vld [vmem:[%s3241_s0 + $0x2a0] sm:$0xff] }
  0x31   :  { %382 = vmatmul.bf16.gmra.mxu0 %v2735_v14 }
  0x32   :  { %830 = vmatpush.bf16.msrb.mxu3 %v2413_v2  ;;  %748 = vmatpush.bf16.msrb.mxu0 %v2387_v17  ;;  %v1124_v2 = vsel %vm365_vm0, %v1091_v61, 0  ;;  %v2419_v17 = vld [vmem:[%s3241_s0 + $0x218] sm:$0xff] }
  0x33   :  { %410 = vmatmul.bf16.gmra.mxu1 %v2737_v15  ;;  %438 = vmatmul.bf16.gmra.mxu2 %v2739_v16  ;;  %v2466_v61 = vld [vmem:[%s3241_s0 + $0x394] sm:$0xff] }
  0x34   :  { %804 = vmatpush.bf16.msrb.mxu2 %v2403_v13  ;;  %776 = vmatpush.bf16.msrb.mxu1 %v2395_v20  ;;  %v2435_v13 = vld [vmem:[%s3241_s0 + $0x298] sm:$0xff]  ;;  %v2434_v20 = vld [vmem:[%s3241_s0 + $0x290] sm:$0xff] }
  0x36   :  { %831 = vmatpush.bf16.msrb.mxu3 %v2412_v12  ;;  %749 = vmatpush.bf16.msrb.mxu0 %v2386_v24  ;;  %v2428_v12 = vld [vmem:[%s3241_s0 + $0x260] sm:$0xff]  ;;  %v2426_v24 = vld [vmem:[%s3241_s0 + $0x250] sm:$0xff] }
  0x38   :  { %805 = vmatpush.bf16.msrb.mxu2 %v2402_v22  ;;  %777 = vmatpush.bf16.msrb.mxu1 %v2394_v25  ;;  %v2442_v22 = vld [vmem:[%s3241_s0 + $0x2d0] sm:$0xff]  ;;  %v2433_v25 = vld [vmem:[%s3241_s0 + $0x288] sm:$0xff] }
  0x39   :  { %1777 = vmatmul.msk.bf16.gmra.mxu3 %vm352_vm1, %v2762_v23 }
  0x3a   :  { %832 = vmatpush.bf16.msrb.mxu3 %v2411_v21  ;;  %750 = vmatpush.bf16.msrb.mxu0 %v2385_v28  ;;  %v2418_v21 = vld [vmem:[%s3241_s0 + $0x210] sm:$0xff]  ;;  %v2425_v28 = vld [vmem:[%s3241_s0 + $0x248] sm:$0xff] }
  0x3c   :  { %806 = vmatpush.bf16.msrb.mxu2 %v2401_v27  ;;  %778 = vmatpush.bf16.msrb.mxu1 %v2393_v29  ;;  %v2441_v27 = vld [vmem:[%s3241_s0 + $0x2c8] sm:$0xff]  ;;  %v2432_v29 = vld [vmem:[%s3241_s0 + $0x280] sm:$0xff] }
  0x3e   :  { %833 = vmatpush.bf16.msrb.mxu3 %v2410_v26  ;;  %751 = vmatpush.bf16.msrb.mxu0 %v2384_v37  ;;  %v2417_v26 = vld [vmem:[%s3241_s0 + $0x208] sm:$0xff] }
  0x3f   :  { %v2469_v37 = vld [vmem:[%s3241_s0 + $0x3ac] sm:$0xff] }
  0x40   :  { %807 = vmatpush.bf16.msrb.mxu2 %v2400_v31  ;;  %779 = vmatpush.bf16.msrb.mxu1 %v2392_v40  ;;  %v2440_v31 = vld [vmem:[%s3241_s0 + $0x2c0] sm:$0xff]  ;;  %v1434_v40 = vunpack.c.l.b16 %v2224_v39 }
  0x41   :  { %387 = vmatmul.bf16.gmra.mxu0 %v2820_v42 }
  0x42   :  { %834 = vmatpush.bf16.msrb.mxu3 %v2409_v30  ;;  %1126 = vmatpush.bf16.msra.mxu0 %v2422_v53  ;;  %v2416_v30 = vld [vmem:[%s3241_s0 + $0x200] sm:$0xff] }
  0x43   :  { %415 = vmatmul.bf16.gmra.mxu1 %v2822_v43  ;;  %443 = vmatmul.bf16.gmra.mxu2 %v2824_v44  ;;  %v2476_v53 = vld [vmem:[%s3241_s0 + $0x3e4] sm:$0xff] }
  0x44   :  { %1182 = vmatpush.bf16.msra.mxu2 %v2438_v50  ;;  %1154 = vmatpush.bf16.msra.mxu1 %v2430_v55  ;;  %v2468_v50 = vld [vmem:[%s3241_s0 + $0x3a4] sm:$0xff]  ;;  %v2467_v55 = vld [vmem:[%s3241_s0 + $0x39c] sm:$0xff] }
  0x46   :  { %835 = vmatpush.bf16.msrb.mxu3 %v2408_v41  ;;  %1127 = vmatpush.bf16.msra.mxu0 %v2421_v60  ;;  %v1466_v41 = vpack.c.b16 %v1434_v40, %v1434_v40  ;;  %v2463_v40 = vld [vmem:[%s3241_s0 + $0x37c] sm:$0xff] }
  0x48   :  { %1183 = vmatpush.bf16.msra.mxu2 %v2437_v57  ;;  %1155 = vmatpush.bf16.msra.mxu1 %v2429_v62  ;;  %v1499_v46 = vsel %vm365_vm0, %v1466_v41, 0  ;;  %v2475_v57 = vld [vmem:[%s3241_s0 + $0x3dc] sm:$0xff] }
  0x49   :  { %1778 = vmatmul.msk.bf16.gmra.mxu3 %vm352_vm1, %v2835_v47 }
  0x4a   :  { %1210 = vmatpush.bf16.msra.mxu3 %v1124_v2  ;;  %1128 = vmatpush.bf16.msra.mxu0 %v2420_v10  ;;  %v2465_v10 = vld [vmem:[%s3241_s0 + $0x38c] sm:$0xff] }
  0x4c   :  { %1184 = vmatpush.bf16.msra.mxu2 %v2436_v9  ;;  %1156 = vmatpush.bf16.msra.mxu1 %v2428_v12 }
  0x4e   :  { %1211 = vmatpush.bf16.msra.mxu3 %v2445_v3  ;;  %1129 = vmatpush.bf16.msra.mxu0 %v2419_v17 }
  0x50   :  { %1185 = vmatpush.bf16.msra.mxu2 %v2435_v13  ;;  %1157 = vmatpush.bf16.msra.mxu1 %v2427_v19  ;;  %v2473_v19 = vld [vmem:[%s3241_s0 + $0x3cc] sm:$0xff] }
  0x51   :  { %392 = vmatmul.bf16.gmra.mxu0 %v2879_v4 }
  0x52   :  { %1212 = vmatpush.bf16.msra.mxu3 %v2444_v11  ;;  %1130 = vmatpush.bf16.msra.mxu0 %v2418_v21 }
  0x53   :  { %420 = vmatmul.bf16.gmra.mxu1 %v2881_v5  ;;  %448 = vmatmul.bf16.gmra.mxu2 %v2883_v6 }
  0x54   :  { %1186 = vmatpush.bf16.msra.mxu2 %v2434_v20  ;;  %1158 = vmatpush.bf16.msra.mxu1 %v2426_v24  ;;  %v2457_v24 = vld [vmem:[%s3241_s0 + $0x34c] sm:$0xff] }
  0x56   :  { %1213 = vmatpush.bf16.msra.mxu3 %v2443_v18  ;;  %1131 = vmatpush.bf16.msra.mxu0 %v2417_v26  ;;  %v2449_v18 = vld [vmem:[%s3241_s0 + $0x30c] sm:$0xff] }
  0x58   :  { %1187 = vmatpush.bf16.msra.mxu2 %v2433_v25  ;;  %1159 = vmatpush.bf16.msra.mxu1 %v2425_v28 }
  0x59   :  { %1779 = vmatmul.msk.bf16.gmra.mxu3 %vm352_vm1, %v2891_v8 }
  0x5a   :  { %1214 = vmatpush.bf16.msra.mxu3 %v2442_v22  ;;  %1132 = vmatpush.bf16.msra.mxu0 %v2416_v30 }
  0x5c   :  { %1188 = vmatpush.bf16.msra.mxu2 %v2432_v29  ;;  %1160 = vmatpush.bf16.msra.mxu1 %v2424_v32  ;;  %v2448_v32 = vld [vmem:[%s3241_s0 + $0x304] sm:$0xff] }
  0x5e   :  { %1215 = vmatpush.bf16.msra.mxu3 %v2441_v27  ;;  %1133 = vmatpush.bf16.msra.mxu0 %v2415_v34  ;;  %v2464_v27 = vld [vmem:[%s3241_s0 + $0x384] sm:$0xff] }
  0x5f   :  { %v2456_v34 = vld [vmem:[%s3241_s0 + $0x344] sm:$0xff] }
  0x60   :  { %1189 = vmatpush.bf16.msra.mxu2 %v2431_v33  ;;  %1161 = vmatpush.bf16.msra.mxu1 %v2423_v36  ;;  %v2472_v33 = vld [vmem:[%s3241_s0 + $0x3c4] sm:$0xff] }
  0x61   :  { %752 = vmatmul.bf16.vlgmr.msrb.gmra.mxu0 %v2649_v48 }
  0x62   :  { %1216 = vmatpush.bf16.msra.mxu3 %v2440_v31  ;;  %1501 = vmatpush.bf16.msrb.mxu0 %v2453_v38 }
  0x63   :  { %780 = vmatmul.bf16.vlgmr.msrb.gmra.mxu1 %v2651_v49  ;;  %808 = vmatmul.bf16.vlgmr.msrb.gmra.mxu2 %v2653_v51 }
  0x64   :  { %1557 = vmatpush.bf16.msrb.mxu2 %v2469_v37  ;;  %1529 = vmatpush.bf16.msrb.mxu1 %v2461_v45 }
  0x66   :  { %1217 = vmatpush.bf16.msra.mxu3 %v2439_v35  ;;  %1502 = vmatpush.bf16.msrb.mxu0 %v2452_v52  ;;  %v2447_v52 = vld [vmem:[%s3241_s0 + $0x2fc] sm:$0xff] }
  0x68   :  { %1558 = vmatpush.bf16.msrb.mxu2 %v2468_v50  ;;  %1530 = vmatpush.bf16.msrb.mxu1 %v2460_v54  ;;  %v2455_v54 = vld [vmem:[%s3241_s0 + $0x33c] sm:$0xff] }
  0x69   :  { %1967 = vmatmul.msk.bf16.vlgmr.msrb.gmra.mxu3 %vm352_vm1, %v2677_v59 }
  0x6a   :  { %1585 = vmatpush.bf16.msrb.mxu3 %v1499_v46  ;;  %1503 = vmatpush.bf16.msrb.mxu0 %v2451_v56 }
  0x6c   :  { %1559 = vmatpush.bf16.msrb.mxu2 %v2467_v55  ;;  %1531 = vmatpush.bf16.msrb.mxu1 %v2459_v58 }
  0x6e   :  { %1586 = vmatpush.bf16.msrb.mxu3 %v2476_v53  ;;  %1504 = vmatpush.bf16.msrb.mxu0 %v2450_v0  ;;  %v2471_v53 = vld [vmem:[%s3241_s0 + $0x3bc] sm:$0xff]  ;;  %v2446_v0 = vld [vmem:[%s3241_s0 + $0x2f4] sm:$0xff] }
  0x70   :  { %1560 = vmatpush.bf16.msrb.mxu2 %v2466_v61  ;;  %1532 = vmatpush.bf16.msrb.mxu1 %v2458_v7 }
  0x71   :  { %757 = vmatmul.bf16.gmra.mxu0 %v2735_v14 }
  0x72   :  { %1587 = vmatpush.bf16.msrb.mxu3 %v2475_v57  ;;  %1505 = vmatpush.bf16.msrb.mxu0 %v2449_v18 }
  0x73   :  { %785 = vmatmul.bf16.gmra.mxu1 %v2737_v15  ;;  %813 = vmatmul.bf16.gmra.mxu2 %v2739_v16 }
  0x74   :  { %1561 = vmatpush.bf16.msrb.mxu2 %v2465_v10  ;;  %1533 = vmatpush.bf16.msrb.mxu1 %v2457_v24 }
  0x76   :  { %1588 = vmatpush.bf16.msrb.mxu3 %v2474_v1  ;;  %1506 = vmatpush.bf16.msrb.mxu0 %v2448_v32  ;;  %v2470_v1 = vld [vmem:[%s3241_s0 + $0x3b4] sm:$0xff] }
  0x78   :  { %1562 = vmatpush.bf16.msrb.mxu2 %v2464_v27  ;;  %1534 = vmatpush.bf16.msrb.mxu1 %v2456_v34 }
  0x79   :  { %1968 = vmatmul.msk.bf16.gmra.mxu3 %vm352_vm1, %v2762_v23 }
  0x7a   :  { %1589 = vmatpush.bf16.msrb.mxu3 %v2473_v19  ;;  %1507 = vmatpush.bf16.msrb.mxu0 %v2447_v52 }
  0x7b   :  { %v3024_v60 = vpop.permute.xlu0 %130 }
  0x7c   :  { %1563 = vmatpush.bf16.msrb.mxu2 %v2463_v40  ;;  %1535 = vmatpush.bf16.msrb.mxu1 %v2455_v54 }
  0x7e   :  { %v3061_v26 = vpop.permute.xlu1 %140  ;;  %1590 = vmatpush.bf16.msrb.mxu3 %v2472_v33  ;;  %1508 = vmatpush.bf16.msrb.mxu0 %v2446_v0 }
  0x7f   :  { %v3100_v61 = vpop.permute.xlu2 %150 }
  0x81   :  { %762 = vmatmul.bf16.gmra.mxu0 %v2820_v42 }
  0x82   :  { %1591 = vmatpush.bf16.msrb.mxu3 %v2471_v53 }
  0x83   :  { %790 = vmatmul.bf16.gmra.mxu1 %v2822_v43  ;;  %818 = vmatmul.bf16.gmra.mxu2 %v2824_v44  ;;  %v3042_v9 = vpop.permute.xlu0 %135 }
  0x86   :  { %v3081_v39 = vpop.permute.xlu1 %145  ;;  %1592 = vmatpush.bf16.msrb.mxu3 %v2470_v1 }
  0x87   :  { %v3120_v18 = vpop.permute.xlu2 %155 }
  0x89   :  { %1969 = vmatmul.msk.bf16.gmra.mxu3 %vm352_vm1, %v2835_v47 }
  0x91   :  { %767 = vmatmul.bf16.gmra.mxu0 %v2879_v4 }
  0x93   :  { %795 = vmatmul.bf16.gmra.mxu1 %v2881_v5  ;;  %823 = vmatmul.bf16.gmra.mxu2 %v2883_v6 }
  0x99   :  { %1970 = vmatmul.msk.bf16.gmra.mxu3 %vm352_vm1, %v2891_v8 }
  0x9e   :  { %v378_v62 = vpop.f32.mrf.mxu0 }
  0x9f   :  { %v379_v2 = vadd.f32 %v378_v62, %v3024_v60  ;;  %v2462_v62 = vld [vmem:[%s3241_s0 + $0x374] sm:$0xff] }
  0xa0   :  { %v406_v63 = vpop.f32.mrf.mxu1  ;;  %1564 = vmatpush.bf16.msrb.mxu2 %v2462_v62 }
  0xa1   :  { %v407_v3 = vadd.f32 %v406_v63, %v379_v2  ;;  %1134 = vmatmul.bf16.vlgmr.msra.gmra.mxu0 %v2649_v48  ;;  %v2454_v2 = vld [vmem:[%s3241_s0 + $0x334] sm:$0xff] }
  0xa2   :  { %1536 = vmatpush.bf16.msrb.mxu1 %v2454_v2 }
  0xa3   :  { %1162 = vmatmul.bf16.vlgmr.msra.gmra.mxu1 %v2651_v49  ;;  %1190 = vmatmul.bf16.vlgmr.msra.gmra.mxu2 %v2653_v51 }
  0xa6   :  { %v434_v11 = vpop.f32.mrf.mxu2  ;;  %v380_v13 = vpop.f32.mrf.mxu0 }
  0xa7   :  { %v435_v12 = vadd.f32 %v434_v11, %v407_v3  ;;  %v381_v20 = vadd.f32 %v380_v13, %v3042_v9 }
  0xa8   :  { %v408_v17 = vpop.f32.mrf.mxu1 }
  0xa9   :  { %2158 = vmatmul.msk.bf16.vlgmr.msra.gmra.mxu3 %vm352_vm1, %v2677_v59  ;;  %v409_v21 = vadd.f32 %v408_v17, %v381_v20 }
  0xac   :  { %v462_v22 = vpop.f32.mrf.mxu3 }
  0xad   :  { %v3059_v25 = vadd.f32 %v462_v22, %v435_v12 }
  0xae   :  { %v436_v28 = vpop.f32.mrf.mxu2  ;;  %v383_v30 = vpop.f32.mrf.mxu0 }
  0xaf   :  { %v437_v29 = vadd.f32 %v436_v28, %v409_v21  ;;  %v384_v35 = vadd.f32 %v383_v30, %v3061_v26  ;;  %v3127_v30 = vpop.permute.xlu0 %160 }
  0xb0   :  { %v411_v31 = vpop.f32.mrf.mxu1 }
  0xb1   :  { %v412_v36 = vadd.f32 %v411_v31, %v384_v35  ;;  %1139 = vmatmul.bf16.gmra.mxu0 %v2735_v14 }
  0xb3   :  { %1167 = vmatmul.bf16.gmra.mxu1 %v2737_v15  ;;  %1195 = vmatmul.bf16.gmra.mxu2 %v2739_v16 }
  0xb4   :  { %v464_v37 = vpop.f32.mrf.mxu3 }
  0xb5   :  { %v3078_v38 = vadd.f32 %v464_v37, %v437_v29 }
  0xb6   :  { %v439_v41 = vpop.f32.mrf.mxu2  ;;  %v385_v46 = vpop.f32.mrf.mxu0 }
  0xb7   :  { %v440_v45 = vadd.f32 %v439_v41, %v412_v36  ;;  %v386_v55 = vadd.f32 %v385_v46, %v3081_v39 }
  0xb8   :  { %v413_v50 = vpop.f32.mrf.mxu1 }
  0xb9   :  { %2159 = vmatmul.msk.bf16.gmra.mxu3 %vm352_vm1, %v2762_v23  ;;  %v414_v56 = vadd.f32 %v413_v50, %v386_v55 }
  0xbc   :  { %v467_v57 = vpop.f32.mrf.mxu3 }
  0xbd   :  { %v3098_v58 = vadd.f32 %v467_v57, %v440_v45 }
  0xbe   :  { %v441_v63 = vpop.f32.mrf.mxu2  ;;  %v388_v7 = vpop.f32.mrf.mxu0 }
  0xbf   :  { %v442_v3 = vadd.f32 %v441_v63, %v414_v56  ;;  %v389_v11 = vadd.f32 %v388_v7, %v3100_v61 }
  0xc0   :  { %v416_v10 = vpop.f32.mrf.mxu1 }
  0xc1   :  { %v417_v12 = vadd.f32 %v416_v10, %v389_v11  ;;  %1144 = vmatmul.bf16.gmra.mxu0 %v2820_v42 }
  0xc3   :  { %1172 = vmatmul.bf16.gmra.mxu1 %v2822_v43  ;;  %1200 = vmatmul.bf16.gmra.mxu2 %v2824_v44 }
  0xc4   :  { %v469_v13 = vpop.f32.mrf.mxu3 }
  0xc5   :  { %v3117_v17 = vadd.f32 %v469_v13, %v442_v3  ;;  %v481_v13 = vmax.f32 %v3059_v25, 0.0  ;;  %v482_v25 = vmax.f32 %v3078_v38, 0.0 }
  0xc6   :  { %v444_v19 = vpop.f32.mrf.mxu2  ;;  %v390_v21 = vpop.f32.mrf.mxu0 }
  0xc7   :  { %v445_v20 = vadd.f32 %v444_v19, %v417_v12  ;;  %v391_v24 = vadd.f32 %v390_v21, %v3120_v18 }
  0xc8   :  { %v418_v22 = vpop.f32.mrf.mxu1 }
  0xc9   :  { %2160 = vmatmul.msk.bf16.gmra.mxu3 %vm352_vm1, %v2835_v47  ;;  %v419_v27 = vadd.f32 %v418_v22, %v391_v24 }
  0xcc   :  { %v472_v28 = vpop.f32.mrf.mxu3 }
  0xcd   :  { %v3125_v29 = vadd.f32 %v472_v28, %v445_v20 }
  0xce   :  { %v446_v31 = vpop.f32.mrf.mxu2  ;;  %v393_v33 = vpop.f32.mrf.mxu0 }
  0xcf   :  { %v447_v32 = vadd.f32 %v446_v31, %v419_v27  ;;  %v394_v35 = vadd.f32 %v393_v33, %v3127_v30 }
  0xd0   :  { %v421_v34 = vpop.f32.mrf.mxu1 }
  0xd1   :  { %1149 = vmatmul.bf16.gmra.mxu0 %v2879_v4  ;;  %v422_v37 = vadd.f32 %v421_v34, %v394_v35 }
  0xd3   :  { %1177 = vmatmul.bf16.gmra.mxu1 %v2881_v5  ;;  %1205 = vmatmul.bf16.gmra.mxu2 %v2883_v6 }
  0xd4   :  { %v474_v36 = vpop.f32.mrf.mxu3 }
  0xd5   :  { %v3132_v40 = vadd.f32 %v474_v36, %v447_v32 }
  0xd6   :  { %v449_v41 = vpop.f32.mrf.mxu2  ;;  %v395_v46 = vpop.f32.mrf.mxu0 }
  0xd7   :  { %v450_v45 = vadd.f32 %v449_v41, %v422_v37  ;;  %v483_v41 = vmax.f32 %v3098_v58, 0.0  ;;  %v484_v58 = vmax.f32 %v3117_v17, 0.0 }
  0xd8   :  { %v423_v50 = vpop.f32.mrf.mxu1 }
  0xd9   :  { %2161 = vmatmul.msk.bf16.gmra.mxu3 %vm352_vm1, %v2891_v8 }
  0xdc   :  { %v477_v52 = vpop.f32.mrf.mxu3 }
  0xdd   :  { %v3137_v53 = vadd.f32 %v477_v52, %v450_v45 }
  0xde   :  { %v451_v54 = vpop.f32.mrf.mxu2  ;;  %v753_v55 = vpop.f32.mrf.mxu0 }
  0xdf   :  { %v754_v57 = vadd.f32 %v753_v55, %v3024_v60 }
  0xe0   :  { %v781_v56 = vpop.f32.mrf.mxu1 }
  0xe1   :  { %v782_v62 = vadd.f32 %v781_v56, %v754_v57  ;;  %1509 = vmatmul.bf16.vlgmr.msrb.gmra.mxu0 %v2649_v48 }
  0xe3   :  { %1537 = vmatmul.bf16.vlgmr.msrb.gmra.mxu1 %v2651_v49  ;;  %1565 = vmatmul.bf16.vlgmr.msrb.gmra.mxu2 %v2653_v51 }
  0xe4   :  { %v479_v63 = vpop.f32.mrf.mxu3 }
  0xe6   :  { %v809_v0 = vpop.f32.mrf.mxu2  ;;  %v755_v2 = vpop.f32.mrf.mxu0 }
  0xe7   :  { %v810_v1 = vadd.f32 %v809_v0, %v782_v62  ;;  %v756_v7 = vadd.f32 %v755_v2, %v3042_v9 }
  0xe8   :  { %v783_v3 = vpop.f32.mrf.mxu1 }
  0xe9   :  { %2349 = vmatmul.msk.bf16.vlgmr.msrb.gmra.mxu3 %vm352_vm1, %v2677_v59  ;;  %v784_v10 = vadd.f32 %v783_v3, %v756_v7 }
  0xec   :  { %v837_v11 = vpop.f32.mrf.mxu3 }
  0xed   :  { %v838_v12 = vadd.f32 %v837_v11, %v810_v1 }
  0xee   :  { %v811_v48 = vpop.f32.mrf.mxu2  ;;  %v758_v51 = vpop.f32.mrf.mxu0 }
  0xef   :  { %v856_v19 = vmax.f32 %v838_v12, 0.0  ;;  %v812_v49 = vadd.f32 %v811_v48, %v784_v10  ;;  %v759_v22 = vadd.f32 %v758_v51, %v3061_v26  ;;  %v485_v10 = vmax.f32 %v3125_v29, 0.0 }
  0xf0   :  { %v786_v21 = vpop.f32.mrf.mxu1  ;;  %v486_v29 = vmax.f32 %v3132_v40, 0.0 }
  0xf1   :  { %v3147_v20 = vmax.f32 %v481_v13, %v856_v19  ;;  %v787_v24 = vadd.f32 %v786_v21, %v759_v22  ;;  %1514 = vmatmul.bf16.gmra.mxu0 %v2735_v14 }
  0xf3   :  { %1542 = vmatmul.bf16.gmra.mxu1 %v2737_v15  ;;  %1570 = vmatmul.bf16.gmra.mxu2 %v2739_v16 }
  0xf4   :  { %v839_v59 = vpop.f32.mrf.mxu3 }
  0xf5   :  { %v840_v27 = vadd.f32 %v839_v59, %v812_v49 }
  0xf6   :  { %v814_v31 = vpop.f32.mrf.mxu2  ;;  %v760_v34 = vpop.f32.mrf.mxu0 }
  0xf7   :  { %v857_v28 = vmax.f32 %v840_v27, 0.0  ;;  %v815_v33 = vadd.f32 %v814_v31, %v787_v24  ;;  %v761_v36 = vadd.f32 %v760_v34, %v3081_v39 }
  0xf8   :  { %v788_v35 = vpop.f32.mrf.mxu1 }
  0xf9   :  { %v3154_v32 = vmax.f32 %v482_v25, %v857_v28  ;;  %2350 = vmatmul.msk.bf16.gmra.mxu3 %vm352_vm1, %v2762_v23  ;;  %v789_v14 = vadd.f32 %v788_v35, %v761_v36 }
  0xfc   :  { %v842_v37 = vpop.f32.mrf.mxu3 }
  0xfd   :  { %v843_v15 = vadd.f32 %v842_v37, %v815_v33 }
  0xfe   :  { %v816_v45 = vpop.f32.mrf.mxu2  ;;  %v763_v50 = vpop.f32.mrf.mxu0 }
  0xff   :  { %v858_v16 = vmax.f32 %v843_v15, 0.0  ;;  %v817_v46 = vadd.f32 %v816_v45, %v789_v14  ;;  %v764_v54 = vadd.f32 %v763_v50, %v3100_v61 }
 0x100   :  { %v791_v52 = vpop.f32.mrf.mxu1 }
 0x101   :  { %v3160_v38 = vmax.f32 %v483_v41, %v858_v16  ;;  %v792_v55 = vadd.f32 %v791_v52, %v764_v54  ;;  %1519 = vmatmul.bf16.gmra.mxu0 %v2820_v42 }
 0x103   :  { %1547 = vmatmul.bf16.gmra.mxu1 %v2822_v43  ;;  %1575 = vmatmul.bf16.gmra.mxu2 %v2824_v44 }
 0x104   :  { %v844_v23 = vpop.f32.mrf.mxu3 }
 0x105   :  { %v845_v56 = vadd.f32 %v844_v23, %v817_v46 }
 0x106   :  { %v819_v62 = vpop.f32.mrf.mxu2  ;;  %v765_v1 = vpop.f32.mrf.mxu0 }
 0x107   :  { %v859_v57 = vmax.f32 %v845_v56, 0.0  ;;  %v820_v0 = vadd.f32 %v819_v62, %v792_v55  ;;  %v766_v3 = vadd.f32 %v765_v1, %v3120_v18 }
 0x108   :  { %v793_v2 = vpop.f32.mrf.mxu1 }
 0x109   :  { %v3167_v63 = vmax.f32 %v484_v58, %v859_v57  ;;  %2351 = vmatmul.msk.bf16.gmra.mxu3 %vm352_vm1, %v2835_v47  ;;  %v794_v42 = vadd.f32 %v793_v2, %v766_v3 }
 0x10c   :  { %v847_v7 = vpop.f32.mrf.mxu3 }
 0x10d   :  { %v848_v43 = vadd.f32 %v847_v7, %v820_v0 }
 0x10e   :  { %v821_v11 = vpop.f32.mrf.mxu2  ;;  %v768_v13 = vpop.f32.mrf.mxu0 }
 0x10f   :  { %v860_v44 = vmax.f32 %v848_v43, 0.0  ;;  %v822_v12 = vadd.f32 %v821_v11, %v794_v42  ;;  %v769_v48 = vadd.f32 %v768_v13, %v3127_v30 }
 0x110   :  { %v796_v19 = vpop.f32.mrf.mxu1 }
 0x111   :  { %v3173_v17 = vmax.f32 %v485_v10, %v860_v44  ;;  %v797_v49 = vadd.f32 %v796_v19, %v769_v48  ;;  %1524 = vmatmul.bf16.gmra.mxu0 %v2879_v4  ;;  %v487_v4 = vmax.f32 %v3137_v53, 0.0 }
 0x113   :  { %1552 = vmatmul.bf16.gmra.mxu1 %v2881_v5  ;;  %1580 = vmatmul.bf16.gmra.mxu2 %v2883_v6 }
 0x114   :  { %v849_v47 = vpop.f32.mrf.mxu3 }
 0x115   :  { %v850_v51 = vadd.f32 %v849_v47, %v822_v12 }
 0x116   :  { %v824_v22 = vpop.f32.mrf.mxu2  ;;  %v770_v27 = vpop.f32.mrf.mxu0 }
 0x117   :  { %v861_v21 = vmax.f32 %v850_v51, 0.0  ;;  %v825_v59 = vadd.f32 %v824_v22, %v797_v49 }
 0x118   :  { %v798_v25 = vpop.f32.mrf.mxu1 }
 0x119   :  { %v3180_v24 = vmax.f32 %v486_v29, %v861_v21  ;;  %2352 = vmatmul.msk.bf16.gmra.mxu3 %vm352_vm1, %v2891_v8 }
 0x11c   :  { %v852_v28 = vpop.f32.mrf.mxu3 }
 0x11d   :  { %v853_v31 = vadd.f32 %v852_v28, %v825_v59 }
 0x11e   :  { %v826_v33 = vpop.f32.mrf.mxu2  ;;  %v1135_v6 = vpop.f32.mrf.mxu0 }
 0x11f   :  { %v862_v5 = vmax.f32 %v853_v31, 0.0  ;;  %v1136_v35 = vadd.f32 %v1135_v6, %v3024_v60 }
 0x120   :  { %v1163_v40 = vpop.f32.mrf.mxu1 }
 0x121   :  { %v3185_v34 = vmax.f32 %v487_v4, %v862_v5  ;;  %v1164_v36 = vadd.f32 %v1163_v40, %v1136_v35 }
 0x124   :  { %v854_v14 = vpop.f32.mrf.mxu3 }
 0x126   :  { %v1191_v37 = vpop.f32.mrf.mxu2  ;;  %v1137_v41 = vpop.f32.mrf.mxu0 }
 0x127   :  { %v1192_v15 = vadd.f32 %v1191_v37, %v1164_v36  ;;  %v1138_v16 = vadd.f32 %v1137_v41, %v3042_v9 }
 0x128   :  { %v1165_v8 = vpop.f32.mrf.mxu1 }
 0x129   :  { %v1166_v45 = vadd.f32 %v1165_v8, %v1138_v16 }
 0x12c   :  { %v1219_v46 = vpop.f32.mrf.mxu3 }
 0x12d   :  { %v3189_v50 = vadd.f32 %v1219_v46, %v1192_v15 }
 0x12e   :  { %v1193_v53 = vpop.f32.mrf.mxu2  ;;  %v1140_v54 = vpop.f32.mrf.mxu0 }
 0x12f   :  { %v1194_v52 = vadd.f32 %v1193_v53, %v1166_v45  ;;  %v1141_v23 = vadd.f32 %v1140_v54, %v3061_v26 }
 0x130   :  { %v1168_v55 = vpop.f32.mrf.mxu1 }
 0x131   :  { %v1169_v56 = vadd.f32 %v1168_v55, %v1141_v23 }
 0x134   :  { %v1221_v58 = vpop.f32.mrf.mxu3 }
 0x135   :  { %v3192_v57 = vadd.f32 %v1221_v58, %v1194_v52 }
 0x136   :  { %v1196_v62 = vpop.f32.mrf.mxu2  ;;  %v1142_v1 = vpop.f32.mrf.mxu0 }
 0x137   :  { %v1197_v0 = vadd.f32 %v1196_v62, %v1169_v56  ;;  %v1143_v3 = vadd.f32 %v1142_v1, %v3081_v39 }
 0x138   :  { %v1170_v2 = vpop.f32.mrf.mxu1 }
 0x139   :  { %v1171_v42 = vadd.f32 %v1170_v2, %v1143_v3  ;;  %v1238_v2 = vmax.f32 %v3189_v50, 0.0 }
 0x13c   :  { %v1224_v7 = vpop.f32.mrf.mxu3 }
 0x13d   :  { %v3195_v43 = vadd.f32 %v1224_v7, %v1197_v0 }
 0x13e   :  { %v1198_v10 = vpop.f32.mrf.mxu2  ;;  %v1145_v11 = vpop.f32.mrf.mxu0 }
 0x13f   :  { %v1199_v44 = vadd.f32 %v1198_v10, %v1171_v42  ;;  %v1146_v13 = vadd.f32 %v1145_v11, %v3100_v61 }
 0x140   :  { %v1173_v12 = vpop.f32.mrf.mxu1 }
 0x141   :  { %v1174_v19 = vadd.f32 %v1173_v12, %v1146_v13 }
 0x144   :  { %v1226_v48 = vpop.f32.mrf.mxu3 }
 0x145   :  { %v3198_v49 = vadd.f32 %v1226_v48, %v1199_v44 }
 0x146   :  { %v1201_v47 = vpop.f32.mrf.mxu2  ;;  %v1147_v29 = vpop.f32.mrf.mxu0 }
 0x147   :  { %v1202_v51 = vadd.f32 %v1201_v47, %v1174_v19  ;;  %v1148_v22 = vadd.f32 %v1147_v29, %v3120_v18 }
 0x148   :  { %v1175_v21 = vpop.f32.mrf.mxu1 }
 0x149   :  { %v1176_v59 = vadd.f32 %v1175_v21, %v1148_v22 }
 0x14c   :  { %v1229_v27 = vpop.f32.mrf.mxu3 }
 0x14d   :  { %v3201_v25 = vadd.f32 %v1229_v27, %v1202_v51  ;;  %v1239_v51 = vmax.f32 %v3192_v57, 0.0 }
 0x14e   :  { %v1203_v28 = vpop.f32.mrf.mxu2  ;;  %v1150_v4 = vpop.f32.mrf.mxu0 }
 0x14f   :  { %v1204_v31 = vadd.f32 %v1203_v28, %v1176_v59  ;;  %v1151_v33 = vadd.f32 %v1150_v4, %v3127_v30 }
 0x150   :  { %v1178_v5 = vpop.f32.mrf.mxu1 }
 0x151   :  { %v1179_v6 = vadd.f32 %v1178_v5, %v1151_v33 }
 0x154   :  { %v1231_v40 = vpop.f32.mrf.mxu3 }
 0x155   :  { %v3204_v35 = vadd.f32 %v1231_v40, %v1204_v31 }
 0x156   :  { %v1206_v36 = vpop.f32.mrf.mxu2  ;;  %v1152_v37 = vpop.f32.mrf.mxu0 }
 0x157   :  { %v1207_v14 = vadd.f32 %v1206_v36, %v1179_v6 }
 0x158   :  { %v1180_v15 = vpop.f32.mrf.mxu1 }
 0x15c   :  { %v1234_v41 = vpop.f32.mrf.mxu3 }
 0x15d   :  { %v3206_v8 = vadd.f32 %v1234_v41, %v1207_v14 }
 0x15e   :  { %v1208_v16 = vpop.f32.mrf.mxu2  ;;  %v1510_v45 = vpop.f32.mrf.mxu0 }
 0x15f   :  { %v1511_v53 = vadd.f32 %v1510_v45, %v3024_v60 }
 0x160   :  { %v1538_v46 = vpop.f32.mrf.mxu1 }
 0x161   :  { %v1539_v54 = vadd.f32 %v1538_v46, %v1511_v53 }
 0x164   :  { %v1236_v52 = vpop.f32.mrf.mxu3 }
 0x166   :  { %v1566_v55 = vpop.f32.mrf.mxu2  ;;  %v1512_v56 = vpop.f32.mrf.mxu0 }
 0x167   :  { %v1567_v23 = vadd.f32 %v1566_v55, %v1539_v54  ;;  %v1513_v0 = vadd.f32 %v1512_v56, %v3042_v9 }
 0x168   :  { %v1540_v58 = vpop.f32.mrf.mxu1 }
 0x169   :  { %v1541_v7 = vadd.f32 %v1540_v58, %v1513_v0 }
 0x16c   :  { %v1594_v62 = vpop.f32.mrf.mxu3 }
 0x16d   :  { %v1595_v1 = vadd.f32 %v1594_v62, %v1567_v23 }
 0x16e   :  { %v1568_v42 = vpop.f32.mrf.mxu2  ;;  %v1515_v44 = vpop.f32.mrf.mxu0 }
 0x16f   :  { %v1613_v3 = vmax.f32 %v1595_v1, 0.0  ;;  %v1516_v60 = vadd.f32 %v1515_v44, %v3061_v26  ;;  %v1569_v13 = vadd.f32 %v1568_v42, %v1541_v7  ;;  %v1243_v44 = vmax.f32 %v3204_v35, 0.0 }
 0x170   :  { %v1543_v11 = vpop.f32.mrf.mxu1 }
 0x171   :  { %v1620_v10 = vmax.f32 %v1238_v2, %v1613_v3  ;;  %v1544_v48 = vadd.f32 %v1543_v11, %v1516_v60 }
 0x173   :  { %v1627_v12 = vmax.f32 %v3147_v20, %v1620_v10  ;;  %v1240_v20 = vmax.f32 %v3195_v43, 0.0  ;;  %v1241_v43 = vmax.f32 %v3198_v49, 0.0 }
 0x174   :  { %v1596_v19 = vpop.f32.mrf.mxu3 }
 0x175   :  { %v1597_v47 = vadd.f32 %v1596_v19, %v1569_v13 }
 0x176   :  { %v1571_v29 = vpop.f32.mrf.mxu2  ;;  %v1517_v22 = vpop.f32.mrf.mxu0 }
 0x177   :  { %v1614_v9 = vmax.f32 %v1597_v47, 0.0  ;;  %v1572_v50 = vadd.f32 %v1571_v29, %v1544_v48  ;;  %v1518_v26 = vadd.f32 %v1517_v22, %v3081_v39 }
 0x178   :  { %v1545_v59 = vpop.f32.mrf.mxu1 }
 0x179   :  { %v1621_v21 = vmax.f32 %v1239_v51, %v1614_v9  ;;  %v1546_v33 = vadd.f32 %v1545_v59, %v1518_v26 }
 0x17b   :  { %v1628_v27 = vmax.f32 %v3154_v32, %v1621_v21 }
 0x17c   :  { %v1599_v28 = vpop.f32.mrf.mxu3 }
 0x17d   :  { %v2480_v31 = vpack.c.bf16 %v1628_v27, %v1627_v12  ;;  %v1600_v4 = vadd.f32 %v1599_v28, %v1572_v50 }
 0x17e   :  { %v1573_v5 = vpop.f32.mrf.mxu2  ;;  %v1520_v40 = vpop.f32.mrf.mxu0 }
 0x17f   :  { %2481 = vst [vmem:[%s3244_s3] sm:$0xff] %v2480_v31   ;;  %v1615_v57 = vmax.f32 %v1600_v4, 0.0  ;;  %v1521_v14 = vadd.f32 %v1520_v40, %v3100_v61  ;;  %v1574_v37 = vadd.f32 %v1573_v5, %v1546_v33 }
 0x180   :  { %v1548_v36 = vpop.f32.mrf.mxu1 }
 0x181   :  { %v1622_v6 = vmax.f32 %v1240_v20, %v1615_v57  ;;  %v1549_v39 = vadd.f32 %v1548_v36, %v1521_v14 }
 0x183   :  { %v1629_v32 = vmax.f32 %v3160_v38, %v1622_v6  ;;  %v1242_v38 = vmax.f32 %v3201_v25, 0.0 }
 0x184   :  { %v1601_v15 = vpop.f32.mrf.mxu3 }
 0x185   :  { %v1602_v41 = vadd.f32 %v1601_v15, %v1574_v37 }
 0x186   :  { %v1576_v45 = vpop.f32.mrf.mxu2  ;;  %v1522_v52 = vpop.f32.mrf.mxu0 }
 0x187   :  { %v1616_v16 = vmax.f32 %v1602_v41, 0.0  ;;  %v1577_v53 = vadd.f32 %v1576_v45, %v1549_v39  ;;  %v1523_v61 = vadd.f32 %v1522_v52, %v3120_v18 }
 0x188   :  { %v1550_v54 = vpop.f32.mrf.mxu1 }
 0x189   :  { %v1623_v46 = vmax.f32 %v1241_v43, %v1616_v16  ;;  %v1551_v0 = vadd.f32 %v1550_v54, %v1523_v61 }
 0x18b   :  { %v1630_v55 = vmax.f32 %v3167_v63, %v1623_v46 }
 0x18c   :  { %v1604_v23 = vpop.f32.mrf.mxu3 }
 0x18d   :  { %v2485_v56 = vpack.c.bf16 %v1630_v55, %v1629_v32  ;;  %v1605_v58 = vadd.f32 %v1604_v23, %v1577_v53 }
 0x18e   :  { %v1578_v62 = vpop.f32.mrf.mxu2  ;;  %v1525_v2 = vpop.f32.mrf.mxu0 }
 0x18f   :  { %2492 = vst [vmem:[%s3244_s3 + $0x8] sm:$0xff] %v2485_v56   ;;  %v1617_v49 = vmax.f32 %v1605_v58, 0.0  ;;  %v1579_v63 = vadd.f32 %v1578_v62, %v1551_v0  ;;  %v1526_v10 = vadd.f32 %v1525_v2, %v3127_v30 }
 0x190   :  { %v1553_v3 = vpop.f32.mrf.mxu1 }
 0x191   :  { %v1624_v1 = vmax.f32 %v1242_v38, %v1617_v49  ;;  %v1554_v60 = vadd.f32 %v1553_v3, %v1526_v10 }
 0x193   :  { %v1631_v42 = vmax.f32 %v3173_v17, %v1624_v1  ;;  %v1244_v17 = vmax.f32 %v3206_v8, 0.0 }
 0x194   :  { %v1606_v7 = vpop.f32.mrf.mxu3 }
 0x195   :  { %v1607_v18 = vadd.f32 %v1606_v7, %v1579_v63 }
 0x196   :  { %v1581_v11 = vpop.f32.mrf.mxu2  ;;  %v1527_v13 = vpop.f32.mrf.mxu0 }
 0x197   :  { %v1618_v25 = vmax.f32 %v1607_v18, 0.0  ;;  %v1582_v47 = vadd.f32 %v1581_v11, %v1554_v60 }
 0x198   :  { %v1555_v19 = vpop.f32.mrf.mxu1 }
 0x199   :  { %v1625_v12 = vmax.f32 %v1243_v44, %v1618_v25 }
 0x19b   :  { %v1632_v48 = vmax.f32 %v3180_v24, %v1625_v12 }
 0x19c   :  { %v1609_v51 = vpop.f32.mrf.mxu3 }
 0x19d   :  { %v2490_v9 = vpack.c.bf16 %v1632_v48, %v1631_v42  ;;  %v1610_v29 = vadd.f32 %v1609_v51, %v1582_v47 }
 0x19e   :  { %v1583_v35 = vpop.f32.mrf.mxu2 }
 0x19f   :  { %2493 = vst [vmem:[%s3244_s3 + $0x10] sm:$0xff] %v2490_v9   ;;  %v1619_v30 = vmax.f32 %v1610_v29, 0.0 }
 0x1a1   :  { %v1626_v21 = vmax.f32 %v1244_v17, %v1619_v30 }
 0x1a3   :  { %v1633_v50 = vmax.f32 %v3185_v34, %v1626_v21 }
 0x1a4   :  { %v1611_v22 = vpop.f32.mrf.mxu3 }
 0x1a5   :  { %v1640_v59 = vpack.c.bf16 %v1633_v50, %v1633_v50 }
 0x1a7   :  { %1647 = vst [vmem:[%s3244_s3 + $0x18] sm:$0x1] %v1640_v59 }

// kernel: custom_mil_forward.5
= control target key start
LH: loop header
LB: loop body
LE: loop exit
PB: predicated region body
PF: predicated region fallthrough
CT: control target
= control target key end

     0   :  { %s4737_s0 = inlined_call_operand.vmem [shape: bf16[8,800], index: 0, kind: input, shape index: {}]   ;;  %s4738_s1 = inlined_call_operand.vmem [shape: f32[800,500], index: 1, kind: input, shape index: {}]   ;;  %s4739_s2 = inlined_call_operand.vmem [shape: f32[1,500], index: 2, kind: input, shape index: {}]   ;;  %s4740_s3 = inlined_call_operand.vmem [shape: f32[500,500], index: 3, kind: input, shape index: {}]   ;;  %s4741_s4 = inlined_call_operand.vmem [shape: f32[1,500], index: 4, kind: input, shape index: {}]   ;;  %s4742_s5 = inlined_call_operand.vmem [shape: f32[500,128], index: 5, kind: input, shape index: {}]   ;;  %s4743_s6 = inlined_call_operand.vmem [shape: f32[1,128], index: 6, kind: input, shape index: {}]   ;;  %s4744_s7 = inlined_call_operand.vmem [shape: f32[1,128], index: 7, kind: input, shape index: {}]   ;;  %s4745_s8 = inlined_call_operand.<no memory space> [shape: f32[1,1], index: 8, kind: input, shape index: {}]   ;;  %s4746_s9 = inlined_call_operand.vmem [shape: f32[500,2], index: 9, kind: input, shape index: {}]   ;;  %s4747_s10 = inlined_call_operand.vmem [shape: f32[1,2], index: 10, kind: input, shape index: {}]   ;;  %s4748_s11 = inlined_call_operand.hbm [shape: f32[1,2], index: 11, kind: output, shape index: {}]  }
   0x1   :  { %v16_v0 = vstv %s4745_s8 }
   0x2   :  { %17 = vst [vmem:[#allocation2] sm:$0x1] %v16_v0 }
   0x3   :  { %v102_v1 = vld [vmem:[%s4738_s1 + $0x1c0] sm:$0xff]  ;;  %vm680_vm0 = vcmask 261120  }
   0x4   :  { %v106_v2 = vld [vmem:[%s4738_s1 + $0x1e0] sm:$0xff] }
   0x5   :  { %v166_v3 = vld [vmem:[%s4738_s1 + $0x3c0] sm:$0xff]  ;;  %v474_v4 = vpack.c.bf16 %v106_v2, %v102_v1 }
   0x6   :  { %v170_v5 = vld [vmem:[%s4738_s1 + $0x3e0] sm:$0xff] }
   0x7   :  { %v230_v6 = vld [vmem:[%s4738_s1 + $0x5c0] sm:$0xff]  ;;  %v506_v8 = vpack.c.bf16 %v170_v5, %v166_v3  ;;  %684 = vmatpush.bf16.msra.mxu0 %v474_v4 }
   0x8   :  { %v234_v7 = vld [vmem:[%s4738_s1 + $0x5e0] sm:$0xff] }
   0x9   :  { %v538_v9 = vpack.c.bf16 %v234_v7, %v230_v6  ;;  %v294_v10 = vld [vmem:[%s4738_s1 + $0x7c0] sm:$0xff]  ;;  %697 = vmatpush.bf16.msra.mxu1 %v506_v8 }
   0xa   :  { %v298_v11 = vld [vmem:[%s4738_s1 + $0x7e0] sm:$0xff] }
   0xb   :  { %v94_v12 = vld [vmem:[%s4738_s1 + $0x180] sm:$0xff]  ;;  %v570_v13 = vpack.c.bf16 %v298_v11, %v294_v10  ;;  %710 = vmatpush.bf16.msra.mxu2 %v538_v9 }
   0xc   :  { %v98_v14 = vld [vmem:[%s4738_s1 + $0x1a0] sm:$0xff] }
   0xd   :  { %v158_v15 = vld [vmem:[%s4738_s1 + $0x380] sm:$0xff]  ;;  %v470_v17 = vpack.c.bf16 %v98_v14, %v94_v12  ;;  %723 = vmatpush.bf16.msra.mxu3 %v570_v13 }
   0xe   :  { %v162_v16 = vld [vmem:[%s4738_s1 + $0x3a0] sm:$0xff] }
   0xf   :  { %v502_v18 = vpack.c.bf16 %v162_v16, %v158_v15  ;;  %v222_v19 = vld [vmem:[%s4738_s1 + $0x580] sm:$0xff]  ;;  %685 = vmatpush.bf16.msra.mxu0 %v470_v17 }
  0x10   :  { %v226_v20 = vld [vmem:[%s4738_s1 + $0x5a0] sm:$0xff] }
  0x11   :  { %v286_v21 = vld [vmem:[%s4738_s1 + $0x780] sm:$0xff]  ;;  %v534_v22 = vpack.c.bf16 %v226_v20, %v222_v19  ;;  %698 = vmatpush.bf16.msra.mxu1 %v502_v18 }
  0x12   :  { %v290_v23 = vld [vmem:[%s4738_s1 + $0x7a0] sm:$0xff] }
  0x13   :  { %v86_v24 = vld [vmem:[%s4738_s1 + $0x140] sm:$0xff]  ;;  %v566_v26 = vpack.c.bf16 %v290_v23, %v286_v21  ;;  %711 = vmatpush.bf16.msra.mxu2 %v534_v22 }
  0x14   :  { %v90_v25 = vld [vmem:[%s4738_s1 + $0x160] sm:$0xff] }
  0x15   :  { %v150_v27 = vld [vmem:[%s4738_s1 + $0x340] sm:$0xff]  ;;  %v466_v30 = vpack.c.bf16 %v90_v25, %v86_v24  ;;  %724 = vmatpush.bf16.msra.mxu3 %v566_v26  ;;  %v43_v25 = vld [vmem:[%s4737_s0 + $0x8] sm:$0xff] }
  0x16   :  { %v154_v28 = vld [vmem:[%s4738_s1 + $0x360] sm:$0xff] }
  0x17   :  { %v214_v29 = vld [vmem:[%s4738_s1 + $0x540] sm:$0xff]  ;;  %v498_v34 = vpack.c.bf16 %v154_v28, %v150_v27  ;;  %686 = vmatpush.bf16.msra.mxu0 %v466_v30 }
  0x18   :  { %v218_v31 = vld [vmem:[%s4738_s1 + $0x560] sm:$0xff] }
  0x19   :  { %v278_v32 = vld [vmem:[%s4738_s1 + $0x740] sm:$0xff]  ;;  %v530_v35 = vpack.c.bf16 %v218_v31, %v214_v29  ;;  %699 = vmatpush.bf16.msra.mxu1 %v498_v34 }
  0x1a   :  { %v282_v33 = vld [vmem:[%s4738_s1 + $0x760] sm:$0xff] }
  0x1b   :  { %v78_v36 = vld [vmem:[%s4738_s1 + $0x100] sm:$0xff]  ;;  %v562_v39 = vpack.c.bf16 %v282_v33, %v278_v32  ;;  %712 = vmatpush.bf16.msra.mxu2 %v530_v35 }
  0x1c   :  { %v82_v37 = vld [vmem:[%s4738_s1 + $0x120] sm:$0xff] }
  0x1d   :  { %v142_v38 = vld [vmem:[%s4738_s1 + $0x300] sm:$0xff]  ;;  %v462_v45 = vpack.c.bf16 %v82_v37, %v78_v36  ;;  %725 = vmatpush.bf16.msra.mxu3 %v562_v39  ;;  %v662_v37 = vunpack.c.l.b16 %v43_v25 }
  0x1e   :  { %v146_v40 = vld [vmem:[%s4738_s1 + $0x320] sm:$0xff] }
  0x1f   :  { %v206_v41 = vld [vmem:[%s4738_s1 + $0x500] sm:$0xff]  ;;  %v494_v46 = vpack.c.bf16 %v146_v40, %v142_v38  ;;  %687 = vmatpush.bf16.msra.mxu0 %v462_v45  ;;  %v103_v40 = vld [vmem:[%s4738_s1 + $0x1c8] sm:$0xff] }
  0x20   :  { %v210_v42 = vld [vmem:[%s4738_s1 + $0x520] sm:$0xff] }
  0x21   :  { %v270_v43 = vld [vmem:[%s4738_s1 + $0x700] sm:$0xff]  ;;  %v526_v47 = vpack.c.bf16 %v210_v42, %v206_v41  ;;  %700 = vmatpush.bf16.msra.mxu1 %v494_v46  ;;  %v107_v41 = vld [vmem:[%s4738_s1 + $0x1e8] sm:$0xff]  ;;  %v663_v42 = vunpack.c.h.b16 %v43_v25 }
  0x22   :  { %v274_v44 = vld [vmem:[%s4738_s1 + $0x720] sm:$0xff]  ;;  %v155_v25 = vld [vmem:[%s4738_s1 + $0x368] sm:$0xff] }
  0x23   :  { %v70_v48 = vld [vmem:[%s4738_s1 + $0xc0] sm:$0xff]  ;;  %v558_v51 = vpack.c.bf16 %v274_v44, %v270_v43  ;;  %713 = vmatpush.bf16.msra.mxu2 %v526_v47 }
  0x24   :  { %v74_v49 = vld [vmem:[%s4738_s1 + $0xe0] sm:$0xff] }
  0x25   :  { %v134_v50 = vld [vmem:[%s4738_s1 + $0x2c0] sm:$0xff]  ;;  %v458_v57 = vpack.c.bf16 %v74_v49, %v70_v48  ;;  %726 = vmatpush.bf16.msra.mxu3 %v558_v51 }
  0x26   :  { %v138_v52 = vld [vmem:[%s4738_s1 + $0x2e0] sm:$0xff] }
  0x27   :  { %v198_v53 = vld [vmem:[%s4738_s1 + $0x4c0] sm:$0xff]  ;;  %v490_v58 = vpack.c.bf16 %v138_v52, %v134_v50  ;;  %688 = vmatpush.bf16.msra.mxu0 %v458_v57 }
  0x28   :  { %v202_v54 = vld [vmem:[%s4738_s1 + $0x4e0] sm:$0xff] }
  0x29   :  { %v262_v55 = vld [vmem:[%s4738_s1 + $0x6c0] sm:$0xff]  ;;  %v522_v59 = vpack.c.bf16 %v202_v54, %v198_v53  ;;  %701 = vmatpush.bf16.msra.mxu1 %v490_v58  ;;  %v475_v54 = vpack.c.bf16 %v107_v41, %v103_v40  ;;  %v95_v58 = vld [vmem:[%s4738_s1 + $0x188] sm:$0xff] }
  0x2a   :  { %v266_v56 = vld [vmem:[%s4738_s1 + $0x6e0] sm:$0xff] }
  0x2b   :  { %v62_v60 = vld [vmem:[%s4738_s1 + $0x80] sm:$0xff]  ;;  %v554_v63 = vpack.c.bf16 %v266_v56, %v262_v55  ;;  %714 = vmatpush.bf16.msra.mxu2 %v522_v59  ;;  %v2433_v55 = vpack.c.b16 %v662_v37, %v662_v37  ;;  %v99_v59 = vld [vmem:[%s4738_s1 + $0x1a8] sm:$0xff] }
  0x2c   :  { %v66_v61 = vld [vmem:[%s4738_s1 + $0xa0] sm:$0xff]  ;;  %v143_v37 = vld [vmem:[%s4738_s1 + $0x308] sm:$0xff] }
  0x2d   :  { %v126_v62 = vld [vmem:[%s4738_s1 + $0x280] sm:$0xff]  ;;  %v454_v5 = vpack.c.bf16 %v66_v61, %v62_v60  ;;  %727 = vmatpush.bf16.msra.mxu3 %v554_v63  ;;  %v167_v60 = vld [vmem:[%s4738_s1 + $0x3c8] sm:$0xff]  ;;  %v2455_v63 = vpack.c.b16 %v663_v42, %v663_v42 }
  0x2e   :  { %v130_v0 = vld [vmem:[%s4738_s1 + $0x2a0] sm:$0xff]  ;;  %v171_v61 = vld [vmem:[%s4738_s1 + $0x3e8] sm:$0xff] }
  0x2f   :  { %v190_v1 = vld [vmem:[%s4738_s1 + $0x480] sm:$0xff]  ;;  %v486_v6 = vpack.c.bf16 %v130_v0, %v126_v62  ;;  %689 = vmatpush.bf16.msra.mxu0 %v454_v5 }
  0x30   :  { %v194_v2 = vld [vmem:[%s4738_s1 + $0x4a0] sm:$0xff] }
  0x31   :  { %v254_v3 = vld [vmem:[%s4738_s1 + $0x680] sm:$0xff]  ;;  %v518_v7 = vpack.c.bf16 %v194_v2, %v190_v1  ;;  %702 = vmatpush.bf16.msra.mxu1 %v486_v6  ;;  %v471_v6 = vpack.c.bf16 %v99_v59, %v95_v58 }
  0x32   :  { %v258_v4 = vld [vmem:[%s4738_s1 + $0x6a0] sm:$0xff] }
  0x33   :  { %v54_v8 = vld [vmem:[%s4738_s1 + $0x40] sm:$0xff]  ;;  %v550_v11 = vpack.c.bf16 %v258_v4, %v254_v3  ;;  %715 = vmatpush.bf16.msra.mxu2 %v518_v7  ;;  %v507_v7 = vpack.c.bf16 %v171_v61, %v167_v60 }
  0x34   :  { %v58_v9 = vld [vmem:[%s4738_s1 + $0x60] sm:$0xff] }
  0x35   :  { %v118_v10 = vld [vmem:[%s4738_s1 + $0x240] sm:$0xff]  ;;  %v450_v17 = vpack.c.bf16 %v58_v9, %v54_v8  ;;  %728 = vmatpush.bf16.msra.mxu3 %v550_v11  ;;  %v91_v11 = vld [vmem:[%s4738_s1 + $0x168] sm:$0xff] }
  0x36   :  { %v122_v12 = vld [vmem:[%s4738_s1 + $0x260] sm:$0xff] }
  0x37   :  { %v182_v13 = vld [vmem:[%s4738_s1 + $0x440] sm:$0xff]  ;;  %v482_v21 = vpack.c.bf16 %v122_v12, %v118_v10  ;;  %690 = vmatpush.bf16.msra.mxu0 %v450_v17  ;;  %v87_v10 = vld [vmem:[%s4738_s1 + $0x148] sm:$0xff] }
  0x38   :  { %v186_v14 = vld [vmem:[%s4738_s1 + $0x460] sm:$0xff]  ;;  %v159_v12 = vld [vmem:[%s4738_s1 + $0x388] sm:$0xff] }
  0x39   :  { %v246_v15 = vld [vmem:[%s4738_s1 + $0x640] sm:$0xff]  ;;  %v514_v22 = vpack.c.bf16 %v186_v14, %v182_v13  ;;  %703 = vmatpush.bf16.msra.mxu1 %v482_v21  ;;  %v163_v13 = vld [vmem:[%s4738_s1 + $0x3a8] sm:$0xff] }
  0x3a   :  { %v250_v16 = vld [vmem:[%s4738_s1 + $0x660] sm:$0xff] }
  0x3b   :  { %v46_v18 = vld [vmem:[%s4738_s1] sm:$0xff]  ;;  %v546_v26 = vpack.c.bf16 %v250_v16, %v246_v15  ;;  %716 = vmatpush.bf16.msra.mxu2 %v514_v22  ;;  %v79_v22 = vld [vmem:[%s4738_s1 + $0x108] sm:$0xff] }
  0x3c   :  { %v50_v19 = vld [vmem:[%s4738_s1 + $0x20] sm:$0xff] }
  0x3d   :  { %v110_v20 = vld [vmem:[%s4738_s1 + $0x200] sm:$0xff]  ;;  %v446_v33 = vpack.c.bf16 %v50_v19, %v46_v18  ;;  %729 = vmatpush.bf16.msra.mxu3 %v546_v26  ;;  %v467_v18 = vpack.c.bf16 %v91_v11, %v87_v10  ;;  %v503_v19 = vpack.c.bf16 %v163_v13, %v159_v12  ;;  %v47_v11 = vld [vmem:[%s4738_s1 + $0x8] sm:$0xff]  ;;  %v44_v12 = vld [vmem:[%s4737_s0 + $0x10] sm:$0xff] }
  0x3e   :  { %v114_v23 = vld [vmem:[%s4738_s1 + $0x220] sm:$0xff] }
  0x3f   :  { %v174_v24 = vld [vmem:[%s4738_s1 + $0x400] sm:$0xff]  ;;  %v478_v38 = vpack.c.bf16 %v114_v23, %v110_v20  ;;  %691 = vmatpush.bf16.msra.mxu0 %v446_v33  ;;  %v83_v23 = vld [vmem:[%s4738_s1 + $0x128] sm:$0xff] }
  0x40   :  { %v178_v27 = vld [vmem:[%s4738_s1 + $0x420] sm:$0xff] }
  0x41   :  { %v238_v28 = vld [vmem:[%s4738_s1 + $0x600] sm:$0xff]  ;;  %v510_v39 = vpack.c.bf16 %v178_v27, %v174_v24  ;;  %704 = vmatpush.bf16.msra.mxu1 %v478_v38  ;;  %v151_v24 = vld [vmem:[%s4738_s1 + $0x348] sm:$0xff] }
  0x42   :  { %v242_v29 = vld [vmem:[%s4738_s1 + $0x620] sm:$0xff]  ;;  %v147_v38 = vld [vmem:[%s4738_s1 + $0x328] sm:$0xff] }
  0x43   :  { %v358_v30 = vld [vmem:[%s4738_s1 + $0x9c0] sm:$0xff]  ;;  %v542_v43 = vpack.c.bf16 %v242_v29, %v238_v28  ;;  %717 = vmatpush.bf16.msra.mxu2 %v510_v39 }
  0x44   :  { %v362_v31 = vld [vmem:[%s4738_s1 + $0x9e0] sm:$0xff] }
  0x45   :  { %v422_v32 = vld [vmem:[%s4738_s1 + $0xbc0] sm:$0xff]  ;;  %v602_v44 = vpack.c.bf16 %v362_v31, %v358_v30  ;;  %730 = vmatpush.bf16.msra.mxu3 %v542_v43  ;;  %v45_v30 = vld [vmem:[%s4737_s0 + $0x18] sm:$0xf]  ;;  %v463_v31 = vpack.c.bf16 %v83_v23, %v79_v22  ;;  %v299_v22 = vld [vmem:[%s4738_s1 + $0x7e8] sm:$0xff] }
  0x46   :  { %v426_v34 = vld [vmem:[%s4738_s1 + $0xbe0] sm:$0xff]  ;;  %718 = vmatmul.bf16.vlgmr.msra.gmra.mxu2 %v2433_v55  ;;  %v666_v39 = vunpack.c.l.b16 %v45_v30  ;;  %v359_v23 = vld [vmem:[%s4738_s1 + $0x9c8] sm:$0xff] }
  0x47   :  { %v438_v35 = vld [vmem:[%s4738_s1 + $0xc40] sm:$0xff]  ;;  %v634_v47 = vpack.c.bf16 %v426_v34, %v422_v32  ;;  %736 = vmatpush.bf16.msrb.mxu0 %v602_v44  ;;  %v499_v32 = vpack.c.bf16 %v155_v25, %v151_v24  ;;  %v363_v24 = vld [vmem:[%s4738_s1 + $0x9e8] sm:$0xff]  ;;  %v664_v25 = vunpack.c.l.b16 %v44_v12 }
  0x48   :  { %v442_v36 = vld [vmem:[%s4738_s1 + $0xc60] sm:$0xff]  ;;  %731 = vmatmul.bf16.vlgmr.msra.gmra.mxu3 %v2455_v63 }
  0x49   :  { %v350_v45 = vld [vmem:[%s4738_s1 + $0x980] sm:$0xff]  ;;  %v642_v48 = vpack.c.bf16 %v442_v36, %v438_v35  ;;  %749 = vmatpush.bf16.msrb.mxu1 %v634_v47  ;;  %775 = vmatpush.bf16.msrb.mxu3 %v475_v54  ;;  %v71_v35 = vld [vmem:[%s4738_s1 + $0xc8] sm:$0xff] }
  0x4a   :  { %v42_v46 = vld [vmem:[%s4737_s0] sm:$0xff]  ;;  %v75_v36 = vld [vmem:[%s4738_s1 + $0xe8] sm:$0xff] }
  0x4b   :  { %v354_v49 = vld [vmem:[%s4738_s1 + $0x9a0] sm:$0xff]  ;;  %v660_v52 = vunpack.c.l.b16 %v42_v46  ;;  %v661_v53 = vunpack.c.h.b16 %v42_v46  ;;  %768 = vmatpush.bf16.msrb.mxu2 %v642_v48  ;;  %v459_v44 = vpack.c.bf16 %v75_v36, %v71_v35  ;;  %v63_v48 = vld [vmem:[%s4738_s1 + $0x88] sm:$0xff] }
  0x4c   :  { %v414_v50 = vld [vmem:[%s4738_s1 + $0xb80] sm:$0xff]  ;;  %v598_v0 = vpack.c.bf16 %v354_v49, %v350_v45  ;;  %v495_v45 = vpack.c.bf16 %v147_v38, %v143_v37  ;;  %v67_v49 = vld [vmem:[%s4738_s1 + $0xa8] sm:$0xff]  ;;  %v2650_v38 = vpack.c.b16 %v664_v25, %v664_v25 }
  0x4d   :  { %v418_v51 = vld [vmem:[%s4738_s1 + $0xba0] sm:$0xff]  ;;  %v2453_v62 = vpack.c.b16 %v660_v52, %v660_v52  ;;  %v2457_v1 = vpack.c.b16 %v661_v53, %v661_v53  ;;  %776 = vmatpush.bf16.msrb.mxu3 %v471_v6  ;;  %v2562_v52 = vpack.c.b16 %v666_v39, %v666_v39  ;;  %v455_v58 = vpack.c.bf16 %v67_v49, %v63_v48  ;;  %v111_v35 = vld [vmem:[%s4738_s1 + $0x208] sm:$0xff] }
  0x4e   :  { %v430_v56 = vld [vmem:[%s4738_s1 + $0xc00] sm:$0xff]  ;;  %v630_v2 = vpack.c.bf16 %v418_v51, %v414_v50  ;;  %737 = vmatpush.bf16.msrb.mxu0 %v598_v0  ;;  %v135_v50 = vld [vmem:[%s4738_s1 + $0x2c8] sm:$0xff] }
  0x4f   :  { %v434_v57 = vld [vmem:[%s4738_s1 + $0xc20] sm:$0xff]  ;;  %692 = vmatmul.bf16.vlgmr.msra.gmra.mxu0 %v2453_v62  ;;  %705 = vmatmul.bf16.vlgmr.msra.gmra.mxu1 %v2457_v1  ;;  %v139_v51 = vld [vmem:[%s4738_s1 + $0x2e8] sm:$0xff] }
  0x50   :  { %v638_v3 = vpack.c.bf16 %v434_v57, %v430_v56  ;;  %v342_v4 = vld [vmem:[%s4738_s1 + $0x940] sm:$0xff]  ;;  %750 = vmatpush.bf16.msrb.mxu1 %v630_v2  ;;  %v491_v59 = vpack.c.bf16 %v139_v51, %v135_v50  ;;  %v55_v0 = vld [vmem:[%s4738_s1 + $0x48] sm:$0xff] }
  0x51   :  { %v346_v5 = vld [vmem:[%s4738_s1 + $0x960] sm:$0xff]  ;;  %777 = vmatpush.bf16.msrb.mxu3 %v467_v18  ;;  %v59_v2 = vld [vmem:[%s4738_s1 + $0x68] sm:$0xff] }
  0x52   :  { %v406_v8 = vld [vmem:[%s4738_s1 + $0xb40] sm:$0xff]  ;;  %v594_v14 = vpack.c.bf16 %v346_v5, %v342_v4  ;;  %769 = vmatpush.bf16.msrb.mxu2 %v638_v3  ;;  %v127_v3 = vld [vmem:[%s4738_s1 + $0x288] sm:$0xff]  ;;  %v451_v13 = vpack.c.bf16 %v59_v2, %v55_v0 }
  0x53   :  { %v410_v9 = vld [vmem:[%s4738_s1 + $0xb60] sm:$0xff]  ;;  %v131_v4 = vld [vmem:[%s4738_s1 + $0x2a8] sm:$0xff] }
  0x54   :  { %v626_v15 = vpack.c.bf16 %v410_v9, %v406_v8  ;;  %v334_v16 = vld [vmem:[%s4738_s1 + $0x900] sm:$0xff]  ;;  %738 = vmatpush.bf16.msrb.mxu0 %v594_v14  ;;  %v487_v14 = vpack.c.bf16 %v131_v4, %v127_v3  ;;  %v119_v18 = vld [vmem:[%s4738_s1 + $0x248] sm:$0xff] }
  0x55   :  { %v338_v17 = vld [vmem:[%s4738_s1 + $0x920] sm:$0xff]  ;;  %778 = vmatpush.bf16.msrb.mxu3 %v463_v31  ;;  %v223_v31 = vld [vmem:[%s4738_s1 + $0x588] sm:$0xff] }
  0x56   :  { %788 = vmatpush.bf16.msra.mxu2 %v507_v7  ;;  %v398_v20 = vld [vmem:[%s4738_s1 + $0xb00] sm:$0xff]  ;;  %v590_v26 = vpack.c.bf16 %v338_v17, %v334_v16  ;;  %751 = vmatpush.bf16.msrb.mxu1 %v626_v15  ;;  %v51_v15 = vld [vmem:[%s4738_s1 + $0x28] sm:$0xff] }
  0x57   :  { %v402_v21 = vld [vmem:[%s4738_s1 + $0xb20] sm:$0xff]  ;;  %2085 = vmatmul.msk.bf16.vlgmr.msrb.gmra.mxu2 %vm680_vm0, %v2562_v52  ;;  %v231_v16 = vld [vmem:[%s4738_s1 + $0x5c8] sm:$0xff] }
  0x58   :  { %v622_v27 = vpack.c.bf16 %v402_v21, %v398_v20  ;;  %v326_v28 = vld [vmem:[%s4738_s1 + $0x8c0] sm:$0xff]  ;;  %739 = vmatpush.bf16.msrb.mxu0 %v590_v26  ;;  %v235_v17 = vld [vmem:[%s4738_s1 + $0x5e8] sm:$0xff]  ;;  %v665_v26 = vunpack.c.h.b16 %v44_v12 }
  0x59   :  { %v330_v29 = vld [vmem:[%s4738_s1 + $0x8e0] sm:$0xff]  ;;  %779 = vmatpush.bf16.msrb.mxu3 %v459_v44  ;;  %v295_v20 = vld [vmem:[%s4738_s1 + $0x7c8] sm:$0xff] }
  0x5a   :  { %789 = vmatpush.bf16.msra.mxu2 %v503_v19  ;;  %v390_v33 = vld [vmem:[%s4738_s1 + $0xac0] sm:$0xff]  ;;  %v586_v40 = vpack.c.bf16 %v330_v29, %v326_v28  ;;  %752 = vmatpush.bf16.msrb.mxu1 %v622_v27  ;;  %v123_v19 = vld [vmem:[%s4738_s1 + $0x268] sm:$0xff]  ;;  %v539_v28 = vpack.c.bf16 %v235_v17, %v231_v16  ;;  %v447_v29 = vpack.c.bf16 %v51_v15, %v47_v11 }
  0x5b   :  { %v394_v34 = vld [vmem:[%s4738_s1 + $0xae0] sm:$0xff]  ;;  %v483_v30 = vpack.c.bf16 %v123_v19, %v119_v18  ;;  %v115_v36 = vld [vmem:[%s4738_s1 + $0x228] sm:$0xff]  ;;  %v2652_v39 = vpack.c.b16 %v665_v26, %v665_v26 }
  0x5c   :  { %v618_v41 = vpack.c.bf16 %v394_v34, %v390_v33  ;;  %v318_v42 = vld [vmem:[%s4738_s1 + $0x880] sm:$0xff]  ;;  %740 = vmatpush.bf16.msrb.mxu0 %v586_v40  ;;  %v571_v33 = vpack.c.bf16 %v299_v22, %v295_v20  ;;  %v603_v34 = vpack.c.bf16 %v363_v24, %v359_v23  ;;  %v287_v37 = vld [vmem:[%s4738_s1 + $0x788] sm:$0xff] }
  0x5d   :  { %v322_v43 = vld [vmem:[%s4738_s1 + $0x8a0] sm:$0xff]  ;;  %780 = vmatpush.bf16.msrb.mxu3 %v455_v58  ;;  %v291_v40 = vld [vmem:[%s4738_s1 + $0x7a8] sm:$0xff] }
  0x5e   :  { %790 = vmatpush.bf16.msra.mxu2 %v499_v32  ;;  %v382_v46 = vld [vmem:[%s4738_s1 + $0xa80] sm:$0xff]  ;;  %v582_v53 = vpack.c.bf16 %v322_v43, %v318_v42  ;;  %753 = vmatpush.bf16.msrb.mxu1 %v618_v41  ;;  %v227_v32 = vld [vmem:[%s4738_s1 + $0x5a8] sm:$0xff]  ;;  %v567_v49 = vpack.c.bf16 %v291_v40, %v287_v37 }
  0x5f   :  { %v386_v47 = vld [vmem:[%s4738_s1 + $0xaa0] sm:$0xff]  ;;  %v351_v41 = vld [vmem:[%s4738_s1 + $0x988] sm:$0xff]  ;;  %v535_v43 = vpack.c.bf16 %v227_v32, %v223_v31 }
  0x60   :  { %v614_v54 = vpack.c.bf16 %v386_v47, %v382_v46  ;;  %v310_v56 = vld [vmem:[%s4738_s1 + $0x840] sm:$0xff]  ;;  %741 = vmatpush.bf16.msrb.mxu0 %v582_v53  ;;  %v355_v42 = vld [vmem:[%s4738_s1 + $0x9a8] sm:$0xff]  ;;  %v479_v46 = vpack.c.bf16 %v115_v36, %v111_v35 }
  0x61   :  { %v314_v57 = vld [vmem:[%s4738_s1 + $0x860] sm:$0xff]  ;;  %781 = vmatpush.bf16.msrb.mxu3 %v451_v13  ;;  %v423_v44 = vld [vmem:[%s4738_s1 + $0xbc8] sm:$0xff]  ;;  %v599_v50 = vpack.c.bf16 %v355_v42, %v351_v41 }
  0x62   :  { %791 = vmatpush.bf16.msra.mxu2 %v495_v45  ;;  %v374_v60 = vld [vmem:[%s4738_s1 + $0xa40] sm:$0xff]  ;;  %v578_v5 = vpack.c.bf16 %v314_v57, %v310_v56  ;;  %754 = vmatpush.bf16.msrb.mxu1 %v614_v54  ;;  %v427_v45 = vld [vmem:[%s4738_s1 + $0xbe8] sm:$0xff] }
  0x63   :  { %v378_v61 = vld [vmem:[%s4738_s1 + $0xa60] sm:$0xff]  ;;  %v215_v47 = vld [vmem:[%s4738_s1 + $0x548] sm:$0xff]  ;;  %v635_v53 = vpack.c.bf16 %v427_v45, %v423_v44 }
  0x64   :  { %v302_v6 = vld [vmem:[%s4738_s1 + $0x800] sm:$0xff]  ;;  %v610_v9 = vpack.c.bf16 %v378_v61, %v374_v60  ;;  %742 = vmatpush.bf16.msrb.mxu0 %v578_v5  ;;  %v219_v48 = vld [vmem:[%s4738_s1 + $0x568] sm:$0xff] }
  0x65   :  { %v306_v7 = vld [vmem:[%s4738_s1 + $0x820] sm:$0xff]  ;;  %782 = vmatpush.bf16.msrb.mxu3 %v447_v29  ;;  %v279_v51 = vld [vmem:[%s4738_s1 + $0x748] sm:$0xff]  ;;  %v531_v58 = vpack.c.bf16 %v219_v48, %v215_v47 }
  0x66   :  { %v366_v8 = vld [vmem:[%s4738_s1 + $0xa00] sm:$0xff]  ;;  %792 = vmatpush.bf16.msra.mxu2 %v491_v59  ;;  %v574_v21 = vpack.c.bf16 %v306_v7, %v302_v6  ;;  %755 = vmatpush.bf16.msrb.mxu1 %v610_v9  ;;  %v283_v54 = vld [vmem:[%s4738_s1 + $0x768] sm:$0xff] }
  0x67   :  { %v370_v10 = vld [vmem:[%s4738_s1 + $0xa20] sm:$0xff]  ;;  %v343_v56 = vld [vmem:[%s4738_s1 + $0x948] sm:$0xff]  ;;  %v563_v2 = vpack.c.bf16 %v283_v54, %v279_v51 }
  0x68   :  { %v606_v27 = vpack.c.bf16 %v370_v10, %v366_v8  ;;  %743 = vmatpush.bf16.msrb.mxu0 %v574_v21  ;;  %v347_v57 = vld [vmem:[%s4738_s1 + $0x968] sm:$0xff]  ;;  %783 = vmatmul.bf16.vlgmr.msrb.gmra.mxu3 %v2453_v62 }
  0x69   :  { %827 = vmatpush.bf16.msra.mxu3 %v603_v34  ;;  %v415_v59 = vld [vmem:[%s4738_s1 + $0xb88] sm:$0xff]  ;;  %v595_v3 = vpack.c.bf16 %v347_v57, %v343_v56 }
  0x6a   :  { %793 = vmatpush.bf16.msra.mxu2 %v487_v14  ;;  %756 = vmatpush.bf16.msrb.mxu1 %v606_v27  ;;  %v419_v60 = vld [vmem:[%s4738_s1 + $0xba8] sm:$0xff] }
  0x6b   :  { %744 = vmatmul.bf16.vlgmr.msrb.gmra.mxu0 %v2650_v38  ;;  %v207_v61 = vld [vmem:[%s4738_s1 + $0x508] sm:$0xff]  ;;  %v631_v5 = vpack.c.bf16 %v419_v60, %v415_v59  ;;  %v232_v60 = vld [vmem:[%s4738_s1 + $0x5d0] sm:$0xff] }
  0x6c   :  { %801 = vmatpush.bf16.msra.mxu0 %v539_v28  ;;  %v211_v0 = vld [vmem:[%s4738_s1 + $0x528] sm:$0xff] }
  0x6d   :  { %757 = vmatmul.bf16.vlgmr.msrb.gmra.mxu1 %v2652_v39  ;;  %828 = vmatpush.bf16.msra.mxu3 %v599_v50  ;;  %v271_v4 = vld [vmem:[%s4738_s1 + $0x708] sm:$0xff]  ;;  %v527_v9 = vpack.c.bf16 %v211_v0, %v207_v61  ;;  %v236_v61 = vld [vmem:[%s4738_s1 + $0x5f0] sm:$0xff] }
  0x6e   :  { %794 = vmatpush.bf16.msra.mxu2 %v483_v30  ;;  %814 = vmatpush.bf16.msra.mxu1 %v571_v33  ;;  %v275_v6 = vld [vmem:[%s4738_s1 + $0x728] sm:$0xff] }
  0x6f   :  { %v335_v7 = vld [vmem:[%s4738_s1 + $0x908] sm:$0xff]  ;;  %v559_v14 = vpack.c.bf16 %v275_v6, %v271_v4 }
  0x70   :  { %802 = vmatpush.bf16.msra.mxu0 %v535_v43  ;;  %v339_v8 = vld [vmem:[%s4738_s1 + $0x928] sm:$0xff] }
  0x71   :  { %v407_v10 = vld [vmem:[%s4738_s1 + $0xb48] sm:$0xff]  ;;  %829 = vmatpush.bf16.msra.mxu3 %v595_v3  ;;  %v591_v15 = vpack.c.bf16 %v339_v8, %v335_v7 }
  0x72   :  { %795 = vmatpush.bf16.msra.mxu2 %v479_v46  ;;  %815 = vmatpush.bf16.msra.mxu1 %v567_v49  ;;  %v411_v11 = vld [vmem:[%s4738_s1 + $0xb68] sm:$0xff] }
  0x73   :  { %v199_v12 = vld [vmem:[%s4738_s1 + $0x4c8] sm:$0xff]  ;;  %v627_v17 = vpack.c.bf16 %v411_v11, %v407_v10 }
  0x74   :  { %803 = vmatpush.bf16.msra.mxu0 %v531_v58  ;;  %v203_v13 = vld [vmem:[%s4738_s1 + $0x4e8] sm:$0xff] }
  0x75   :  { %796 = vmatmul.bf16.vlgmr.msra.gmra.mxu2 %v2457_v1  ;;  %v263_v16 = vld [vmem:[%s4738_s1 + $0x6c8] sm:$0xff]  ;;  %v523_v21 = vpack.c.bf16 %v203_v13, %v199_v12  ;;  %830 = vmatpush.bf16.msra.mxu3 %v591_v15 }
  0x76   :  { %840 = vmatpush.bf16.msrb.mxu2 %v635_v53  ;;  %816 = vmatpush.bf16.msra.mxu1 %v563_v2  ;;  %v267_v18 = vld [vmem:[%s4738_s1 + $0x6e8] sm:$0xff] }
  0x77   :  { %v327_v19 = vld [vmem:[%s4738_s1 + $0x8c8] sm:$0xff]  ;;  %v555_v26 = vpack.c.bf16 %v267_v18, %v263_v16 }
  0x78   :  { %v331_v20 = vld [vmem:[%s4738_s1 + $0x8e8] sm:$0xff]  ;;  %804 = vmatpush.bf16.msra.mxu0 %v527_v9 }
  0x79   :  { %v399_v22 = vld [vmem:[%s4738_s1 + $0xb08] sm:$0xff]  ;;  %v587_v27 = vpack.c.bf16 %v331_v20, %v327_v19 }
  0x7a   :  { %841 = vmatpush.bf16.msrb.mxu2 %v631_v5  ;;  %v403_v23 = vld [vmem:[%s4738_s1 + $0xb28] sm:$0xff]  ;;  %817 = vmatpush.bf16.msra.mxu1 %v559_v14 }
  0x7b   :  { %v191_v24 = vld [vmem:[%s4738_s1 + $0x488] sm:$0xff]  ;;  %v623_v29 = vpack.c.bf16 %v403_v23, %v399_v22  ;;  %831 = vmatpush.bf16.msra.mxu3 %v587_v27 }
  0x7c   :  { %v195_v25 = vld [vmem:[%s4738_s1 + $0x4a8] sm:$0xff]  ;;  %805 = vmatpush.bf16.msra.mxu0 %v523_v21 }
  0x7d   :  { %v255_v28 = vld [vmem:[%s4738_s1 + $0x688] sm:$0xff]  ;;  %v519_v33 = vpack.c.bf16 %v195_v25, %v191_v24 }
  0x7e   :  { %842 = vmatpush.bf16.msrb.mxu2 %v627_v17  ;;  %v259_v30 = vld [vmem:[%s4738_s1 + $0x6a8] sm:$0xff]  ;;  %818 = vmatpush.bf16.msra.mxu1 %v555_v26 }
  0x7f   :  { %v319_v31 = vld [vmem:[%s4738_s1 + $0x888] sm:$0xff]  ;;  %v551_v40 = vpack.c.bf16 %v259_v30, %v255_v28 }
  0x80   :  { %v323_v32 = vld [vmem:[%s4738_s1 + $0x8a8] sm:$0xff]  ;;  %806 = vmatpush.bf16.msra.mxu0 %v519_v33 }
  0x81   :  { %v391_v34 = vld [vmem:[%s4738_s1 + $0xac8] sm:$0xff]  ;;  %v583_v41 = vpack.c.bf16 %v323_v32, %v319_v31 }
  0x82   :  { %v395_v35 = vld [vmem:[%s4738_s1 + $0xae8] sm:$0xff]  ;;  %843 = vmatpush.bf16.msrb.mxu2 %v623_v29  ;;  %819 = vmatpush.bf16.msra.mxu1 %v551_v40 }
  0x83   :  { %v183_v36 = vld [vmem:[%s4738_s1 + $0x448] sm:$0xff]  ;;  %v619_v45 = vpack.c.bf16 %v395_v35, %v391_v34  ;;  %832 = vmatpush.bf16.msra.mxu3 %v583_v41 }
  0x84   :  { %v187_v37 = vld [vmem:[%s4738_s1 + $0x468] sm:$0xff] }
  0x85   :  { %v247_v42 = vld [vmem:[%s4738_s1 + $0x648] sm:$0xff]  ;;  %v515_v49 = vpack.c.bf16 %v187_v37, %v183_v36 }
  0x86   :  { %v251_v43 = vld [vmem:[%s4738_s1 + $0x668] sm:$0xff]  ;;  %844 = vmatpush.bf16.msrb.mxu2 %v619_v45 }
  0x87   :  { %v311_v44 = vld [vmem:[%s4738_s1 + $0x848] sm:$0xff]  ;;  %v547_v57 = vpack.c.bf16 %v251_v43, %v247_v42  ;;  %807 = vmatpush.bf16.msra.mxu0 %v515_v49 }
  0x88   :  { %v315_v46 = vld [vmem:[%s4738_s1 + $0x868] sm:$0xff] }
  0x89   :  { %v383_v47 = vld [vmem:[%s4738_s1 + $0xa88] sm:$0xff]  ;;  %v579_v58 = vpack.c.bf16 %v315_v46, %v311_v44 }
  0x8a   :  { %v387_v48 = vld [vmem:[%s4738_s1 + $0xaa8] sm:$0xff] }
  0x8b   :  { %v175_v50 = vld [vmem:[%s4738_s1 + $0x408] sm:$0xff]  ;;  %v615_v0 = vpack.c.bf16 %v387_v48, %v383_v47 }
  0x8c   :  { %v179_v51 = vld [vmem:[%s4738_s1 + $0x428] sm:$0xff] }
  0x8d   :  { %v239_v53 = vld [vmem:[%s4738_s1 + $0x608] sm:$0xff]  ;;  %v511_v5 = vpack.c.bf16 %v179_v51, %v175_v50 }
  0x8e   :  { %v243_v54 = vld [vmem:[%s4738_s1 + $0x628] sm:$0xff] }
  0x8f   :  { %v303_v56 = vld [vmem:[%s4738_s1 + $0x808] sm:$0xff] }
  0x90   :  { %v307_v59 = vld [vmem:[%s4738_s1 + $0x828] sm:$0xff] }
  0x91   :  { %v375_v2 = vld [vmem:[%s4738_s1 + $0xa48] sm:$0xff] }
  0x92   :  { %v379_v3 = vld [vmem:[%s4738_s1 + $0xa68] sm:$0xff] }
  0x93   :  { %v439_v4 = vld [vmem:[%s4738_s1 + $0xc48] sm:$0xff] }
  0x94   :  { %v443_v6 = vld [vmem:[%s4738_s1 + $0xc68] sm:$0xff] }
  0x95   :  { %18 = vsyncpa [#allocation4], 0  ;;  %v104_v7 = vld [vmem:[%s4738_s1 + $0x1d0] sm:$0xff]  ;;  %v540_v9 = vpack.c.bf16 %v236_v61, %v232_v60  ;;  %820 = vmatpush.bf16.msra.mxu1 %v547_v57  ;;  %833 = vmatpush.bf16.msra.mxu3 %v579_v58  ;;  %v543_v10 = vpack.c.bf16 %v243_v54, %v239_v53  ;;  %v575_v11 = vpack.c.bf16 %v307_v59, %v303_v56  ;;  %v367_v12 = vld [vmem:[%s4738_s1 + $0xa08] sm:$0xff]  ;;  %vm1450_vm1 = vcmask 1041408   ;;  %s2135_s14 = smov [#allocation3]  }
  0x96   :  { %v108_v8 = vld [vmem:[%s4738_s1 + $0x1f0] sm:$0xff]  ;;  %845 = vmatpush.bf16.msrb.mxu2 %v615_v0  ;;  %v611_v13 = vpack.c.bf16 %v379_v3, %v375_v2  ;;  %v643_v14 = vpack.c.bf16 %v443_v6, %v439_v4  ;;  %v371_v15 = vld [vmem:[%s4738_s1 + $0xa28] sm:$0xff]  ;;  %808 = vmatpush.bf16.msra.mxu0 %v511_v5  ;;  %vm1446_vm2 = vcmask 949248   ;;  %vm1849_vm3 = vcmask 7168   ;;  %s2074_s15 = sshll.u32 %s2135_s14, 4  ;;  %s2076_s17 = sshll.u32 %s4748_s11, 4  ;;  %s2075_s15 = int_to_ptr.vmem [resolvable:$true] %s2074_s15  ;;  %s2077_s17 = int_to_ptr.hbm [resolvable:$true] %s2076_s17 }
  0x97   :  { %v224_v16 = vld [vmem:[%s4738_s1 + $0x590] sm:$0xff]  ;;  %v476_v18 = vpack.c.bf16 %v108_v8, %v104_v7  ;;  %v431_v19 = vld [vmem:[%s4738_s1 + $0xc08] sm:$0xff]  ;;  %v607_v28 = vpack.c.bf16 %v371_v15, %v367_v12  ;;  %vm1983_vm4 = vcmask 1043456   ;;  %vm2067_vm9 = vcmask 8192  }
  0x98   :  { %v228_v17 = vld [vmem:[%s4738_s1 + $0x5b0] sm:$0xff]  ;;  %v435_v20 = vld [vmem:[%s4738_s1 + $0xc28] sm:$0xff] }
  0x99   :  { %v96_v21 = vld [vmem:[%s4738_s1 + $0x190] sm:$0xff]  ;;  %821 = vmatpush.bf16.msra.mxu1 %v543_v10  ;;  %834 = vmatpush.bf16.msra.mxu3 %v575_v11  ;;  %v536_v27 = vpack.c.bf16 %v228_v17, %v224_v16  ;;  %v639_v29 = vpack.c.bf16 %v435_v20, %v431_v19 }
  0x9a   :  { %892 = vmatpush.bf16.msrb.mxu0 %v540_v9  ;;  %v100_v22 = vld [vmem:[%s4738_s1 + $0x1b0] sm:$0xff]  ;;  %846 = vmatpush.bf16.msrb.mxu2 %v611_v13 }
  0x9b   :  { %v168_v23 = vld [vmem:[%s4738_s1 + $0x3d0] sm:$0xff]  ;;  %809 = vmatmul.bf16.vlgmr.msra.gmra.mxu0 %v2433_v55  ;;  %v472_v32 = vpack.c.bf16 %v100_v22, %v96_v21 }
  0x9c   :  { %v172_v24 = vld [vmem:[%s4738_s1 + $0x3f0] sm:$0xff]  ;;  %835 = vmatmul.bf16.vlgmr.msra.gmra.mxu3 %v2650_v38  ;;  %822 = vmatmul.bf16.vlgmr.msra.gmra.mxu1 %v2455_v63 }
  0x9d   :  { %v296_v25 = vld [vmem:[%s4738_s1 + $0x7d0] sm:$0xff]  ;;  %859 = vmatpush.bf16.msrb.mxu3 %v643_v14  ;;  %866 = vmatpush.bf16.msrb.mxu1 %v476_v18  ;;  %v508_v33 = vpack.c.bf16 %v172_v24, %v168_v23 }
  0x9e   :  { %v300_v26 = vld [vmem:[%s4738_s1 + $0x7f0] sm:$0xff]  ;;  %893 = vmatpush.bf16.msrb.mxu0 %v536_v27  ;;  %847 = vmatpush.bf16.msrb.mxu2 %v607_v28 }
  0x9f   :  { %v216_v30 = vld [vmem:[%s4738_s1 + $0x550] sm:$0xff]  ;;  %v572_v35 = vpack.c.bf16 %v300_v26, %v296_v25 }
  0xa0   :  { %v220_v31 = vld [vmem:[%s4738_s1 + $0x570] sm:$0xff] }
  0xa1   :  { %v88_v34 = vld [vmem:[%s4738_s1 + $0x150] sm:$0xff]  ;;  %v532_v43 = vpack.c.bf16 %v220_v31, %v216_v30  ;;  %860 = vmatpush.bf16.msrb.mxu3 %v639_v29  ;;  %867 = vmatpush.bf16.msrb.mxu1 %v472_v32 }
  0xa2   :  { %v92_v36 = vld [vmem:[%s4738_s1 + $0x170] sm:$0xff]  ;;  %905 = vmatpush.bf16.msra.mxu2 %v572_v35 }
  0xa3   :  { %v160_v37 = vld [vmem:[%s4738_s1 + $0x390] sm:$0xff]  ;;  %v468_v46 = vpack.c.bf16 %v92_v36, %v88_v34  ;;  %848 = vmatmul.bf16.vlgmr.msrb.gmra.mxu2 %v2652_v39  ;;  %894 = vmatpush.bf16.msrb.mxu0 %v532_v43 }
  0xa4   :  { %v164_v40 = vld [vmem:[%s4738_s1 + $0x3b0] sm:$0xff] }
  0xa5   :  { %v288_v41 = vld [vmem:[%s4738_s1 + $0x790] sm:$0xff]  ;;  %879 = vmatpush.bf16.msra.mxu3 %v508_v33  ;;  %v504_v47 = vpack.c.bf16 %v164_v40, %v160_v37  ;;  %868 = vmatpush.bf16.msrb.mxu1 %v468_v46 }
  0xa6   :  { %v292_v42 = vld [vmem:[%s4738_s1 + $0x7b0] sm:$0xff] }
  0xa7   :  { %v208_v44 = vld [vmem:[%s4738_s1 + $0x510] sm:$0xff]  ;;  %v568_v49 = vpack.c.bf16 %v292_v42, %v288_v41 }
  0xa8   :  { %v212_v45 = vld [vmem:[%s4738_s1 + $0x530] sm:$0xff] }
  0xa9   :  { %v80_v48 = vld [vmem:[%s4738_s1 + $0x110] sm:$0xff]  ;;  %v528_v57 = vpack.c.bf16 %v212_v45, %v208_v44  ;;  %880 = vmatpush.bf16.msra.mxu3 %v504_v47  ;;  %906 = vmatpush.bf16.msra.mxu2 %v568_v49 }
  0xaa   :  { %v84_v50 = vld [vmem:[%s4738_s1 + $0x130] sm:$0xff] }
  0xab   :  { %v152_v51 = vld [vmem:[%s4738_s1 + $0x350] sm:$0xff]  ;;  %v464_v60 = vpack.c.bf16 %v84_v50, %v80_v48  ;;  %895 = vmatpush.bf16.msrb.mxu0 %v528_v57 }
  0xac   :  { %v156_v53 = vld [vmem:[%s4738_s1 + $0x370] sm:$0xff]  ;;  %2086 = vmatmul.msk.bf16.vlgmr.msrb.gmra.mxu3 %vm680_vm0, %v2562_v52 }
  0xad   :  { %v280_v54 = vld [vmem:[%s4738_s1 + $0x750] sm:$0xff]  ;;  %v500_v61 = vpack.c.bf16 %v156_v53, %v152_v51  ;;  %869 = vmatpush.bf16.msrb.mxu1 %v464_v60 }
  0xae   :  { %v284_v56 = vld [vmem:[%s4738_s1 + $0x770] sm:$0xff] }
  0xaf   :  { %v200_v58 = vld [vmem:[%s4738_s1 + $0x4d0] sm:$0xff]  ;;  %v564_v2 = vpack.c.bf16 %v284_v56, %v280_v54  ;;  %881 = vmatpush.bf16.msra.mxu3 %v500_v61 }
  0xb0   :  { %v204_v59 = vld [vmem:[%s4738_s1 + $0x4f0] sm:$0xff] }
  0xb1   :  { %v72_v0 = vld [vmem:[%s4738_s1 + $0xd0] sm:$0xff]  ;;  %v524_v8 = vpack.c.bf16 %v204_v59, %v200_v58  ;;  %907 = vmatpush.bf16.msra.mxu2 %v564_v2 }
  0xb2   :  { %v76_v3 = vld [vmem:[%s4738_s1 + $0xf0] sm:$0xff] }
  0xb3   :  { %v144_v4 = vld [vmem:[%s4738_s1 + $0x310] sm:$0xff]  ;;  %v460_v11 = vpack.c.bf16 %v76_v3, %v72_v0  ;;  %896 = vmatpush.bf16.msrb.mxu0 %v524_v8  ;;  %v169_v3 = vld [vmem:[%s4738_s1 + $0x3d8] sm:$0xff] }
  0xb4   :  { %v148_v5 = vld [vmem:[%s4738_s1 + $0x330] sm:$0xff] }
  0xb5   :  { %v272_v6 = vld [vmem:[%s4738_s1 + $0x710] sm:$0xff]  ;;  %v496_v12 = vpack.c.bf16 %v148_v5, %v144_v4  ;;  %870 = vmatpush.bf16.msrb.mxu1 %v460_v11  ;;  %v173_v4 = vld [vmem:[%s4738_s1 + $0x3f8] sm:$0xff] }
  0xb6   :  { %v276_v7 = vld [vmem:[%s4738_s1 + $0x730] sm:$0xff] }
  0xb7   :  { %v192_v9 = vld [vmem:[%s4738_s1 + $0x490] sm:$0xff]  ;;  %v560_v14 = vpack.c.bf16 %v276_v7, %v272_v6  ;;  %882 = vmatpush.bf16.msra.mxu3 %v496_v12 }
  0xb8   :  { %v196_v10 = vld [vmem:[%s4738_s1 + $0x4b0] sm:$0xff] }
  0xb9   :  { %v64_v13 = vld [vmem:[%s4738_s1 + $0x90] sm:$0xff]  ;;  %v520_v20 = vpack.c.bf16 %v196_v10, %v192_v9  ;;  %908 = vmatpush.bf16.msra.mxu2 %v560_v14  ;;  %v105_v9 = vld [vmem:[%s4738_s1 + $0x1d8] sm:$0xff] }
  0xba   :  { %v68_v15 = vld [vmem:[%s4738_s1 + $0xb0] sm:$0xff]  ;;  %v109_v10 = vld [vmem:[%s4738_s1 + $0x1f8] sm:$0xff] }
  0xbb   :  { %v136_v16 = vld [vmem:[%s4738_s1 + $0x2d0] sm:$0xff]  ;;  %v456_v23 = vpack.c.bf16 %v68_v15, %v64_v13  ;;  %897 = vmatpush.bf16.msrb.mxu0 %v520_v20  ;;  %v509_v13 = vpack.c.bf16 %v173_v4, %v169_v3  ;;  %v73_v3 = vld [vmem:[%s4738_s1 + $0xd8] sm:$0xff] }
  0xbc   :  { %v140_v17 = vld [vmem:[%s4738_s1 + $0x2f0] sm:$0xff]  ;;  %v77_v4 = vld [vmem:[%s4738_s1 + $0xf8] sm:$0xff] }
  0xbd   :  { %v264_v18 = vld [vmem:[%s4738_s1 + $0x6d0] sm:$0xff]  ;;  %v492_v24 = vpack.c.bf16 %v140_v17, %v136_v16  ;;  %871 = vmatpush.bf16.msrb.mxu1 %v456_v23  ;;  %v161_v16 = vld [vmem:[%s4738_s1 + $0x398] sm:$0xff] }
  0xbe   :  { %v268_v19 = vld [vmem:[%s4738_s1 + $0x6f0] sm:$0xff]  ;;  %v165_v17 = vld [vmem:[%s4738_s1 + $0x3b8] sm:$0xff] }
  0xbf   :  { %v184_v21 = vld [vmem:[%s4738_s1 + $0x450] sm:$0xff]  ;;  %v556_v26 = vpack.c.bf16 %v268_v19, %v264_v18  ;;  %883 = vmatpush.bf16.msra.mxu3 %v492_v24  ;;  %v477_v19 = vpack.c.bf16 %v109_v10, %v105_v9  ;;  %v97_v24 = vld [vmem:[%s4738_s1 + $0x198] sm:$0xff]  ;;  %v461_v10 = vpack.c.bf16 %v77_v4, %v73_v3 }
  0xc0   :  { %v188_v22 = vld [vmem:[%s4738_s1 + $0x470] sm:$0xff]  ;;  %v221_v3 = vld [vmem:[%s4738_s1 + $0x578] sm:$0xff] }
  0xc1   :  { %v56_v25 = vld [vmem:[%s4738_s1 + $0x50] sm:$0xff]  ;;  %v516_v32 = vpack.c.bf16 %v188_v22, %v184_v21  ;;  %909 = vmatpush.bf16.msra.mxu2 %v556_v26  ;;  %v505_v26 = vpack.c.bf16 %v165_v17, %v161_v16  ;;  %v69_v16 = vld [vmem:[%s4738_s1 + $0xb8] sm:$0xff] }
  0xc2   :  { %v60_v27 = vld [vmem:[%s4738_s1 + $0x70] sm:$0xff]  ;;  %v289_v4 = vld [vmem:[%s4738_s1 + $0x798] sm:$0xff] }
  0xc3   :  { %v128_v28 = vld [vmem:[%s4738_s1 + $0x290] sm:$0xff]  ;;  %v452_v36 = vpack.c.bf16 %v60_v27, %v56_v25  ;;  %898 = vmatpush.bf16.msrb.mxu0 %v516_v32  ;;  %v101_v25 = vld [vmem:[%s4738_s1 + $0x1b8] sm:$0xff] }
  0xc4   :  { %v132_v29 = vld [vmem:[%s4738_s1 + $0x2b0] sm:$0xff] }
  0xc5   :  { %v256_v30 = vld [vmem:[%s4738_s1 + $0x690] sm:$0xff]  ;;  %v488_v37 = vpack.c.bf16 %v132_v29, %v128_v28  ;;  %872 = vmatpush.bf16.msrb.mxu1 %v452_v36  ;;  %v153_v28 = vld [vmem:[%s4738_s1 + $0x358] sm:$0xff] }
  0xc6   :  { %v260_v31 = vld [vmem:[%s4738_s1 + $0x6b0] sm:$0xff]  ;;  %v157_v29 = vld [vmem:[%s4738_s1 + $0x378] sm:$0xff] }
  0xc7   :  { %v48_v33 = vld [vmem:[%s4738_s1 + $0x10] sm:$0xff]  ;;  %v552_v43 = vpack.c.bf16 %v260_v31, %v256_v30  ;;  %884 = vmatpush.bf16.msra.mxu3 %v488_v37  ;;  %v473_v31 = vpack.c.bf16 %v101_v25, %v97_v24  ;;  %v89_v36 = vld [vmem:[%s4738_s1 + $0x158] sm:$0xff] }
  0xc8   :  { %v176_v34 = vld [vmem:[%s4738_s1 + $0x410] sm:$0xff]  ;;  %v93_v37 = vld [vmem:[%s4738_s1 + $0x178] sm:$0xff] }
  0xc9   :  { %v180_v35 = vld [vmem:[%s4738_s1 + $0x430] sm:$0xff]  ;;  %910 = vmatpush.bf16.msra.mxu2 %v552_v43  ;;  %v149_v43 = vld [vmem:[%s4738_s1 + $0x338] sm:$0xff] }
  0xca   :  { %v52_v40 = vld [vmem:[%s4738_s1 + $0x30] sm:$0xff]  ;;  %v512_v50 = vpack.c.bf16 %v180_v35, %v176_v34 }
  0xcb   :  { %v440_v41 = vld [vmem:[%s4738_s1 + $0xc50] sm:$0xff]  ;;  %v448_v56 = vpack.c.bf16 %v52_v40, %v48_v33  ;;  %v501_v40 = vpack.c.bf16 %v157_v29, %v153_v28  ;;  %v61_v28 = vld [vmem:[%s4738_s1 + $0x78] sm:$0xff] }
  0xcc   :  { %v444_v42 = vld [vmem:[%s4738_s1 + $0xc70] sm:$0xff]  ;;  %899 = vmatpush.bf16.msrb.mxu0 %v512_v50  ;;  %v81_v50 = vld [vmem:[%s4738_s1 + $0x118] sm:$0xff] }
  0xcd   :  { %v120_v44 = vld [vmem:[%s4738_s1 + $0x250] sm:$0xff]  ;;  %v644_v51 = vpack.c.bf16 %v444_v42, %v440_v41  ;;  %873 = vmatpush.bf16.msrb.mxu1 %v448_v56  ;;  %v145_v42 = vld [vmem:[%s4738_s1 + $0x318] sm:$0xff] }
  0xce   :  { %v124_v45 = vld [vmem:[%s4738_s1 + $0x270] sm:$0xff]  ;;  %v137_v56 = vld [vmem:[%s4738_s1 + $0x2d8] sm:$0xff] }
  0xcf   :  { %v248_v46 = vld [vmem:[%s4738_s1 + $0x650] sm:$0xff]  ;;  %v484_v57 = vpack.c.bf16 %v124_v45, %v120_v44  ;;  %900 = vmatmul.bf16.vlgmr.msrb.gmra.mxu0 %v2433_v55  ;;  %v469_v45 = vpack.c.bf16 %v93_v37, %v89_v36  ;;  %v233_v29 = vld [vmem:[%s4738_s1 + $0x5d8] sm:$0xff] }
  0xd0   :  { %v252_v47 = vld [vmem:[%s4738_s1 + $0x670] sm:$0xff]  ;;  %950 = vmatpush.bf16.msra.mxu0 %v644_v51  ;;  %874 = vmatmul.bf16.vlgmr.msrb.gmra.mxu1 %v2453_v62  ;;  %v85_v51 = vld [vmem:[%s4738_s1 + $0x138] sm:$0xff] }
  0xd1   :  { %v360_v48 = vld [vmem:[%s4738_s1 + $0x9d0] sm:$0xff]  ;;  %v548_v61 = vpack.c.bf16 %v252_v47, %v248_v46  ;;  %885 = vmatpush.bf16.msra.mxu3 %v484_v57  ;;  %v141_v57 = vld [vmem:[%s4738_s1 + $0x2f8] sm:$0xff] }
  0xd2   :  { %v364_v49 = vld [vmem:[%s4738_s1 + $0x9f0] sm:$0xff] }
  0xd3   :  { %v112_v53 = vld [vmem:[%s4738_s1 + $0x210] sm:$0xff]  ;;  %v604_v0 = vpack.c.bf16 %v364_v49, %v360_v48  ;;  %911 = vmatpush.bf16.msra.mxu2 %v548_v61 }
  0xd4   :  { %v116_v54 = vld [vmem:[%s4738_s1 + $0x230] sm:$0xff] }
  0xd5   :  { %v240_v58 = vld [vmem:[%s4738_s1 + $0x610] sm:$0xff]  ;;  %v480_v12 = vpack.c.bf16 %v116_v54, %v112_v53  ;;  %918 = vmatpush.bf16.msra.mxu1 %v604_v0  ;;  %v497_v53 = vpack.c.bf16 %v149_v43, %v145_v42  ;;  %v429_v42 = vld [vmem:[%s4738_s1 + $0xbf8] sm:$0xff] }
  0xd6   :  { %v432_v59 = vld [vmem:[%s4738_s1 + $0xc10] sm:$0xff] }
  0xd7   :  { %v436_v60 = vld [vmem:[%s4738_s1 + $0xc30] sm:$0xff]  ;;  %886 = vmatpush.bf16.msra.mxu3 %v480_v12 }
  0xd8   :  { %v244_v2 = vld [vmem:[%s4738_s1 + $0x630] sm:$0xff]  ;;  %v640_v11 = vpack.c.bf16 %v436_v60, %v432_v59  ;;  %v465_v59 = vpack.c.bf16 %v85_v51, %v81_v50  ;;  %v361_v51 = vld [vmem:[%s4738_s1 + $0x9d8] sm:$0xff] }
  0xd9   :  { %v352_v5 = vld [vmem:[%s4738_s1 + $0x990] sm:$0xff]  ;;  %v544_v14 = vpack.c.bf16 %v244_v2, %v240_v58 }
  0xda   :  { %v356_v6 = vld [vmem:[%s4738_s1 + $0x9b0] sm:$0xff]  ;;  %951 = vmatpush.bf16.msra.mxu0 %v640_v11  ;;  %887 = vmatmul.bf16.vlgmr.msra.gmra.mxu3 %v2457_v1 }
  0xdb   :  { %v424_v7 = vld [vmem:[%s4738_s1 + $0xbd0] sm:$0xff]  ;;  %v600_v15 = vpack.c.bf16 %v356_v6, %v352_v5  ;;  %912 = vmatpush.bf16.msra.mxu2 %v544_v14  ;;  %v493_v5 = vpack.c.bf16 %v141_v57, %v137_v56 }
  0xdc   :  { %v428_v8 = vld [vmem:[%s4738_s1 + $0xbf0] sm:$0xff] }
  0xdd   :  { %v636_v18 = vpack.c.bf16 %v428_v8, %v424_v7  ;;  %v344_v20 = vld [vmem:[%s4738_s1 + $0x950] sm:$0xff]  ;;  %919 = vmatpush.bf16.msra.mxu1 %v600_v15  ;;  %v129_v7 = vld [vmem:[%s4738_s1 + $0x298] sm:$0xff] }
  0xde   :  { %v348_v21 = vld [vmem:[%s4738_s1 + $0x970] sm:$0xff]  ;;  %970 = vmatpush.bf16.msrb.mxu0 %v509_v13  ;;  %913 = vmatmul.bf16.vlgmr.msra.gmra.mxu2 %v2455_v63  ;;  %v133_v8 = vld [vmem:[%s4738_s1 + $0x2b8] sm:$0xff] }
  0xdf   :  { %v416_v22 = vld [vmem:[%s4738_s1 + $0xb90] sm:$0xff]  ;;  %v596_v27 = vpack.c.bf16 %v348_v21, %v344_v20  ;;  %931 = vmatpush.bf16.msrb.mxu3 %v636_v18  ;;  %957 = vmatpush.bf16.msrb.mxu2 %v477_v19  ;;  %v65_v15 = vld [vmem:[%s4738_s1 + $0x98] sm:$0xff]  ;;  %v489_v17 = vpack.c.bf16 %v133_v8, %v129_v7 }
  0xe0   :  { %v420_v23 = vld [vmem:[%s4738_s1 + $0xbb0] sm:$0xff]  ;;  %2087 = vmatmul.msk.bf16.vlgmr.msra.gmra.mxu0 %vm680_vm0, %v2562_v52  ;;  %v121_v19 = vld [vmem:[%s4738_s1 + $0x258] sm:$0xff] }
  0xe1   :  { %v632_v30 = vpack.c.bf16 %v420_v23, %v416_v22  ;;  %v336_v32 = vld [vmem:[%s4738_s1 + $0x910] sm:$0xff]  ;;  %920 = vmatpush.bf16.msra.mxu1 %v596_v27  ;;  %v125_v20 = vld [vmem:[%s4738_s1 + $0x278] sm:$0xff]  ;;  %v457_v22 = vpack.c.bf16 %v69_v16, %v65_v15 }
  0xe2   :  { %v340_v33 = vld [vmem:[%s4738_s1 + $0x930] sm:$0xff]  ;;  %971 = vmatpush.bf16.msrb.mxu0 %v505_v26  ;;  %v57_v27 = vld [vmem:[%s4738_s1 + $0x58] sm:$0xff] }
  0xe3   :  { %v408_v34 = vld [vmem:[%s4738_s1 + $0xb50] sm:$0xff]  ;;  %v592_v41 = vpack.c.bf16 %v340_v33, %v336_v32  ;;  %932 = vmatpush.bf16.msrb.mxu3 %v632_v30  ;;  %958 = vmatpush.bf16.msrb.mxu2 %v473_v31  ;;  %v237_v30 = vld [vmem:[%s4738_s1 + $0x5f8] sm:$0xff]  ;;  %v485_v31 = vpack.c.bf16 %v125_v20, %v121_v19  ;;  %v453_v37 = vpack.c.bf16 %v61_v28, %v57_v27 }
  0xe4   :  { %v412_v35 = vld [vmem:[%s4738_s1 + $0xb70] sm:$0xff]  ;;  %v541_v43 = vpack.c.bf16 %v237_v30, %v233_v29  ;;  %v357_v7 = vld [vmem:[%s4738_s1 + $0x9b8] sm:$0xff]  ;;  %v3345_v29 = vpop.f32.mrf.mxu1 }
  0xe5   :  { %v628_v44 = vpack.c.bf16 %v412_v35, %v408_v34  ;;  %v328_v46 = vld [vmem:[%s4738_s1 + $0x8d0] sm:$0xff]  ;;  %921 = vmatpush.bf16.msra.mxu1 %v592_v41  ;;  %v113_v34 = vld [vmem:[%s4738_s1 + $0x218] sm:$0xff] }
  0xe6   :  { %v332_v47 = vld [vmem:[%s4738_s1 + $0x8f0] sm:$0xff]  ;;  %972 = vmatpush.bf16.msrb.mxu0 %v501_v40  ;;  %v117_v35 = vld [vmem:[%s4738_s1 + $0x238] sm:$0xff] }
  0xe7   :  { %v400_v48 = vld [vmem:[%s4738_s1 + $0xb10] sm:$0xff]  ;;  %v588_v54 = vpack.c.bf16 %v332_v47, %v328_v46  ;;  %933 = vmatpush.bf16.msrb.mxu3 %v628_v44  ;;  %959 = vmatpush.bf16.msrb.mxu2 %v469_v45  ;;  %v425_v41 = vld [vmem:[%s4738_s1 + $0xbd8] sm:$0xff]  ;;  %v481_v50 = vpack.c.bf16 %v117_v35, %v113_v34 }
  0xe8   :  { %v404_v49 = vld [vmem:[%s4738_s1 + $0xb30] sm:$0xff]  ;;  %v49_v44 = vld [vmem:[%s4738_s1 + $0x18] sm:$0xff] }
  0xe9   :  { %v624_v58 = vpack.c.bf16 %v404_v49, %v400_v48  ;;  %v320_v60 = vld [vmem:[%s4738_s1 + $0x890] sm:$0xff]  ;;  %922 = vmatpush.bf16.msra.mxu1 %v588_v54  ;;  %v53_v45 = vld [vmem:[%s4738_s1 + $0x38] sm:$0xff]  ;;  %v637_v54 = vpack.c.bf16 %v429_v42, %v425_v41 }
  0xea   :  { %v324_v61 = vld [vmem:[%s4738_s1 + $0x8b0] sm:$0xff]  ;;  %973 = vmatpush.bf16.msrb.mxu0 %v497_v53  ;;  %v225_v46 = vld [vmem:[%s4738_s1 + $0x598] sm:$0xff]  ;;  %v449_v57 = vpack.c.bf16 %v53_v45, %v49_v44 }
  0xeb   :  { %v392_v0 = vld [vmem:[%s4738_s1 + $0xad0] sm:$0xff]  ;;  %v584_v6 = vpack.c.bf16 %v324_v61, %v320_v60  ;;  %934 = vmatpush.bf16.msrb.mxu3 %v624_v58  ;;  %960 = vmatpush.bf16.msrb.mxu2 %v465_v59  ;;  %v229_v47 = vld [vmem:[%s4738_s1 + $0x5b8] sm:$0xff] }
  0xec   :  { %v396_v2 = vld [vmem:[%s4738_s1 + $0xaf0] sm:$0xff]  ;;  %v297_v48 = vld [vmem:[%s4738_s1 + $0x7d8] sm:$0xff]  ;;  %v537_v60 = vpack.c.bf16 %v229_v47, %v225_v46 }
  0xed   :  { %v620_v9 = vpack.c.bf16 %v396_v2, %v392_v0  ;;  %v312_v11 = vld [vmem:[%s4738_s1 + $0x850] sm:$0xff]  ;;  %923 = vmatpush.bf16.msra.mxu1 %v584_v6  ;;  %v301_v49 = vld [vmem:[%s4738_s1 + $0x7f8] sm:$0xff] }
  0xee   :  { %v316_v12 = vld [vmem:[%s4738_s1 + $0x870] sm:$0xff]  ;;  %974 = vmatpush.bf16.msrb.mxu0 %v493_v5  ;;  %v365_v53 = vld [vmem:[%s4738_s1 + $0x9f8] sm:$0xff]  ;;  %v573_v61 = vpack.c.bf16 %v301_v49, %v297_v48  ;;  %v3379_v48 = vpop.f32.mrf.mxu3 }
  0xef   :  { %v384_v13 = vld [vmem:[%s4738_s1 + $0xa90] sm:$0xff]  ;;  %v580_v18 = vpack.c.bf16 %v316_v12, %v312_v11  ;;  %935 = vmatpush.bf16.msrb.mxu3 %v620_v9  ;;  %961 = vmatpush.bf16.msrb.mxu2 %v461_v10  ;;  %v417_v58 = vld [vmem:[%s4738_s1 + $0xb98] sm:$0xff]  ;;  %v605_v2 = vpack.c.bf16 %v365_v53, %v361_v51 }
  0xf0   :  { %v388_v14 = vld [vmem:[%s4738_s1 + $0xab0] sm:$0xff]  ;;  %v421_v59 = vld [vmem:[%s4738_s1 + $0xbb8] sm:$0xff] }
  0xf1   :  { %v616_v21 = vpack.c.bf16 %v388_v14, %v384_v13  ;;  %v304_v23 = vld [vmem:[%s4738_s1 + $0x810] sm:$0xff]  ;;  %924 = vmatpush.bf16.msra.mxu1 %v580_v18  ;;  %v217_v0 = vld [vmem:[%s4738_s1 + $0x558] sm:$0xff]  ;;  %v633_v8 = vpack.c.bf16 %v421_v59, %v417_v58 }
  0xf2   :  { %v308_v24 = vld [vmem:[%s4738_s1 + $0x830] sm:$0xff]  ;;  %975 = vmatpush.bf16.msrb.mxu0 %v489_v17  ;;  %v293_v5 = vld [vmem:[%s4738_s1 + $0x7b8] sm:$0xff]  ;;  %v533_v11 = vpack.c.bf16 %v221_v3, %v217_v0 }
  0xf3   :  { %v376_v25 = vld [vmem:[%s4738_s1 + $0xa50] sm:$0xff]  ;;  %v576_v32 = vpack.c.bf16 %v308_v24, %v304_v23  ;;  %936 = vmatpush.bf16.msrb.mxu3 %v616_v21  ;;  %962 = vmatpush.bf16.msrb.mxu2 %v457_v22  ;;  %v353_v6 = vld [vmem:[%s4738_s1 + $0x998] sm:$0xff]  ;;  %v569_v12 = vpack.c.bf16 %v293_v5, %v289_v4 }
  0xf4   :  { %v380_v26 = vld [vmem:[%s4738_s1 + $0xa70] sm:$0xff]  ;;  %v409_v9 = vld [vmem:[%s4738_s1 + $0xb58] sm:$0xff]  ;;  %v601_v14 = vpack.c.bf16 %v357_v7, %v353_v6 }
  0xf5   :  { %v368_v33 = vld [vmem:[%s4738_s1 + $0xa10] sm:$0xff]  ;;  %v612_v36 = vpack.c.bf16 %v380_v26, %v376_v25  ;;  %925 = vmatpush.bf16.msra.mxu1 %v576_v32  ;;  %v413_v10 = vld [vmem:[%s4738_s1 + $0xb78] sm:$0xff]  ;;  %v3334_v25 = vpop.f32.mrf.mxu0 }
  0xf6   :  { %v372_v40 = vld [vmem:[%s4738_s1 + $0xa30] sm:$0xff]  ;;  %976 = vmatpush.bf16.msrb.mxu0 %v485_v31  ;;  %v209_v13 = vld [vmem:[%s4738_s1 + $0x518] sm:$0xff]  ;;  %v629_v20 = vpack.c.bf16 %v413_v10, %v409_v9 }
  0xf7   :  { %937 = vmatpush.bf16.msrb.mxu3 %v612_v36  ;;  %963 = vmatpush.bf16.msrb.mxu2 %v453_v37  ;;  %v608_v56 = vpack.c.bf16 %v372_v40, %v368_v33  ;;  %v213_v15 = vld [vmem:[%s4738_s1 + $0x538] sm:$0xff]  ;;  %v3362_v40 = vpop.f32.mrf.mxu2 }
  0xf8   :  { %926 = vmatmul.bf16.vlgmr.msra.gmra.mxu1 %v2650_v38  ;;  %v281_v16 = vld [vmem:[%s4738_s1 + $0x758] sm:$0xff]  ;;  %v529_v22 = vpack.c.bf16 %v213_v15, %v209_v13 }
  0xf9   :  { %983 = vmatpush.bf16.msrb.mxu1 %v541_v43  ;;  %v285_v17 = vld [vmem:[%s4738_s1 + $0x778] sm:$0xff] }
  0xfa   :  { %977 = vmatpush.bf16.msrb.mxu0 %v481_v50  ;;  %v345_v18 = vld [vmem:[%s4738_s1 + $0x958] sm:$0xff]  ;;  %v565_v23 = vpack.c.bf16 %v285_v17, %v281_v16 }
  0xfb   :  { %938 = vmatpush.bf16.msrb.mxu3 %v608_v56  ;;  %964 = vmatpush.bf16.msrb.mxu2 %v449_v57  ;;  %v349_v19 = vld [vmem:[%s4738_s1 + $0x978] sm:$0xff] }
  0xfc   :  { %v401_v21 = vld [vmem:[%s4738_s1 + $0xb18] sm:$0xff] }
  0xfd   :  { %984 = vmatpush.bf16.msrb.mxu1 %v537_v60  ;;  %978 = vmatmul.bf16.vlgmr.msrb.gmra.mxu0 %v2457_v1  ;;  %v405_v1 = vld [vmem:[%s4738_s1 + $0xb38] sm:$0xff]  ;;  %v695_v56 = vpop.f32.mrf.mxu0 }
  0xfe   :  { %1022 = vmatpush.bf16.msra.mxu0 %v637_v54  ;;  %939 = vmatmul.bf16.vlgmr.msrb.gmra.mxu3 %v2652_v39  ;;  %v201_v24 = vld [vmem:[%s4738_s1 + $0x4d8] sm:$0xff]  ;;  %v625_v32 = vpack.c.bf16 %v405_v1, %v401_v21  ;;  %v3444_v1 = vld [vmem:[%s4739_s2] sm:$0xf] }
  0xff   :  { %996 = vmatpush.bf16.msra.mxu3 %v573_v61  ;;  %1009 = vmatpush.bf16.msra.mxu2 %v605_v2  ;;  %v205_v26 = vld [vmem:[%s4738_s1 + $0x4f8] sm:$0xff]  ;;  %v708_v61 = vpop.f32.mrf.mxu1  ;;  %v721_v10 = vpop.f32.mrf.mxu2 }
 0x100   :  { %965 = vmatmul.bf16.vlgmr.msrb.gmra.mxu2 %v2453_v62  ;;  %v597_v62 = vpack.c.bf16 %v349_v19, %v345_v18  ;;  %v273_v27 = vld [vmem:[%s4738_s1 + $0x718] sm:$0xff]  ;;  %v525_v35 = vpack.c.bf16 %v205_v26, %v201_v24  ;;  %v734_v19 = vpop.f32.mrf.mxu3 }
 0x101   :  { %985 = vmatpush.bf16.msrb.mxu1 %v533_v11  ;;  %v277_v28 = vld [vmem:[%s4738_s1 + $0x738] sm:$0xff] }
 0x102   :  { %1023 = vmatpush.bf16.msra.mxu0 %v633_v8  ;;  %v337_v30 = vld [vmem:[%s4738_s1 + $0x918] sm:$0xff]  ;;  %v561_v36 = vpack.c.bf16 %v277_v28, %v273_v27 }
 0x103   :  { %997 = vmatpush.bf16.msra.mxu3 %v569_v12  ;;  %1010 = vmatpush.bf16.msra.mxu2 %v601_v14  ;;  %v341_v31 = vld [vmem:[%s4738_s1 + $0x938] sm:$0xff] }
 0x104   :  { %v393_v33 = vld [vmem:[%s4738_s1 + $0xad8] sm:$0xff]  ;;  %v593_v41 = vpack.c.bf16 %v341_v31, %v337_v30  ;;  %v1112_v31 = vld [vmem:[%s4740_s3 + $0x1c0] sm:$0xff] }
 0x105   :  { %v397_v34 = vld [vmem:[%s4738_s1 + $0xaf8] sm:$0xff]  ;;  %986 = vmatpush.bf16.msrb.mxu1 %v529_v22 }
 0x106   :  { %1024 = vmatpush.bf16.msra.mxu0 %v629_v20  ;;  %v193_v37 = vld [vmem:[%s4738_s1 + $0x498] sm:$0xff]  ;;  %v621_v47 = vpack.c.bf16 %v397_v34, %v393_v33 }
 0x107   :  { %998 = vmatpush.bf16.msra.mxu3 %v565_v23  ;;  %1011 = vmatpush.bf16.msra.mxu2 %v597_v62  ;;  %v197_v42 = vld [vmem:[%s4738_s1 + $0x4b8] sm:$0xff]  ;;  %v758_v61 = vpop.f32.mrf.mxu1 }
 0x108   :  { %v265_v43 = vld [vmem:[%s4738_s1 + $0x6d8] sm:$0xff]  ;;  %v521_v51 = vpack.c.bf16 %v197_v42, %v193_v37  ;;  %v1180_v42 = vld [vmem:[%s4740_s3 + $0x3e0] sm:$0xff]  ;;  %v3529_v10 = vpop.f32.mrf.mxu3 }
 0x109   :  { %v269_v44 = vld [vmem:[%s4738_s1 + $0x6f8] sm:$0xff]  ;;  %987 = vmatpush.bf16.msrb.mxu1 %v525_v35 }
 0x10a   :  { %1025 = vmatpush.bf16.msra.mxu0 %v625_v32  ;;  %v329_v45 = vld [vmem:[%s4738_s1 + $0x8d8] sm:$0xff]  ;;  %v557_v53 = vpack.c.bf16 %v269_v44, %v265_v43  ;;  %v1116_v32 = vld [vmem:[%s4740_s3 + $0x1e0] sm:$0xff] }
 0x10b   :  { %v333_v46 = vld [vmem:[%s4738_s1 + $0x8f8] sm:$0xff]  ;;  %999 = vmatpush.bf16.msra.mxu3 %v561_v36  ;;  %1012 = vmatpush.bf16.msra.mxu2 %v593_v41  ;;  %v648_v36 = vperm.slane %v3444_v1, 0  ;;  %v1176_v41 = vld [vmem:[%s4740_s3 + $0x3c0] sm:$0xff]  ;;  %v1336_v44 = vpack.c.bf16 %v1116_v32, %v1112_v31 }
 0x10c   :  { %v385_v49 = vld [vmem:[%s4738_s1 + $0xa98] sm:$0xff]  ;;  %v589_v57 = vpack.c.bf16 %v333_v46, %v329_v45  ;;  %v1104_v45 = vld [vmem:[%s4740_s3 + $0x180] sm:$0xff] }
 0x10d   :  { %v389_v50 = vld [vmem:[%s4738_s1 + $0xab8] sm:$0xff]  ;;  %988 = vmatpush.bf16.msrb.mxu1 %v521_v51  ;;  %v1108_v46 = vld [vmem:[%s4740_s3 + $0x1a0] sm:$0xff]  ;;  %v694_v51 = vadd.f32 %v3334_v25, %v648_v36  ;;  %v1113_v36 = vld [vmem:[%s4740_s3 + $0x1c8] sm:$0xff] }
 0x10e   :  { %v185_v54 = vld [vmem:[%s4738_s1 + $0x458] sm:$0xff]  ;;  %1026 = vmatpush.bf16.msra.mxu0 %v621_v47  ;;  %v617_v3 = vpack.c.bf16 %v389_v50, %v385_v49  ;;  %v3483_v49 = vpop.f32.mrf.mxu2  ;;  %v1368_v50 = vpack.c.bf16 %v1180_v42, %v1176_v41  ;;  %v1332_v56 = vpack.c.bf16 %v1108_v46, %v1104_v45  ;;  %v1100_v25 = vld [vmem:[%s4740_s3 + $0x160] sm:$0xff] }
 0x10f   :  { %v189_v58 = vld [vmem:[%s4738_s1 + $0x478] sm:$0xff]  ;;  %1000 = vmatpush.bf16.msra.mxu3 %v557_v53  ;;  %1013 = vmatpush.bf16.msra.mxu2 %v589_v57  ;;  %v1168_v53 = vld [vmem:[%s4740_s3 + $0x380] sm:$0xff] }
 0x110   :  { %v257_v59 = vld [vmem:[%s4738_s1 + $0x698] sm:$0xff]  ;;  %v517_v6 = vpack.c.bf16 %v189_v58, %v185_v54  ;;  %v1172_v54 = vld [vmem:[%s4740_s3 + $0x3a0] sm:$0xff]  ;;  %v707_v58 = vadd.f32 %v3345_v29, %v694_v51  ;;  %v1181_v51 = vld [vmem:[%s4740_s3 + $0x3e8] sm:$0xff] }
 0x111   :  { %v261_v60 = vld [vmem:[%s4738_s1 + $0x6b8] sm:$0xff]  ;;  %v1364_v57 = vpack.c.bf16 %v1172_v54, %v1168_v53  ;;  %v1132_v31 = vld [vmem:[%s4740_s3 + $0x260] sm:$0xff] }
 0x112   :  { %v321_v0 = vld [vmem:[%s4738_s1 + $0x898] sm:$0xff]  ;;  %v553_v7 = vpack.c.bf16 %v261_v60, %v257_v59  ;;  %1027 = vmatpush.bf16.msra.mxu0 %v617_v3  ;;  %989 = vmatpush.bf16.msrb.mxu1 %v517_v6  ;;  %v1164_v59 = vld [vmem:[%s4740_s3 + $0x360] sm:$0xff]  ;;  %v745_v60 = vpop.f32.mrf.mxu0  ;;  %v720_v3 = vadd.f32 %v3362_v40, %v707_v58 }
 0x113   :  { %v325_v2 = vld [vmem:[%s4738_s1 + $0x8b8] sm:$0xff]  ;;  %v1156_v6 = vld [vmem:[%s4740_s3 + $0x320] sm:$0xff] }
 0x114   :  { %v377_v4 = vld [vmem:[%s4738_s1 + $0xa58] sm:$0xff]  ;;  %v585_v11 = vpack.c.bf16 %v325_v2, %v321_v0  ;;  %1001 = vmatpush.bf16.msra.mxu3 %v553_v7  ;;  %v1080_v7 = vld [vmem:[%s4740_s3 + $0xc0] sm:$0xff]  ;;  %v733_v40 = vadd.f32 %v3379_v48, %v720_v3 }
 0x115   :  { %v381_v5 = vld [vmem:[%s4738_s1 + $0xa78] sm:$0xff]  ;;  %v1072_v48 = vld [vmem:[%s4740_s3 + $0x80] sm:$0xff] }
 0x116   :  { %v177_v8 = vld [vmem:[%s4738_s1 + $0x418] sm:$0xff]  ;;  %v613_v16 = vpack.c.bf16 %v381_v5, %v377_v4  ;;  %1014 = vmatpush.bf16.msra.mxu2 %v585_v11  ;;  %v773_v29 = vpop.f32.mrf.mxu2  ;;  %v1152_v5 = vld [vmem:[%s4740_s3 + $0x300] sm:$0xff] }
 0x117   :  { %v181_v9 = vld [vmem:[%s4738_s1 + $0x438] sm:$0xff]  ;;  %v1120_v45 = vld [vmem:[%s4740_s3 + $0x200] sm:$0xff]  ;;  %v1101_v29 = vld [vmem:[%s4740_s3 + $0x168] sm:$0xff] }
 0x118   :  { %v249_v12 = vld [vmem:[%s4738_s1 + $0x658] sm:$0xff]  ;;  %v513_v22 = vpack.c.bf16 %v181_v9, %v177_v8  ;;  %1028 = vmatpush.bf16.msra.mxu0 %v613_v16  ;;  %v1084_v8 = vld [vmem:[%s4740_s3 + $0xe0] sm:$0xff]  ;;  %v1356_v9 = vpack.c.bf16 %v1156_v6, %v1152_v5  ;;  %v746_v16 = vadd.f32 %v745_v60, %v733_v40 }
 0x119   :  { %v253_v13 = vld [vmem:[%s4738_s1 + $0x678] sm:$0xff]  ;;  %v1320_v11 = vpack.c.bf16 %v1084_v8, %v1080_v7  ;;  %v1124_v46 = vld [vmem:[%s4740_s3 + $0x220] sm:$0xff]  ;;  %v1165_v7 = vld [vmem:[%s4740_s3 + $0x368] sm:$0xff] }
 0x11a   :  { %v313_v14 = vld [vmem:[%s4738_s1 + $0x858] sm:$0xff]  ;;  %v549_v23 = vpack.c.bf16 %v253_v13, %v249_v12  ;;  %990 = vmatpush.bf16.msrb.mxu1 %v513_v22  ;;  %v1144_v12 = vld [vmem:[%s4740_s3 + $0x2c0] sm:$0xff] }
 0x11b   :  { %v317_v15 = vld [vmem:[%s4738_s1 + $0x878] sm:$0xff]  ;;  %v1148_v13 = vld [vmem:[%s4740_s3 + $0x2e0] sm:$0xff] }
 0x11c   :  { %v441_v17 = vld [vmem:[%s4738_s1 + $0xc58] sm:$0xff]  ;;  %v581_v24 = vpack.c.bf16 %v317_v15, %v313_v14  ;;  %1002 = vmatpush.bf16.msra.mxu3 %v549_v23  ;;  %v747_v14 = vpop.f32.mrf.mxu0  ;;  %v760_v15 = vpop.f32.mrf.mxu1  ;;  %v1140_v22 = vld [vmem:[%s4740_s3 + $0x2a0] sm:$0xff]  ;;  %v759_v23 = vadd.f32 %v758_v61, %v746_v16  ;;  %v1173_v61 = vld [vmem:[%s4740_s3 + $0x3a8] sm:$0xff]  ;;  %v649_v16 = vperm.slane %v3444_v1, 1 }
 0x11d   :  { %v445_v18 = vld [vmem:[%s4738_s1 + $0xc78] sm:$0xff]  ;;  %991 = vmatmul.bf16.vlgmr.msrb.gmra.mxu1 %v2433_v55  ;;  %v1096_v55 = vld [vmem:[%s4740_s3 + $0x140] sm:$0xff]  ;;  %v1153_v15 = vld [vmem:[%s4740_s3 + $0x308] sm:$0xff] }
 0x11e   :  { %v369_v20 = vld [vmem:[%s4738_s1 + $0xa18] sm:$0xff]  ;;  %v645_v28 = vpack.c.bf16 %v445_v18, %v441_v17  ;;  %1015 = vmatpush.bf16.msra.mxu2 %v581_v24  ;;  %v1328_v0 = vpack.c.bf16 %v1100_v25, %v1096_v55  ;;  %v1076_v17 = vld [vmem:[%s4740_s3 + $0xa0] sm:$0xff]  ;;  %v1352_v18 = vpack.c.bf16 %v1148_v13, %v1144_v12  ;;  %v3545_v19 = vpop.f32.mrf.mxu2  ;;  %v772_v32 = vadd.f32 %v3483_v49, %v759_v23  ;;  %v1109_v55 = vld [vmem:[%s4740_s3 + $0x1a8] sm:$0xff] }
 0x11f   :  { %v373_v21 = vld [vmem:[%s4738_s1 + $0xa38] sm:$0xff]  ;;  %v1064_v24 = vld [vmem:[%s4740_s3 + $0x40] sm:$0xff]  ;;  %v1093_v12 = vld [vmem:[%s4740_s3 + $0x128] sm:$0xff] }
 0x120   :  { %v241_v62 = vld [vmem:[%s4738_s1 + $0x618] sm:$0xff]  ;;  %v609_v33 = vpack.c.bf16 %v373_v21, %v369_v20  ;;  %1041 = vmatpush.bf16.msra.mxu1 %v645_v28  ;;  %v1316_v20 = vpack.c.bf16 %v1076_v17, %v1072_v48  ;;  %v1136_v21 = vld [vmem:[%s4740_s3 + $0x280] sm:$0xff]  ;;  %v1048_v49 = vmax.f32 %v772_v32, 0.0  ;;  %v1157_v17 = vld [vmem:[%s4740_s3 + $0x328] sm:$0xff] }
 0x121   :  { %v245_v26 = vld [vmem:[%s4738_s1 + $0x638] sm:$0xff]  ;;  %v1056_v28 = vld [vmem:[%s4740_s3] sm:$0xff] }
 0x122   :  { %v305_v27 = vld [vmem:[%s4738_s1 + $0x818] sm:$0xff]  ;;  %v545_v37 = vpack.c.bf16 %v245_v26, %v241_v62  ;;  %1029 = vmatpush.bf16.msra.mxu0 %v609_v33  ;;  %v1348_v62 = vpack.c.bf16 %v1140_v22, %v1136_v21  ;;  %v786_v26 = vpop.f32.mrf.mxu3  ;;  %v1060_v33 = vld [vmem:[%s4740_s3 + $0x20] sm:$0xff]  ;;  %v1081_v21 = vld [vmem:[%s4740_s3 + $0xc8] sm:$0xff] }
 0x123   :  { %v309_v30 = vld [vmem:[%s4738_s1 + $0x838] sm:$0xff]  ;;  %v1232_v53 = vld [vmem:[%s4740_s3 + $0x580] sm:$0xff]  ;;  %v1085_v22 = vld [vmem:[%s4740_s3 + $0xe8] sm:$0xff]  ;;  %v785_v26 = vadd.f32 %v3529_v10, %v649_v16 }
 0x124   :  { %v433_v34 = vld [vmem:[%s4738_s1 + $0xc18] sm:$0xff]  ;;  %v577_v43 = vpack.c.bf16 %v309_v30, %v305_v27  ;;  %1003 = vmatpush.bf16.msra.mxu3 %v545_v37  ;;  %v1128_v30 = vld [vmem:[%s4740_s3 + $0x240] sm:$0xff]  ;;  %v1117_v37 = vld [vmem:[%s4740_s3 + $0x1e8] sm:$0xff]  ;;  %v810_v5 = vpop.f32.mrf.mxu0 }
 0x125   :  { %v437_v35 = vld [vmem:[%s4738_s1 + $0xc38] sm:$0xff]  ;;  %1030 = vmatmul.bf16.vlgmr.msra.gmra.mxu0 %v2652_v39  ;;  %v1160_v39 = vld [vmem:[%s4740_s3 + $0x340] sm:$0xff]  ;;  %v1344_v42 = vpack.c.bf16 %v1132_v31, %v1128_v30  ;;  %v1077_v10 = vld [vmem:[%s4740_s3 + $0xa8] sm:$0xff] }
 0x126   :  { %v641_v47 = vpack.c.bf16 %v437_v35, %v433_v34  ;;  %1016 = vmatpush.bf16.msra.mxu2 %v577_v43  ;;  %v1360_v2 = vpack.c.bf16 %v1164_v59, %v1160_v39  ;;  %v1240_v34 = vld [vmem:[%s4740_s3 + $0x5c0] sm:$0xff]  ;;  %v799_v43 = vpop.f32.mrf.mxu2  ;;  %v1169_v39 = vld [vmem:[%s4740_s3 + $0x388] sm:$0xff]  ;;  %v3611_v59 = vpack.c.bf16 %v1048_v49, %v1048_v49  ;;  %v1110_v16 = vld [vmem:[%s4740_s3 + $0x1b0] sm:$0xff] }
 0x127   :  { %1004 = vmatmul.bf16.vlgmr.msra.gmra.mxu3 %v2455_v63  ;;  %v1088_v63 = vld [vmem:[%s4740_s3 + $0x100] sm:$0xff]  ;;  %v1365_v3 = vpack.c.bf16 %v1173_v61, %v1169_v39  ;;  %v1061_v39 = vld [vmem:[%s4740_s3 + $0x28] sm:$0xff] }
 0x128   :  { %1463 = vmatpush.bf16.msrb.mxu3 %v1336_v44  ;;  %1042 = vmatpush.bf16.msra.mxu1 %v641_v47  ;;  %v1244_v35 = vld [vmem:[%s4740_s3 + $0x5e0] sm:$0xff]  ;;  %v1308_v44 = vpack.c.bf16 %v1060_v33, %v1056_v28  ;;  %v1177_v47 = vld [vmem:[%s4740_s3 + $0x3c8] sm:$0xff] }
 0x129   :  { %1017 = vmatmul.bf16.vlgmr.msra.gmra.mxu2 %v2650_v38  ;;  %v1092_v38 = vld [vmem:[%s4740_s3 + $0x120] sm:$0xff]  ;;  %v1400_v41 = vpack.c.bf16 %v1244_v35, %v1240_v34  ;;  %v1369_v58 = vpack.c.bf16 %v1181_v51, %v1177_v47  ;;  %v1149_v28 = vld [vmem:[%s4740_s3 + $0x2e8] sm:$0xff] }
 0x12a   :  { %v1324_v4 = vpack.c.bf16 %v1092_v38, %v1088_v63  ;;  %v1236_v54 = vld [vmem:[%s4740_s3 + $0x5a0] sm:$0xff]  ;;  %v1097_v38 = vld [vmem:[%s4740_s3 + $0x148] sm:$0xff] }
 0x12b   :  { %1489 = vmatpush.bf16.msrb.mxu2 %v1400_v41  ;;  %v1396_v25 = vpack.c.bf16 %v1236_v54, %v1232_v53  ;;  %v1228_v63 = vld [vmem:[%s4740_s3 + $0x560] sm:$0xff]  ;;  %v1329_v6 = vpack.c.bf16 %v1101_v29, %v1097_v38  ;;  %v1073_v33 = vld [vmem:[%s4740_s3 + $0x88] sm:$0xff]  ;;  %v798_v41 = vadd.f32 %v3545_v19, %v785_v26  ;;  %v1114_v38 = vld [vmem:[%s4740_s3 + $0x1d0] sm:$0xff] }
 0x12c   :  { %1476 = vmatpush.bf16.msrb.mxu1 %v1368_v50  ;;  %1464 = vmatpush.bf16.msrb.mxu3 %v1332_v56  ;;  %v1337_v50 = vpack.c.bf16 %v1117_v37, %v1113_v36  ;;  %v1105_v56 = vld [vmem:[%s4740_s3 + $0x188] sm:$0xff]  ;;  %v1216_v8 = vld [vmem:[%s4740_s3 + $0x500] sm:$0xff]  ;;  %v812_v30 = vpop.f32.mrf.mxu0  ;;  %v1317_v43 = vpack.c.bf16 %v1077_v10, %v1073_v33  ;;  %v1118_v29 = vld [vmem:[%s4740_s3 + $0x1f0] sm:$0xff] }
 0x12d   :  { %2088 = vmatmul.msk.bf16.vlgmr.msra.gmra.mxu1 %vm680_vm0, %v2562_v52  ;;  %v1068_v52 = vld [vmem:[%s4740_s3 + $0x60] sm:$0xff]  ;;  %v1333_v60 = vpack.c.bf16 %v1109_v55, %v1105_v56  ;;  %v1137_v37 = vld [vmem:[%s4740_s3 + $0x288] sm:$0xff]  ;;  %v1102_v30 = vld [vmem:[%s4740_s3 + $0x170] sm:$0xff] }
 0x12e   :  { %v1312_v27 = vpack.c.bf16 %v1068_v52, %v1064_v24  ;;  %v1220_v40 = vld [vmem:[%s4740_s3 + $0x520] sm:$0xff]  ;;  %v836_v24 = vpop.f32.mrf.mxu3  ;;  %v1357_v52 = vpack.c.bf16 %v1157_v17, %v1153_v15  ;;  %v1065_v47 = vld [vmem:[%s4740_s3 + $0x48] sm:$0xff]  ;;  %v1106_v15 = vld [vmem:[%s4740_s3 + $0x190] sm:$0xff] }
 0x12f   :  { %1490 = vmatpush.bf16.msrb.mxu2 %v1396_v25  ;;  %v1388_v13 = vpack.c.bf16 %v1220_v40, %v1216_v8  ;;  %v1200_v31 = vld [vmem:[%s4740_s3 + $0x480] sm:$0xff]  ;;  %v1069_v19 = vld [vmem:[%s4740_s3 + $0x68] sm:$0xff] }
 0x130   :  { %1477 = vmatpush.bf16.msrb.mxu1 %v1364_v57  ;;  %1465 = vmatpush.bf16.msrb.mxu3 %v1328_v0  ;;  %v1340_v57 = vpack.c.bf16 %v1124_v46, %v1120_v45  ;;  %v1224_v0 = vld [vmem:[%s4740_s3 + $0x540] sm:$0xff]  ;;  %v1057_v54 = vld [vmem:[%s4740_s3 + $0x8] sm:$0xff]  ;;  %v1313_v55 = vpack.c.bf16 %v1069_v19, %v1065_v47 }
 0x131   :  { %v1204_v32 = vld [vmem:[%s4740_s3 + $0x4a0] sm:$0xff]  ;;  %v1129_v56 = vld [vmem:[%s4740_s3 + $0x248] sm:$0xff] }
 0x132   :  { %v1380_v35 = vpack.c.bf16 %v1204_v32, %v1200_v31  ;;  %v1192_v45 = vld [vmem:[%s4740_s3 + $0x440] sm:$0xff]  ;;  %v1133_v25 = vld [vmem:[%s4740_s3 + $0x268] sm:$0xff] }
 0x133   :  { %v1196_v46 = vld [vmem:[%s4740_s3 + $0x460] sm:$0xff]  ;;  %v1241_v61 = vld [vmem:[%s4740_s3 + $0x5c8] sm:$0xff] }
 0x134   :  { %1478 = vmatpush.bf16.msrb.mxu1 %v1360_v2  ;;  %1466 = vmatpush.bf16.msrb.mxu3 %v1324_v4  ;;  %v1392_v2 = vpack.c.bf16 %v1228_v63, %v1224_v0  ;;  %v1161_v4 = vld [vmem:[%s4740_s3 + $0x348] sm:$0xff]  ;;  %v1376_v49 = vpack.c.bf16 %v1196_v46, %v1192_v45  ;;  %v1304_v40 = vld [vmem:[%s4740_s3 + $0x7c0] sm:$0xf]  ;;  %v1090_v45 = vld [vmem:[%s4740_s3 + $0x110] sm:$0xff] }
 0x135   :  { %v1361_v14 = vpack.c.bf16 %v1165_v7, %v1161_v4  ;;  %v1245_v0 = vld [vmem:[%s4740_s3 + $0x5e8] sm:$0xff]  ;;  %v1094_v46 = vld [vmem:[%s4740_s3 + $0x130] sm:$0xff] }
 0x136   :  { %1491 = vmatpush.bf16.msrb.mxu2 %v1392_v2  ;;  %v838_v51 = vpop.f32.mrf.mxu3  ;;  %v1401_v2 = vpack.c.bf16 %v1245_v0, %v1241_v61  ;;  %v1125_v7 = vld [vmem:[%s4740_s3 + $0x228] sm:$0xff] }
 0x137   :  { %v1225_v26 = vld [vmem:[%s4740_s3 + $0x548] sm:$0xff] }
 0x138   :  { %1479 = vmatpush.bf16.msrb.mxu1 %v1356_v9  ;;  %1467 = vmatpush.bf16.msrb.mxu3 %v1320_v11  ;;  %v3641_v9 = vpop.f32.mrf.mxu1  ;;  %v1089_v11 = vld [vmem:[%s4740_s3 + $0x108] sm:$0xff] }
 0x139   :  { %v1325_v48 = vpack.c.bf16 %v1093_v12, %v1089_v11  ;;  %v1432_v11 = vpack.c.bf16 %v1304_v40, %v1304_v40  ;;  %v1233_v12 = vld [vmem:[%s4740_s3 + $0x588] sm:$0xff]  ;;  %v1078_v40 = vld [vmem:[%s4740_s3 + $0xb0] sm:$0xff] }
 0x13a   :  { %1492 = vmatpush.bf16.msrb.mxu2 %v1388_v13  ;;  %v1237_v13 = vld [vmem:[%s4740_s3 + $0x5a8] sm:$0xff] }
 0x13b   :  { %v1229_v32 = vld [vmem:[%s4740_s3 + $0x568] sm:$0xff] }
 0x13c   :  { %1480 = vmatpush.bf16.msrb.mxu1 %v1352_v18  ;;  %1468 = vmatpush.bf16.msrb.mxu3 %v1316_v20  ;;  %v1208_v18 = vld [vmem:[%s4740_s3 + $0x4c0] sm:$0xff]  ;;  %v1393_v10 = vpack.c.bf16 %v1229_v32, %v1225_v26  ;;  %v1221_v19 = vld [vmem:[%s4740_s3 + $0x528] sm:$0xff] }
 0x13d   :  { %v1212_v20 = vld [vmem:[%s4740_s3 + $0x4e0] sm:$0xff]  ;;  %v1213_v0 = vld [vmem:[%s4740_s3 + $0x4e8] sm:$0xff] }
 0x13e   :  { %v1384_v23 = vpack.c.bf16 %v1212_v20, %v1208_v18  ;;  %v862_v17 = vpop.f32.mrf.mxu3  ;;  %v1452_v20 = vsel %vm1450_vm1, %v1432_v11, 0  ;;  %v1205_v11 = vld [vmem:[%s4740_s3 + $0x4a8] sm:$0xff]  ;;  %v1256_v32 = vld [vmem:[%s4740_s3 + $0x640] sm:$0xff] }
 0x13f   :  { %1502 = vmatpush.bf16.msrb.mxu0 %v1452_v20  ;;  %v1268_v20 = vld [vmem:[%s4740_s3 + $0x6a0] sm:$0xff] }
 0x140   :  { %1481 = vmatpush.bf16.msrb.mxu1 %v1348_v62  ;;  %1469 = vmatpush.bf16.msrb.mxu3 %v1312_v27  ;;  %v1145_v62 = vld [vmem:[%s4740_s3 + $0x2c8] sm:$0xff]  ;;  %v1321_v27 = vpack.c.bf16 %v1085_v22, %v1081_v21  ;;  %v825_v34 = vpop.f32.mrf.mxu1  ;;  %v1178_v22 = vld [vmem:[%s4740_s3 + $0x3d0] sm:$0xff] }
 0x141   :  { %1493 = vmatpush.bf16.msrb.mxu2 %v1384_v23  ;;  %v1353_v36 = vpack.c.bf16 %v1149_v28, %v1145_v62  ;;  %v1182_v23 = vld [vmem:[%s4740_s3 + $0x3f0] sm:$0xff]  ;;  %v1300_v62 = vld [vmem:[%s4740_s3 + $0x7a0] sm:$0xff] }
 0x142   :  { %v1098_v28 = vld [vmem:[%s4740_s3 + $0x150] sm:$0xff]  ;;  %v1370_v33 = vpack.c.bf16 %v1182_v23, %v1178_v22 }
 0x143   :  { %v1066_v23 = vld [vmem:[%s4740_s3 + $0x50] sm:$0xff] }
 0x144   :  { %1482 = vmatpush.bf16.msrb.mxu1 %v1344_v42  ;;  %1470 = vmatpush.bf16.msrb.mxu3 %v1308_v44  ;;  %v849_v42 = vpop.f32.mrf.mxu2  ;;  %v1141_v44 = vld [vmem:[%s4740_s3 + $0x2a8] sm:$0xff] }
 0x145   :  { %1494 = vmatpush.bf16.msrb.mxu2 %v1380_v35  ;;  %v1349_v53 = vpack.c.bf16 %v1141_v44, %v1137_v37  ;;  %v1170_v35 = vld [vmem:[%s4740_s3 + $0x390] sm:$0xff]  ;;  %v1330_v37 = vpack.c.bf16 %v1102_v30, %v1098_v28 }
 0x146   :  { %v1138_v28 = vld [vmem:[%s4740_s3 + $0x290] sm:$0xff] }
 0x147   :  { %1471 = vmatmul.bf16.vlgmr.msrb.gmra.mxu3 %v3611_v59  ;;  %v1142_v30 = vld [vmem:[%s4740_s3 + $0x2b0] sm:$0xff] }
 0x148   :  { %1515 = vmatpush.bf16.msra.mxu3 %v1337_v50  ;;  %1483 = vmatpush.bf16.msrb.mxu1 %v1340_v57  ;;  %v811_v50 = vadd.f32 %v810_v5, %v798_v41  ;;  %v1184_v57 = vld [vmem:[%s4740_s3 + $0x400] sm:$0xff]  ;;  %v1309_v5 = vpack.c.bf16 %v1061_v39, %v1057_v54  ;;  %v1162_v54 = vld [vmem:[%s4740_s3 + $0x350] sm:$0xff] }
 0x149   :  { %1495 = vmatpush.bf16.msrb.mxu2 %v1376_v49  ;;  %v1288_v41 = vld [vmem:[%s4740_s3 + $0x740] sm:$0xff]  ;;  %v864_v49 = vpop.f32.mrf.mxu3  ;;  %v1082_v39 = vld [vmem:[%s4740_s3 + $0xd0] sm:$0xff] }
 0x14a   :  { %v824_v63 = vadd.f32 %v3641_v9, %v811_v50  ;;  %v1338_v9 = vpack.c.bf16 %v1118_v29, %v1114_v38  ;;  %v1154_v29 = vld [vmem:[%s4740_s3 + $0x310] sm:$0xff] }
 0x14b   :  { %v1134_v49 = vld [vmem:[%s4740_s3 + $0x270] sm:$0xff] }
 0x14c   :  { %1528 = vmatpush.bf16.msra.mxu1 %v1369_v58  ;;  %1516 = vmatpush.bf16.msra.mxu3 %v1333_v60  ;;  %v1188_v58 = vld [vmem:[%s4740_s3 + $0x420] sm:$0xff]  ;;  %v837_v4 = vadd.f32 %v836_v24, %v824_v63  ;;  %v851_v8 = vpop.f32.mrf.mxu2  ;;  %v1334_v24 = vpack.c.bf16 %v1110_v16, %v1106_v15  ;;  %v3802_v44 = vpop.f32.mrf.mxu0  ;;  %v1146_v15 = vld [vmem:[%s4740_s3 + $0x2d0] sm:$0xff] }
 0x14d   :  { %v1372_v60 = vpack.c.bf16 %v1188_v58, %v1184_v57  ;;  %v3813_v51 = vpop.f32.mrf.mxu1  ;;  %v1284_v57 = vld [vmem:[%s4740_s3 + $0x720] sm:$0xff]  ;;  %v1209_v58 = vld [vmem:[%s4740_s3 + $0x4c8] sm:$0xff]  ;;  %v1074_v8 = vld [vmem:[%s4740_s3 + $0x90] sm:$0xff] }
 0x14e   :  { %v1385_v38 = vpack.c.bf16 %v1213_v0, %v1209_v58  ;;  %v1150_v16 = vld [vmem:[%s4740_s3 + $0x2f0] sm:$0xff]  ;;  %v1111_v0 = vld [vmem:[%s4740_s3 + $0x1b8] sm:$0xff] }
 0x14f   :  { %1496 = vmatpush.bf16.msrb.mxu2 %v1372_v60  ;;  %v1086_v60 = vld [vmem:[%s4740_s3 + $0xf0] sm:$0xff]  ;;  %v1354_v26 = vpack.c.bf16 %v1150_v16, %v1146_v15  ;;  %v1171_v15 = vld [vmem:[%s4740_s3 + $0x398] sm:$0xff] }
 0x150   :  { %1529 = vmatpush.bf16.msra.mxu1 %v1365_v3  ;;  %1517 = vmatpush.bf16.msra.mxu3 %v1329_v6  ;;  %v1345_v3 = vpack.c.bf16 %v1133_v25, %v1129_v56  ;;  %v1121_v6 = vld [vmem:[%s4740_s3 + $0x208] sm:$0xff]  ;;  %v1166_v56 = vld [vmem:[%s4740_s3 + $0x370] sm:$0xff]  ;;  %v1280_v25 = vld [vmem:[%s4740_s3 + $0x700] sm:$0xff] }
 0x151   :  { %v1341_v18 = vpack.c.bf16 %v1125_v7, %v1121_v6  ;;  %v1420_v61 = vpack.c.bf16 %v1284_v57, %v1280_v25  ;;  %v1362_v63 = vpack.c.bf16 %v1166_v56, %v1162_v54  ;;  %v1201_v6 = vld [vmem:[%s4740_s3 + $0x488] sm:$0xff]  ;;  %v1248_v54 = vld [vmem:[%s4740_s3 + $0x600] sm:$0xff]  ;;  %v1175_v16 = vld [vmem:[%s4740_s3 + $0x3b8] sm:$0xff] }
 0x152   :  { %v1252_v56 = vld [vmem:[%s4740_s3 + $0x620] sm:$0xff] }
 0x153   :  { %1541 = vmatpush.bf16.msra.mxu2 %v1401_v2  ;;  %v1158_v2 = vld [vmem:[%s4740_s3 + $0x330] sm:$0xff]  ;;  %v1404_v58 = vpack.c.bf16 %v1252_v56, %v1248_v54  ;;  %v1147_v54 = vld [vmem:[%s4740_s3 + $0x2d8] sm:$0xff] }
 0x154   :  { %1530 = vmatpush.bf16.msra.mxu1 %v1361_v14  ;;  %1518 = vmatpush.bf16.msra.mxu3 %v1325_v48  ;;  %v850_v14 = vadd.f32 %v849_v42, %v837_v4  ;;  %v1397_v48 = vpack.c.bf16 %v1237_v13, %v1233_v12  ;;  %v1292_v42 = vld [vmem:[%s4740_s3 + $0x760] sm:$0xff]  ;;  %v903_v7 = vpop.f32.mrf.mxu0  ;;  %v1358_v12 = vpack.c.bf16 %v1158_v2, %v1154_v29  ;;  %v1126_v29 = vld [vmem:[%s4740_s3 + $0x230] sm:$0xff]  ;;  %v1179_v2 = vld [vmem:[%s4740_s3 + $0x3d8] sm:$0xff] }
 0x155   :  { %v1424_v47 = vpack.c.bf16 %v1292_v42, %v1288_v41  ;;  %v1272_v4 = vld [vmem:[%s4740_s3 + $0x6c0] sm:$0xff]  ;;  %v877_v13 = vpop.f32.mrf.mxu1  ;;  %v1189_v41 = vld [vmem:[%s4740_s3 + $0x428] sm:$0xff]  ;;  %v1350_v42 = vpack.c.bf16 %v1142_v30, %v1138_v28  ;;  %v1151_v56 = vld [vmem:[%s4740_s3 + $0x2f8] sm:$0xff] }
 0x156   :  { %v863_v21 = vadd.f32 %v862_v17, %v850_v14  ;;  %v1381_v14 = vpack.c.bf16 %v1205_v11, %v1201_v6  ;;  %v1318_v17 = vpack.c.bf16 %v1078_v40, %v1074_v8  ;;  %v1301_v6 = vld [vmem:[%s4740_s3 + $0x7a8] sm:$0xff]  ;;  %v1103_v11 = vld [vmem:[%s4740_s3 + $0x178] sm:$0xff] }
 0x157   :  { %1542 = vmatpush.bf16.msra.mxu2 %v1397_v48  ;;  %v1285_v30 = vld [vmem:[%s4740_s3 + $0x728] sm:$0xff] }
 0x158   :  { %1531 = vmatpush.bf16.msra.mxu1 %v1357_v52  ;;  %1519 = vmatpush.bf16.msra.mxu3 %v1321_v27  ;;  %v1296_v52 = vld [vmem:[%s4740_s3 + $0x780] sm:$0xff]  ;;  %v1049_v27 = vmax.f32 %v863_v21, 0.0  ;;  %v1193_v21 = vld [vmem:[%s4740_s3 + $0x448] sm:$0xff] }
 0x159   :  { %v1428_v31 = vpack.c.bf16 %v1300_v62, %v1296_v52  ;;  %v1197_v62 = vld [vmem:[%s4740_s3 + $0x468] sm:$0xff] }
 0x15a   :  { %v3784_v34 = vpack.c.bf16 %v1049_v27, %v1049_v27  ;;  %v1377_v27 = vpack.c.bf16 %v1197_v62, %v1193_v21  ;;  %v1095_v21 = vld [vmem:[%s4740_s3 + $0x138] sm:$0xff]  ;;  %v1367_v62 = vpack.c.bf16 %v1175_v16, %v1171_v15  ;;  %v1234_v15 = vld [vmem:[%s4740_s3 + $0x590] sm:$0xff] }
 0x15b   :  { %1503 = vmatpush.bf16.msrb.mxu0 %v1428_v31  ;;  %1543 = vmatpush.bf16.msra.mxu2 %v1393_v10  ;;  %v1185_v10 = vld [vmem:[%s4740_s3 + $0x408] sm:$0xff]  ;;  %v1131_v16 = vld [vmem:[%s4740_s3 + $0x258] sm:$0xff] }
 0x15c   :  { %1532 = vmatpush.bf16.msra.mxu1 %v1353_v36  ;;  %1520 = vmatpush.bf16.msra.mxu3 %v1317_v43  ;;  %v1174_v36 = vld [vmem:[%s4740_s3 + $0x3b0] sm:$0xff]  ;;  %v1217_v43 = vld [vmem:[%s4740_s3 + $0x508] sm:$0xff] }
 0x15d   :  { %1484 = vmatmul.bf16.vlgmr.msrb.gmra.mxu1 %v3784_v34  ;;  %v1366_v50 = vpack.c.bf16 %v1174_v36, %v1170_v35  ;;  %v3869_v48 = vpop.f32.mrf.mxu3  ;;  %v1058_v35 = vld [vmem:[%s4740_s3 + $0x10] sm:$0xff] }
 0x15e   :  { %v1062_v36 = vld [vmem:[%s4740_s3 + $0x30] sm:$0xff] }
 0x15f   :  { %1504 = vmatpush.bf16.msrb.mxu0 %v1424_v47  ;;  %v1373_v47 = vpack.c.bf16 %v1189_v41, %v1185_v10  ;;  %v1159_v41 = vld [vmem:[%s4740_s3 + $0x338] sm:$0xff] }
 0x160   :  { %1533 = vmatpush.bf16.msra.mxu1 %v1349_v53  ;;  %1521 = vmatpush.bf16.msra.mxu3 %v1313_v55  ;;  %v1389_v53 = vpack.c.bf16 %v1221_v19, %v1217_v43  ;;  %v1326_v55 = vpack.c.bf16 %v1094_v46, %v1090_v45  ;;  %v1115_v43 = vld [vmem:[%s4740_s3 + $0x1d8] sm:$0xff]  ;;  %v3922_v46 = vpop.f32.mrf.mxu0  ;;  %v1130_v19 = vld [vmem:[%s4740_s3 + $0x250] sm:$0xff] }
 0x161   :  { %v3880_v22 = vpop.f32.mrf.mxu2  ;;  %v1119_v45 = vld [vmem:[%s4740_s3 + $0x1f8] sm:$0xff] }
 0x162   :  { %1544 = vmatpush.bf16.msra.mxu2 %v1389_v53  ;;  %v1339_v25 = vpack.c.bf16 %v1119_v45, %v1115_v43  ;;  %v1273_v43 = vld [vmem:[%s4740_s3 + $0x6c8] sm:$0xff]  ;;  %v1075_v45 = vld [vmem:[%s4740_s3 + $0x98] sm:$0xff] }
 0x163   :  { %1505 = vmatpush.bf16.msrb.mxu0 %v1420_v61  ;;  %v1107_v61 = vld [vmem:[%s4740_s3 + $0x198] sm:$0xff] }
 0x164   :  { %1534 = vmatpush.bf16.msra.mxu1 %v1345_v3  ;;  %1522 = vmatpush.bf16.msra.mxu3 %v1309_v5  ;;  %v1322_v3 = vpack.c.bf16 %v1086_v60, %v1082_v39  ;;  %v1276_v5 = vld [vmem:[%s4740_s3 + $0x6e0] sm:$0xff]  ;;  %v1346_v60 = vpack.c.bf16 %v1134_v49, %v1130_v19  ;;  %v1335_v7 = vpack.c.bf16 %v1111_v0, %v1107_v61 }
 0x165   :  { %v890_v53 = vpop.f32.mrf.mxu3 }
 0x166   :  { %1545 = vmatpush.bf16.msra.mxu2 %v1385_v38  ;;  %v1122_v38 = vld [vmem:[%s4740_s3 + $0x210] sm:$0xff] }
 0x167   :  { %1523 = vmatmul.bf16.vlgmr.msra.gmra.mxu3 %v3611_v59  ;;  %v1342_v40 = vpack.c.bf16 %v1126_v29, %v1122_v38 }
 0x168   :  { %1567 = vmatpush.bf16.msrb.mxu3 %v1338_v9  ;;  %1535 = vmatpush.bf16.msra.mxu1 %v1341_v18  ;;  %v1416_v9 = vpack.c.bf16 %v1276_v5, %v1272_v4  ;;  %v1264_v18 = vld [vmem:[%s4740_s3 + $0x680] sm:$0xff]  ;;  %v1183_v4 = vld [vmem:[%s4740_s3 + $0x3f8] sm:$0xff]  ;;  %v1297_v5 = vld [vmem:[%s4740_s3 + $0x788] sm:$0xff] }
 0x169   :  { %v1412_v52 = vpack.c.bf16 %v1268_v20, %v1264_v18  ;;  %v916_v57 = vpop.f32.mrf.mxu2  ;;  %v1429_v8 = vpack.c.bf16 %v1301_v6, %v1297_v5  ;;  %v1289_v18 = vld [vmem:[%s4740_s3 + $0x748] sm:$0xff]  ;;  %v1091_v20 = vld [vmem:[%s4740_s3 + $0x118] sm:$0xff] }
 0x16a   :  { %1506 = vmatpush.bf16.msrb.mxu0 %v1416_v9  ;;  %1546 = vmatpush.bf16.msra.mxu2 %v1381_v14  ;;  %v1099_v9 = vld [vmem:[%s4740_s3 + $0x158] sm:$0xff]  ;;  %v1371_v14 = vpack.c.bf16 %v1183_v4, %v1179_v2  ;;  %v1327_v28 = vpack.c.bf16 %v1095_v21, %v1091_v20  ;;  %v1265_v57 = vld [vmem:[%s4740_s3 + $0x688] sm:$0xff]  ;;  %v1242_v2 = vld [vmem:[%s4740_s3 + $0x5d0] sm:$0xff] }
 0x16b   :  { %v1143_v4 = vld [vmem:[%s4740_s3 + $0x2b8] sm:$0xff]  ;;  %v1238_v20 = vld [vmem:[%s4740_s3 + $0x5b0] sm:$0xff]  ;;  %v1249_v21 = vld [vmem:[%s4740_s3 + $0x608] sm:$0xff] }
 0x16c   :  { %1568 = vmatpush.bf16.msrb.mxu3 %v1334_v24  ;;  %1580 = vmatpush.bf16.msrb.mxu1 %v1370_v33  ;;  %v1070_v24 = vld [vmem:[%s4740_s3 + $0x70] sm:$0xff]  ;;  %v1260_v33 = vld [vmem:[%s4740_s3 + $0x660] sm:$0xff] }
 0x16d   :  { %v1314_v31 = vpack.c.bf16 %v1070_v24, %v1066_v23  ;;  %1536 = vmatmul.bf16.vlgmr.msra.gmra.mxu1 %v3784_v34 }
 0x16e   :  { %1507 = vmatpush.bf16.msrb.mxu0 %v1412_v52  ;;  %1547 = vmatpush.bf16.msra.mxu2 %v1377_v27  ;;  %v1167_v27 = vld [vmem:[%s4740_s3 + $0x378] sm:$0xff] }
 0x170   :  { %1569 = vmatpush.bf16.msrb.mxu3 %v1330_v37  ;;  %1581 = vmatpush.bf16.msrb.mxu1 %v1366_v50  ;;  %v1408_v37 = vpack.c.bf16 %v1260_v33, %v1256_v32  ;;  %v1310_v50 = vpack.c.bf16 %v1062_v36, %v1058_v35  ;;  %v1087_v32 = vld [vmem:[%s4740_s3 + $0xf8] sm:$0xff] }
 0x172   :  { %1508 = vmatpush.bf16.msrb.mxu0 %v1408_v37  ;;  %1548 = vmatpush.bf16.msra.mxu2 %v1373_v47  ;;  %v1155_v37 = vld [vmem:[%s4740_s3 + $0x318] sm:$0xff] }
 0x173   :  { %v1079_v47 = vld [vmem:[%s4740_s3 + $0xb8] sm:$0xff] }
 0x174   :  { %1570 = vmatpush.bf16.msrb.mxu3 %v1326_v55  ;;  %1582 = vmatpush.bf16.msrb.mxu1 %v1362_v63  ;;  %v1305_v55 = vld [vmem:[%s4740_s3 + $0x7c8] sm:$0xf]  ;;  %v650_v63 = vperm.slane %v3444_v1, 2 }
 0x175   :  { %v1433_v39 = vpack.c.bf16 %v1305_v55, %v1305_v55  ;;  %v927_v52 = vpop.f32.mrf.mxu1 }
 0x176   :  { %1509 = vmatpush.bf16.msrb.mxu0 %v1404_v58  ;;  %v876_v13 = vadd.f32 %v3813_v51, %v650_v63  ;;  %v1293_v51 = vld [vmem:[%s4740_s3 + $0x768] sm:$0xff]  ;;  %v1355_v63 = vpack.c.bf16 %v1151_v56, %v1147_v54  ;;  %v1198_v54 = vld [vmem:[%s4740_s3 + $0x470] sm:$0xff] }
 0x177   :  { %v1425_v23 = vpack.c.bf16 %v1293_v51, %v1289_v18 }
 0x178   :  { %1571 = vmatpush.bf16.msrb.mxu3 %v1322_v3  ;;  %1583 = vmatpush.bf16.msrb.mxu1 %v1358_v12  ;;  %v1455_v3 = vsel %vm1450_vm1, %v1433_v39, 0  ;;  %v955_v12 = vpop.f32.mrf.mxu0  ;;  %v889_v24 = vadd.f32 %v3869_v48, %v876_v13  ;;  %v1281_v48 = vld [vmem:[%s4740_s3 + $0x708] sm:$0xff]  ;;  %v1067_v39 = vld [vmem:[%s4740_s3 + $0x58] sm:$0xff] }
 0x179   :  { %v1421_v33 = vpack.c.bf16 %v1285_v30, %v1281_v48  ;;  %v1127_v48 = vld [vmem:[%s4740_s3 + $0x238] sm:$0xff]  ;;  %v1226_v30 = vld [vmem:[%s4740_s3 + $0x550] sm:$0xff] }
 0x17a   :  { %1554 = vmatpush.bf16.msra.mxu0 %v1455_v3  ;;  %v902_v10 = vadd.f32 %v3802_v44, %v889_v24  ;;  %v1277_v44 = vld [vmem:[%s4740_s3 + $0x6e8] sm:$0xff]  ;;  %v1139_v3 = vld [vmem:[%s4740_s3 + $0x298] sm:$0xff] }
 0x17b   :  { %v1417_v19 = vpack.c.bf16 %v1277_v44, %v1273_v43  ;;  %v1351_v13 = vpack.c.bf16 %v1143_v4, %v1139_v3  ;;  %v1210_v43 = vld [vmem:[%s4740_s3 + $0x4d0] sm:$0xff] }
 0x17c   :  { %1572 = vmatpush.bf16.msrb.mxu3 %v1318_v17  ;;  %1584 = vmatpush.bf16.msrb.mxu1 %v1354_v26  ;;  %v1331_v17 = vpack.c.bf16 %v1103_v11, %v1099_v9  ;;  %v1163_v26 = vld [vmem:[%s4740_s3 + $0x358] sm:$0xff]  ;;  %v915_v49 = vadd.f32 %v3880_v22, %v902_v10  ;;  %v1269_v22 = vld [vmem:[%s4740_s3 + $0x6a8] sm:$0xff]  ;;  %v1218_v10 = vld [vmem:[%s4740_s3 + $0x510] sm:$0xff] }
 0x17d   :  { %v1363_v35 = vpack.c.bf16 %v1167_v27, %v1163_v26  ;;  %v929_v53 = vpop.f32.mrf.mxu1  ;;  %v1413_v61 = vpack.c.bf16 %v1269_v22, %v1265_v57  ;;  %v1059_v9 = vld [vmem:[%s4740_s3 + $0x18] sm:$0xff]  ;;  %v1398_v27 = vpack.c.bf16 %v1238_v20, %v1234_v15 }
 0x17e   :  { %1555 = vmatpush.bf16.msra.mxu0 %v1429_v8  ;;  %v928_v55 = vadd.f32 %v927_v52, %v915_v49  ;;  %v1257_v8 = vld [vmem:[%s4740_s3 + $0x648] sm:$0xff]  ;;  %v1227_v15 = vld [vmem:[%s4740_s3 + $0x558] sm:$0xff] }
 0x180   :  { %1573 = vmatpush.bf16.msrb.mxu3 %v1314_v31  ;;  %1585 = vmatpush.bf16.msrb.mxu1 %v1350_v42  ;;  %v1083_v31 = vld [vmem:[%s4740_s3 + $0xd8] sm:$0xff]  ;;  %v4012_v36 = vpop.f32.mrf.mxu0 }
 0x181   :  { %v1323_v42 = vpack.c.bf16 %v1087_v32, %v1083_v31  ;;  %v940_v58 = vpop.f32.mrf.mxu3  ;;  %v1230_v31 = vld [vmem:[%s4740_s3 + $0x570] sm:$0xff] }
 0x182   :  { %1556 = vmatpush.bf16.msra.mxu0 %v1425_v23  ;;  %v941_v0 = vadd.f32 %v940_v58, %v928_v55  ;;  %v1253_v23 = vld [vmem:[%s4740_s3 + $0x628] sm:$0xff]  ;;  %v1186_v58 = vld [vmem:[%s4740_s3 + $0x410] sm:$0xff] }
 0x183   :  { %v966_v38 = vpop.f32.mrf.mxu2  ;;  %v1405_v52 = vpack.c.bf16 %v1253_v23, %v1249_v21  ;;  %v1290_v21 = vld [vmem:[%s4740_s3 + $0x750] sm:$0xff] }
 0x184   :  { %1574 = vmatpush.bf16.msrb.mxu3 %v1310_v50  ;;  %1586 = vmatpush.bf16.msrb.mxu1 %v1346_v60  ;;  %v1359_v50 = vpack.c.bf16 %v1159_v41, %v1155_v37  ;;  %v1071_v60 = vld [vmem:[%s4740_s3 + $0x78] sm:$0xff]  ;;  %v954_v5 = vadd.f32 %v3922_v46, %v941_v0  ;;  %v651_v37 = vperm.slane %v3444_v1, 3  ;;  %v1202_v1 = vld [vmem:[%s4740_s3 + $0x490] sm:$0xff] }
 0x185   :  { %v1315_v6 = vpack.c.bf16 %v1071_v60, %v1067_v39  ;;  %v1063_v46 = vld [vmem:[%s4740_s3 + $0x38] sm:$0xff]  ;;  %v1190_v39 = vld [vmem:[%s4740_s3 + $0x430] sm:$0xff] }
 0x186   :  { %1557 = vmatpush.bf16.msra.mxu0 %v1421_v33  ;;  %v1050_v12 = vmax.f32 %v954_v5, 0.0  ;;  %v1311_v51 = vpack.c.bf16 %v1063_v46, %v1059_v9  ;;  %v1394_v33 = vpack.c.bf16 %v1230_v31, %v1226_v30  ;;  %v967_v44 = vadd.f32 %v966_v38, %v651_v37  ;;  %v1247_v0 = vld [vmem:[%s4740_s3 + $0x5f8] sm:$0xff]  ;;  %v1294_v23 = vld [vmem:[%s4740_s3 + $0x770] sm:$0xff] }
 0x187   :  { %1575 = vmatmul.bf16.vlgmr.msrb.gmra.mxu3 %v3611_v59  ;;  %v1215_v30 = vld [vmem:[%s4740_s3 + $0x4f8] sm:$0xff] }
 0x188   :  { %1619 = vmatpush.bf16.msra.mxu3 %v1339_v25  ;;  %1587 = vmatpush.bf16.msrb.mxu1 %v1342_v40  ;;  %v1319_v25 = vpack.c.bf16 %v1079_v47, %v1075_v45  ;;  %v981_v29 = vpop.f32.mrf.mxu0  ;;  %v1261_v40 = vld [vmem:[%s4740_s3 + $0x668] sm:$0xff]  ;;  %v4085_v18 = vpack.c.bf16 %v1050_v12, %v1050_v12  ;;  %v980_v49 = vadd.f32 %v4012_v36, %v967_v44  ;;  %v1207_v37 = vld [vmem:[%s4740_s3 + $0x4b8] sm:$0xff] }
 0x189   :  { %v1409_v11 = vpack.c.bf16 %v1261_v40, %v1257_v8  ;;  %v942_v24 = vpop.f32.mrf.mxu3  ;;  %v1374_v29 = vpack.c.bf16 %v1190_v39, %v1186_v58  ;;  %v1195_v44 = vld [vmem:[%s4740_s3 + $0x458] sm:$0xff] }
 0x18a   :  { %1558 = vmatpush.bf16.msra.mxu0 %v1417_v19  ;;  %1497 = vmatmul.bf16.vlgmr.msrb.gmra.mxu2 %v4085_v18  ;;  %v1206_v19 = vld [vmem:[%s4740_s3 + $0x4b0] sm:$0xff]  ;;  %v1219_v24 = vld [vmem:[%s4740_s3 + $0x518] sm:$0xff] }
 0x18b   :  { %1588 = vmatmul.bf16.vlgmr.msrb.gmra.mxu1 %v3784_v34  ;;  %v968_v26 = vpop.f32.mrf.mxu2 }
 0x18c   :  { %1620 = vmatpush.bf16.msra.mxu3 %v1335_v7  ;;  %1632 = vmatpush.bf16.msra.mxu1 %v1371_v14  ;;  %v1246_v7 = vld [vmem:[%s4740_s3 + $0x5f0] sm:$0xff] }
 0x18d   :  { %v1402_v14 = vpack.c.bf16 %v1246_v7, %v1242_v2  ;;  %v1239_v7 = vld [vmem:[%s4740_s3 + $0x5b8] sm:$0xff] }
 0x18e   :  { %1559 = vmatpush.bf16.msra.mxu0 %v1413_v61  ;;  %v1243_v61 = vld [vmem:[%s4740_s3 + $0x5d8] sm:$0xff] }
 0x18f   :  { %1593 = vmatpush.bf16.msrb.mxu2 %v1402_v14  ;;  %v1403_v3 = vpack.c.bf16 %v1247_v0, %v1243_v61  ;;  %v1302_v14 = vld [vmem:[%s4740_s3 + $0x7b0] sm:$0xff]  ;;  %v1303_v61 = vld [vmem:[%s4740_s3 + $0x7b8] sm:$0xff] }
 0x190   :  { %1621 = vmatpush.bf16.msra.mxu3 %v1331_v17  ;;  %1633 = vmatpush.bf16.msra.mxu1 %v1367_v62  ;;  %v1135_v17 = vld [vmem:[%s4740_s3 + $0x278] sm:$0xff] }
 0x191   :  { %v1347_v62 = vpack.c.bf16 %v1135_v17, %v1131_v16  ;;  %v1231_v16 = vld [vmem:[%s4740_s3 + $0x578] sm:$0xff] }
 0x192   :  { %1560 = vmatpush.bf16.msra.mxu0 %v1409_v11  ;;  %v1298_v11 = vld [vmem:[%s4740_s3 + $0x790] sm:$0xff]  ;;  %v1395_v20 = vpack.c.bf16 %v1231_v16, %v1227_v15  ;;  %v1259_v16 = vld [vmem:[%s4740_s3 + $0x658] sm:$0xff] }
 0x193   :  { %1594 = vmatpush.bf16.msrb.mxu2 %v1398_v27  ;;  %v1282_v27 = vld [vmem:[%s4740_s3 + $0x710] sm:$0xff] }
 0x194   :  { %1622 = vmatpush.bf16.msra.mxu3 %v1327_v28  ;;  %1634 = vmatpush.bf16.msra.mxu1 %v1363_v35  ;;  %v1123_v28 = vld [vmem:[%s4740_s3 + $0x218] sm:$0xff]  ;;  %v1222_v35 = vld [vmem:[%s4740_s3 + $0x530] sm:$0xff] }
 0x195   :  { %v1343_v32 = vpack.c.bf16 %v1127_v48, %v1123_v28  ;;  %v1390_v41 = vpack.c.bf16 %v1222_v35, %v1218_v10  ;;  %v1286_v28 = vld [vmem:[%s4740_s3 + $0x730] sm:$0xff]  ;;  %v1211_v48 = vld [vmem:[%s4740_s3 + $0x4d8] sm:$0xff] }
 0x196   :  { %1561 = vmatpush.bf16.msra.mxu0 %v1405_v52  ;;  %v1223_v52 = vld [vmem:[%s4740_s3 + $0x538] sm:$0xff]  ;;  %v1422_v31 = vpack.c.bf16 %v1286_v28, %v1282_v27  ;;  %v1278_v10 = vld [vmem:[%s4740_s3 + $0x6f0] sm:$0xff] }
 0x197   :  { %1595 = vmatpush.bf16.msrb.mxu2 %v1394_v33  ;;  %v1391_v26 = vpack.c.bf16 %v1223_v52, %v1219_v24  ;;  %v1274_v33 = vld [vmem:[%s4740_s3 + $0x6d0] sm:$0xff]  ;;  %v1203_v35 = vld [vmem:[%s4740_s3 + $0x498] sm:$0xff] }
 0x198   :  { %1623 = vmatpush.bf16.msra.mxu3 %v1323_v42  ;;  %1635 = vmatpush.bf16.msra.mxu1 %v1359_v50  ;;  %v1382_v50 = vpack.c.bf16 %v1206_v19, %v1202_v1 }
 0x19a   :  { %v992_v42 = vpop.f32.mrf.mxu1  ;;  %1549 = vmatmul.bf16.vlgmr.msra.gmra.mxu2 %v4085_v18 }
 0x19b   :  { %1596 = vmatpush.bf16.msrb.mxu2 %v1390_v41  ;;  %v993_v56 = vadd.f32 %v992_v42, %v980_v49  ;;  %v1418_v41 = vpack.c.bf16 %v1278_v10, %v1274_v33  ;;  %v1383_v42 = vpack.c.bf16 %v1207_v37, %v1203_v35  ;;  %v1258_v49 = vld [vmem:[%s4740_s3 + $0x650] sm:$0xff]  ;;  %v1691_v10 = vld [vmem:[%s4742_s5 + $0x60] sm:$0xff] }
 0x19c   :  { %1624 = vmatpush.bf16.msra.mxu3 %v1319_v25  ;;  %1636 = vmatpush.bf16.msra.mxu1 %v1355_v63  ;;  %v1306_v63 = vld [vmem:[%s4740_s3 + $0x7d0] sm:$0xf] }
 0x19d   :  { %v1434_v5 = vpack.c.bf16 %v1306_v63, %v1306_v63  ;;  %v1291_v63 = vld [vmem:[%s4740_s3 + $0x758] sm:$0xff] }
 0x1a0   :  { %1625 = vmatpush.bf16.msra.mxu3 %v1315_v6  ;;  %1637 = vmatpush.bf16.msra.mxu1 %v1351_v13  ;;  %v1235_v6 = vld [vmem:[%s4740_s3 + $0x598] sm:$0xff]  ;;  %v1458_v13 = vsel %vm1450_vm1, %v1434_v5, 0 }
 0x1a1   :  { %v1399_v46 = vpack.c.bf16 %v1239_v7, %v1235_v6  ;;  %v1275_v6 = vld [vmem:[%s4740_s3 + $0x6d8] sm:$0xff] }
 0x1a2   :  { %v1031_v45 = vpop.f32.mrf.mxu0  ;;  %v994_v53 = vpop.f32.mrf.mxu1  ;;  %v1279_v7 = vld [vmem:[%s4740_s3 + $0x6f8] sm:$0xff] }
 0x1a3   :  { %v1187_v53 = vld [vmem:[%s4740_s3 + $0x418] sm:$0xff] }
 0x1a4   :  { %1626 = vmatpush.bf16.msra.mxu3 %v1311_v51  ;;  %1638 = vmatpush.bf16.msra.mxu1 %v1347_v62  ;;  %v1430_v51 = vpack.c.bf16 %v1302_v14, %v1298_v11  ;;  %v1426_v62 = vpack.c.bf16 %v1294_v23, %v1290_v21  ;;  %v1267_v11 = vld [vmem:[%s4740_s3 + $0x698] sm:$0xff] }
 0x1a5   :  { %v1251_v21 = vld [vmem:[%s4740_s3 + $0x618] sm:$0xff] }
 0x1a6   :  { %v1255_v23 = vld [vmem:[%s4740_s3 + $0x638] sm:$0xff] }
 0x1a7   :  { %1627 = vmatmul.bf16.vlgmr.msra.gmra.mxu3 %v3611_v59  ;;  %v1214_v59 = vld [vmem:[%s4740_s3 + $0x4f0] sm:$0xff] }
 0x1a8   :  { %1639 = vmatpush.bf16.msra.mxu1 %v1343_v32  ;;  %v1386_v47 = vpack.c.bf16 %v1214_v59, %v1210_v43  ;;  %v1387_v32 = vpack.c.bf16 %v1215_v30, %v1211_v48  ;;  %v1266_v43 = vld [vmem:[%s4740_s3 + $0x690] sm:$0xff] }
 0x1a9   :  { %v1270_v59 = vld [vmem:[%s4740_s3 + $0x6b0] sm:$0xff] }
 0x1aa   :  { %1597 = vmatpush.bf16.msrb.mxu2 %v1386_v47  ;;  %v1005_v55 = vpop.f32.mrf.mxu3  ;;  %v1033_v22 = vpop.f32.mrf.mxu0  ;;  %v1414_v1 = vpack.c.bf16 %v1270_v59, %v1266_v43  ;;  %v1693_v30 = vld [vmem:[%s4742_s5 + $0x70] sm:$0xff]  ;;  %v1690_v43 = vld [vmem:[%s4742_s5 + $0x58] sm:$0xff] }
 0x1ab   :  { %1640 = vmatmul.bf16.vlgmr.msra.gmra.mxu1 %v3784_v34  ;;  %v1194_v34 = vld [vmem:[%s4740_s3 + $0x450] sm:$0xff]  ;;  %v1006_v25 = vadd.f32 %v1005_v55, %v993_v56  ;;  %v1044_v2 = vpop.f32.mrf.mxu1 }
 0x1ac   :  { %v1018_v57 = vpop.f32.mrf.mxu2  ;;  %v1378_v36 = vpack.c.bf16 %v1198_v54, %v1194_v34  ;;  %v1191_v34 = vld [vmem:[%s4740_s3 + $0x438] sm:$0xff] }
 0x1ad   :  { %v1019_v60 = vadd.f32 %v1018_v57, %v1006_v25  ;;  %v1307_v54 = vld [vmem:[%s4740_s3 + $0x7d8] sm:$0xf]  ;;  %v1375_v55 = vpack.c.bf16 %v1191_v34, %v1187_v53  ;;  %v1250_v25 = vld [vmem:[%s4740_s3 + $0x610] sm:$0xff] }
 0x1ae   :  { %1598 = vmatpush.bf16.msrb.mxu2 %v1382_v50  ;;  %v1262_v50 = vld [vmem:[%s4740_s3 + $0x670] sm:$0xff]  ;;  %v1435_v22 = vpack.c.bf16 %v1307_v54, %v1307_v54  ;;  %v1686_v34 = vld [vmem:[%s4742_s5 + $0x38] sm:$0xff] }
 0x1af   :  { %v1032_v38 = vadd.f32 %v1031_v45, %v1019_v60  ;;  %v1199_v45 = vld [vmem:[%s4740_s3 + $0x478] sm:$0xff]  ;;  %v1410_v56 = vpack.c.bf16 %v1262_v50, %v1258_v49  ;;  %v1254_v57 = vld [vmem:[%s4740_s3 + $0x630] sm:$0xff] }
 0x1b0   :  { %v1379_v19 = vpack.c.bf16 %v1199_v45, %v1195_v44  ;;  %v1406_v58 = vpack.c.bf16 %v1254_v57, %v1250_v25  ;;  %v1461_v39 = vsel %vm1450_vm1, %v1435_v22, 0  ;;  %v1299_v60 = vld [vmem:[%s4740_s3 + $0x798] sm:$0xff]  ;;  %v1685_v53 = vld [vmem:[%s4742_s5 + $0x30] sm:$0xff]  ;;  %v1683_v25 = vld [vmem:[%s4742_s5 + $0x20] sm:$0xff] }
 0x1b1   :  { %v1045_v4 = vadd.f32 %v1044_v2, %v1032_v38  ;;  %v1431_v0 = vpack.c.bf16 %v1303_v61, %v1299_v60  ;;  %v1295_v38 = vld [vmem:[%s4740_s3 + $0x778] sm:$0xff]  ;;  %v1709_v54 = vld [vmem:[%s4742_s5 + $0xf0] sm:$0xff]  ;;  %v1684_v57 = vld [vmem:[%s4742_s5 + $0x28] sm:$0xff] }
 0x1b2   :  { %1599 = vmatpush.bf16.msrb.mxu2 %v1378_v36  ;;  %v1007_v8 = vpop.f32.mrf.mxu3  ;;  %v1283_v2 = vld [vmem:[%s4740_s3 + $0x718] sm:$0xff]  ;;  %v1681_v61 = vld [vmem:[%s4742_s5 + $0x10] sm:$0xff] }
 0x1b3   :  { %v1051_v40 = vmax.f32 %v1045_v4, 0.0  ;;  %v1046_v17 = vpop.f32.mrf.mxu1 }
 0x1b4   :  { %v1020_v9 = vpop.f32.mrf.mxu2  ;;  %v1263_v17 = vld [vmem:[%s4740_s3 + $0x678] sm:$0xff] }
 0x1b5   :  { %v4162_v12 = vpack.c.bf16 %v1051_v40, %v1051_v40  ;;  %v1419_v9 = vpack.c.bf16 %v1279_v7, %v1275_v6  ;;  %v1704_v7 = vld [vmem:[%s4742_s5 + $0xc8] sm:$0xff] }
 0x1b6   :  { %1600 = vmatpush.bf16.msrb.mxu2 %v1374_v29  ;;  %v4267_v29 = vld [vmem:[%s4741_s4] sm:$0xf] }
 0x1b7   :  { %2089 = vmatmul.msk.bf16.vlgmr.msrb.gmra.mxu0 %vm1446_vm2, %v4162_v12  ;;  %v1438_v4 = vperm.slane %v4267_v29, 0  ;;  %v1439_v24 = vperm.slane %v4267_v29, 1  ;;  %v1440_v33 = vperm.slane %v4267_v29, 2 }
 0x1b8   :  { %1606 = vmatpush.bf16.msrb.mxu0 %v1458_v13  ;;  %v1271_v13 = vld [vmem:[%s4740_s3 + $0x6b8] sm:$0xff] }
 0x1b9   :  { %1601 = vmatmul.bf16.vlgmr.msrb.gmra.mxu2 %v4085_v18  ;;  %v1415_v15 = vpack.c.bf16 %v1271_v13, %v1267_v11  ;;  %v1702_v11 = vld [vmem:[%s4742_s5 + $0xb8] sm:$0xff]  ;;  %v1725_v13 = vld [vmem:[%s4742_s5 + $0x170] sm:$0xff] }
 0x1ba   :  { %1645 = vmatpush.bf16.msra.mxu2 %v1403_v3  ;;  %v1287_v3 = vld [vmem:[%s4740_s3 + $0x738] sm:$0xff] }
 0x1bb   :  { %v1423_v5 = vpack.c.bf16 %v1287_v3, %v1283_v2  ;;  %v1679_v3 = vld [vmem:[%s4742_s5] sm:$0xff] }
 0x1bc   :  { %1607 = vmatpush.bf16.msrb.mxu0 %v1430_v51 }
 0x1be   :  { %1646 = vmatpush.bf16.msra.mxu2 %v1399_v46 }
 0x1c0   :  { %1608 = vmatpush.bf16.msrb.mxu0 %v1426_v62  ;;  %v1407_v62 = vpack.c.bf16 %v1255_v23, %v1251_v21  ;;  %v1723_v21 = vld [vmem:[%s4742_s5 + $0x160] sm:$0xff] }
 0x1c2   :  { %1647 = vmatpush.bf16.msra.mxu2 %v1395_v20  ;;  %v1411_v20 = vpack.c.bf16 %v1263_v17, %v1259_v16  ;;  %v1726_v16 = vld [vmem:[%s4742_s5 + $0x178] sm:$0xff] }
 0x1c3   :  { %v1765_v17 = vpack.c.bf16 %v1726_v16, %v1725_v13  ;;  %v1734_v16 = vld [vmem:[%s4742_s5 + $0x1b8] sm:$0xff] }
 0x1c4   :  { %1609 = vmatpush.bf16.msrb.mxu0 %v1422_v31  ;;  %v1694_v31 = vld [vmem:[%s4742_s5 + $0x78] sm:$0xff] }
 0x1c6   :  { %1648 = vmatpush.bf16.msra.mxu2 %v1391_v26 }
 0x1c7   :  { %2090 = vmatmul.msk.bf16.vlgmr.msra.gmra.mxu0 %vm1446_vm2, %v4162_v12 }
 0x1c8   :  { %1610 = vmatpush.bf16.msrb.mxu0 %v1418_v41 }
 0x1ca   :  { %1649 = vmatpush.bf16.msra.mxu2 %v1387_v32  ;;  %v1472_v47 = vpop.f32.mrf.mxu3  ;;  %v1749_v32 = vpack.c.bf16 %v1694_v31, %v1693_v30  ;;  %v1697_v30 = vld [vmem:[%s4742_s5 + $0x90] sm:$0xff]  ;;  %v1698_v31 = vld [vmem:[%s4742_s5 + $0x98] sm:$0xff] }
 0x1cb   :  { %v1473_v8 = vadd.f32 %v1472_v47, %v1438_v4  ;;  %v1687_v47 = vld [vmem:[%s4742_s5 + $0x40] sm:$0xff]  ;;  %v1680_v4 = vld [vmem:[%s4742_s5 + $0x8] sm:$0xff] }
 0x1cc   :  { %1611 = vmatpush.bf16.msrb.mxu0 %v1414_v1  ;;  %1784 = vmatpush.bf16.msrb.mxu3 %v1749_v32  ;;  %v1688_v1 = vld [vmem:[%s4742_s5 + $0x48] sm:$0xff]  ;;  %v1742_v6 = vpack.c.bf16 %v1680_v4, %v1679_v3  ;;  %v1721_v32 = vld [vmem:[%s4742_s5 + $0x150] sm:$0xff]  ;;  %v1739_v3 = vld [vmem:[%s4742_s5 + $0x1e0] sm:$0xff] }
 0x1cd   :  { %v1740_v4 = vld [vmem:[%s4742_s5 + $0x1e8] sm:$0xff] }
 0x1ce   :  { %1650 = vmatpush.bf16.msra.mxu2 %v1383_v42  ;;  %v1689_v42 = vld [vmem:[%s4742_s5 + $0x50] sm:$0xff] }
 0x1cf   :  { %v1747_v44 = vpack.c.bf16 %v1690_v43, %v1689_v42  ;;  %v1696_v42 = vld [vmem:[%s4742_s5 + $0x88] sm:$0xff]  ;;  %v1719_v43 = vld [vmem:[%s4742_s5 + $0x140] sm:$0xff] }
 0x1d0   :  { %1612 = vmatpush.bf16.msrb.mxu0 %v1410_v56  ;;  %v1745_v56 = vpack.c.bf16 %v1686_v34, %v1685_v53  ;;  %v1715_v53 = vld [vmem:[%s4742_s5 + $0x120] sm:$0xff]  ;;  %v1716_v34 = vld [vmem:[%s4742_s5 + $0x128] sm:$0xff] }
 0x1d2   :  { %1651 = vmatpush.bf16.msra.mxu2 %v1379_v19  ;;  %v1474_v36 = vpop.f32.mrf.mxu3  ;;  %v1746_v19 = vpack.c.bf16 %v1688_v1, %v1687_v47 }
 0x1d3   :  { %v1707_v36 = vld [vmem:[%s4742_s5 + $0xe0] sm:$0xff] }
 0x1d4   :  { %1613 = vmatpush.bf16.msrb.mxu0 %v1406_v58  ;;  %v1708_v58 = vld [vmem:[%s4742_s5 + $0xe8] sm:$0xff] }
 0x1d5   :  { %v1756_v60 = vpack.c.bf16 %v1708_v58, %v1707_v36 }
 0x1d6   :  { %1652 = vmatpush.bf16.msra.mxu2 %v1375_v55  ;;  %v1710_v55 = vld [vmem:[%s4742_s5 + $0xf8] sm:$0xff] }
 0x1d7   :  { %2091 = vmatmul.msk.bf16.vlgmr.msrb.gmra.mxu0 %vm1446_vm2, %v4162_v12  ;;  %v1757_v22 = vpack.c.bf16 %v1710_v55, %v1709_v54  ;;  %v1760_v54 = vpack.c.bf16 %v1716_v34, %v1715_v53  ;;  %v1713_v55 = vld [vmem:[%s4742_s5 + $0x110] sm:$0xff] }
 0x1d8   :  { %1658 = vmatpush.bf16.msra.mxu0 %v1461_v39  ;;  %v1744_v39 = vpack.c.bf16 %v1684_v57, %v1683_v25  ;;  %v1714_v25 = vld [vmem:[%s4742_s5 + $0x118] sm:$0xff] }
 0x1d9   :  { %1653 = vmatmul.bf16.vlgmr.msra.gmra.mxu2 %v4085_v18  ;;  %v1427_v18 = vpack.c.bf16 %v1295_v38, %v1291_v63  ;;  %1797 = vmatpush.bf16.msrb.mxu1 %v1757_v22  ;;  %v1705_v63 = vld [vmem:[%s4742_s5 + $0xd0] sm:$0xff]  ;;  %v1759_v22 = vpack.c.bf16 %v1714_v25, %v1713_v55 }
 0x1da   :  { %v1485_v40 = vpop.f32.mrf.mxu1  ;;  %1810 = vmatpush.bf16.msrb.mxu2 %v1765_v17 }
 0x1db   :  { %v4282_v46 = vadd.f32 %v1485_v40, %v1473_v8 }
 0x1dc   :  { %1659 = vmatpush.bf16.msra.mxu0 %v1431_v0  ;;  %v1682_v0 = vld [vmem:[%s4742_s5 + $0x18] sm:$0xff] }
 0x1dd   :  { %1798 = vmatpush.bf16.msrb.mxu1 %v1756_v60  ;;  %v1743_v38 = vpack.c.bf16 %v1682_v0, %v1681_v61  ;;  %v1711_v60 = vld [vmem:[%s4742_s5 + $0x100] sm:$0xff]  ;;  %v1712_v61 = vld [vmem:[%s4742_s5 + $0x108] sm:$0xff] }
 0x1e0   :  { %1660 = vmatpush.bf16.msra.mxu0 %v1427_v18  ;;  %v1706_v18 = vld [vmem:[%s4742_s5 + $0xd8] sm:$0xff] }
 0x1e1   :  { %v1755_v2 = vpack.c.bf16 %v1706_v18, %v1705_v63 }
 0x1e2   :  { %v1487_v51 = vpop.f32.mrf.mxu1 }
 0x1e3   :  { %1799 = vmatpush.bf16.msrb.mxu1 %v1755_v2  ;;  %v1699_v51 = vld [vmem:[%s4742_s5 + $0xa0] sm:$0xff] }
 0x1e4   :  { %1661 = vmatpush.bf16.msra.mxu0 %v1423_v5  ;;  %v1703_v5 = vld [vmem:[%s4742_s5 + $0xc0] sm:$0xff] }
 0x1e5   :  { %v1754_v8 = vpack.c.bf16 %v1704_v7, %v1703_v5  ;;  %v1772_v5 = vpack.c.bf16 %v1740_v4, %v1739_v3  ;;  %v1737_v7 = vld [vmem:[%s4742_s5 + $0x1d0] sm:$0xff] }
 0x1e7   :  { %1800 = vmatpush.bf16.msrb.mxu1 %v1754_v8  ;;  %v1738_v8 = vld [vmem:[%s4742_s5 + $0x1d8] sm:$0xff] }
 0x1e8   :  { %1662 = vmatpush.bf16.msra.mxu0 %v1419_v9  ;;  %v1701_v9 = vld [vmem:[%s4742_s5 + $0xb0] sm:$0xff] }
 0x1ea   :  { %v1524_v14 = vpop.f32.mrf.mxu3  ;;  %v1537_v27 = vpop.f32.mrf.mxu1 }
 0x1eb   :  { %v1525_v26 = vadd.f32 %v1524_v14, %v1439_v24  ;;  %v1441_v14 = vperm.slane %v4267_v29, 3  ;;  %v1724_v29 = vld [vmem:[%s4742_s5 + $0x168] sm:$0xff] }
 0x1ec   :  { %1663 = vmatpush.bf16.msra.mxu0 %v1415_v15  ;;  %v1753_v15 = vpack.c.bf16 %v1702_v11, %v1701_v9  ;;  %v1771_v9 = vpack.c.bf16 %v1738_v8, %v1737_v7  ;;  %v1736_v11 = vld [vmem:[%s4742_s5 + $0x1c8] sm:$0xff] }
 0x1ed   :  { %v4303_v28 = vadd.f32 %v1537_v27, %v1525_v26 }
 0x1ee   :  { %1801 = vmatpush.bf16.msrb.mxu1 %v1753_v15  ;;  %v1733_v15 = vld [vmem:[%s4742_s5 + $0x1b0] sm:$0xff] }
 0x1f0   :  { %1664 = vmatpush.bf16.msra.mxu0 %v1411_v20  ;;  %v1700_v20 = vld [vmem:[%s4742_s5 + $0xa8] sm:$0xff] }
 0x1f2   :  { %v1526_v52 = vpop.f32.mrf.mxu3  ;;  %v1539_v48 = vpop.f32.mrf.mxu1 }
 0x1f3   :  { %v1752_v52 = vpack.c.bf16 %v1700_v20, %v1699_v51 }
 0x1f4   :  { %1665 = vmatpush.bf16.msra.mxu0 %v1407_v62  ;;  %v1764_v62 = vpack.c.bf16 %v1724_v29, %v1723_v21  ;;  %v1769_v21 = vpack.c.bf16 %v1734_v16, %v1733_v15  ;;  %v1731_v29 = vld [vmem:[%s4742_s5 + $0x1a0] sm:$0xff]  ;;  %v1931_v15 = vld [vmem:[%s4746_s9 + $0x78] sm:$0xff] }
 0x1f5   :  { %1802 = vmatpush.bf16.msrb.mxu1 %v1752_v52  ;;  %v1947_v16 = vld [vmem:[%s4746_s9 + $0xf8] sm:$0xff] }
 0x1f6   :  { %1811 = vmatpush.bf16.msrb.mxu2 %v1764_v62 }
 0x1f7   :  { %2092 = vmatmul.msk.bf16.vlgmr.msra.gmra.mxu0 %vm1446_vm2, %v4162_v12  ;;  %v1692_v12 = vld [vmem:[%s4742_s5 + $0x68] sm:$0xff] }
 0x1f8   :  { %v1748_v35 = vpack.c.bf16 %v1692_v12, %v1691_v10  ;;  %v1722_v10 = vld [vmem:[%s4742_s5 + $0x158] sm:$0xff] }
 0x1f9   :  { %v1763_v12 = vpack.c.bf16 %v1722_v10, %v1721_v32  ;;  %v1728_v32 = vld [vmem:[%s4742_s5 + $0x188] sm:$0xff] }
 0x1fa   :  { %1785 = vmatpush.bf16.msrb.mxu3 %v1748_v35 }
 0x1fb   :  { %1812 = vmatpush.bf16.msrb.mxu2 %v1763_v12 }
 0x1fe   :  { %1786 = vmatpush.bf16.msrb.mxu3 %v1747_v44  ;;  %v1720_v44 = vld [vmem:[%s4742_s5 + $0x148] sm:$0xff] }
 0x1ff   :  { %v1762_v47 = vpack.c.bf16 %v1720_v44, %v1719_v43 }
 0x201   :  { %1813 = vmatpush.bf16.msrb.mxu2 %v1762_v47 }
 0x202   :  { %1787 = vmatpush.bf16.msrb.mxu3 %v1746_v19  ;;  %v1717_v19 = vld [vmem:[%s4742_s5 + $0x130] sm:$0xff] }
 0x206   :  { %1788 = vmatpush.bf16.msrb.mxu3 %v1745_v56 }
 0x208   :  { %v1589_v41 = vpop.f32.mrf.mxu1 }
 0x20a   :  { %v1576_v37 = vpop.f32.mrf.mxu3  ;;  %1789 = vmatpush.bf16.msrb.mxu3 %v1744_v39  ;;  %v1741_v39 = vld [vmem:[%s4742_s5 + $0x1f0] sm:$0xf] }
 0x20b   :  { %v1577_v59 = vadd.f32 %v1576_v37, %v1440_v33  ;;  %v1751_v33 = vpack.c.bf16 %v1698_v31, %v1697_v30  ;;  %v1773_v0 = vpack.c.bf16 %v1741_v39, %v1741_v39  ;;  %v1727_v31 = vld [vmem:[%s4742_s5 + $0x180] sm:$0xff] }
 0x20c   :  { %v1766_v10 = vpack.c.bf16 %v1728_v32, %v1727_v31  ;;  %v2100_v39 = vld [vmem:[%s4744_s7] ss:$0 sm:$0xff] }
 0x20d   :  { %v4326_v45 = vadd.f32 %v1589_v41, %v1577_v59  ;;  %v1498_v40 = vpop.f32.mrf.mxu2  ;;  %1803 = vmatpush.bf16.msrb.mxu1 %v1751_v33  ;;  %v1695_v41 = vld [vmem:[%s4742_s5 + $0x80] sm:$0xff] }
 0x20e   :  { %1790 = vmatpush.bf16.msrb.mxu3 %v1743_v38  ;;  %v1750_v59 = vpack.c.bf16 %v1696_v42, %v1695_v41  ;;  %v1499_v57 = vadd.f32 %v1498_v40, %v4282_v46  ;;  %v1758_v46 = vpack.c.bf16 %v1712_v61, %v1711_v60  ;;  %v1782_v38 = vsel %vm1450_vm1, %v1773_v0, 0  ;;  %v1735_v40 = vld [vmem:[%s4742_s5 + $0x1c0] sm:$0xff] }
 0x20f   :  { %1823 = vmatpush.bf16.msrb.mxu0 %v1782_v38  ;;  %v1944_v31 = vld [vmem:[%s4746_s9 + $0xe0] sm:$0xff] }
 0x210   :  { %v1591_v50 = vpop.f32.mrf.mxu1 }
 0x211   :  { %1804 = vmatpush.bf16.msrb.mxu1 %v1750_v59 }
 0x212   :  { %v1578_v49 = vpop.f32.mrf.mxu3  ;;  %1791 = vmatpush.bf16.msrb.mxu3 %v1742_v6 }
 0x213   :  { %v1718_v49 = vld [vmem:[%s4742_s5 + $0x138] sm:$0xff]  ;;  %1824 = vmatpush.bf16.msrb.mxu0 %v1772_v5 }
 0x214   :  { %v1761_v50 = vpack.c.bf16 %v1718_v49, %v1717_v19 }
 0x215   :  { %v1500_v48 = vpop.f32.mrf.mxu2  ;;  %2007 = vmatpush.msra.mxu1 %v1947_v16  ;;  %v1936_v16 = vld [vmem:[%s4746_s9 + $0xa0] sm:$0xff] }
 0x216   :  { %1814 = vmatpush.bf16.msrb.mxu2 %v1761_v50  ;;  %v1730_v48 = vld [vmem:[%s4742_s5 + $0x198] sm:$0xff]  ;;  %1987 = vmatpush.msra.mxu3 %v1931_v15  ;;  %v1920_v15 = vld [vmem:[%s4746_s9 + $0x20] sm:$0xff] }
 0x217   :  { %1825 = vmatpush.bf16.msrb.mxu0 %v1771_v9 }
 0x21a   :  { %1815 = vmatpush.bf16.msrb.mxu2 %v1760_v54 }
 0x21d   :  { %v1550_v1 = vpop.f32.mrf.mxu2 }
 0x21e   :  { %1816 = vmatpush.bf16.msrb.mxu2 %v1759_v22  ;;  %v1551_v17 = vadd.f32 %v1550_v1, %v4303_v28 }
 0x222   :  { %1817 = vmatpush.bf16.msrb.mxu2 %v1758_v46  ;;  %v2101_v46 = vld [vmem:[#allocation2] ss:$0 sm:$0xff] }
 0x225   :  { %v1552_v56 = vpop.f32.mrf.mxu2 }
 0x228   :  { %v1641_v24 = vpop.f32.mrf.mxu1 }
 0x22a   :  { %v1628_v23 = vpop.f32.mrf.mxu3 }
 0x22b   :  { %v1629_v26 = vadd.f32 %v1628_v23, %v1441_v14  ;;  %v1770_v14 = vpack.c.bf16 %v1736_v11, %v1735_v40  ;;  %v1732_v23 = vld [vmem:[%s4742_s5 + $0x1a8] sm:$0xff] }
 0x22c   :  { %v1768_v62 = vpack.c.bf16 %v1732_v23, %v1731_v29  ;;  %v1962_v29 = vld [vmem:[%s4746_s9 + $0x170] sm:$0xff] }
 0x22d   :  { %v4407_v27 = vadd.f32 %v1641_v24, %v1629_v26  ;;  %1826 = vmatpush.bf16.msrb.mxu0 %v1770_v14  ;;  %v1729_v26 = vld [vmem:[%s4742_s5 + $0x190] sm:$0xff] }
 0x22e   :  { %v1767_v30 = vpack.c.bf16 %v1730_v48, %v1729_v26  ;;  %v1978_v23 = vld [vmem:[%s4746_s9 + $0x1f0] sm:$0xf]  ;;  %v1961_v26 = vld [vmem:[%s4746_s9 + $0x168] sm:$0xff] }
 0x22f   :  { %v1977_v48 = vld [vmem:[%s4746_s9 + $0x1e8] sm:$0xff] }
 0x230   :  { %v1643_v37 = vpop.f32.mrf.mxu1 }
 0x231   :  { %1827 = vmatpush.bf16.msrb.mxu0 %v1769_v21  ;;  %v1946_v21 = vld [vmem:[%s4746_s9 + $0xf0] sm:$0xff] }
 0x232   :  { %v1630_v35 = vpop.f32.mrf.mxu3  ;;  %2008 = vmatpush.msra.mxu1 %v1946_v21  ;;  %v1935_v21 = vld [vmem:[%s4746_s9 + $0x98] sm:$0xff] }
 0x234   :  { %v1511_v36 = vpop.f32.mrf.mxu0 }
 0x235   :  { %v1512_v58 = vadd.f32 %v1511_v36, %v1499_v57  ;;  %1828 = vmatpush.bf16.msrb.mxu0 %v1768_v62  ;;  %v1945_v62 = vld [vmem:[%s4746_s9 + $0xe8] sm:$0xff] }
 0x236   :  { %2009 = vmatpush.msra.mxu1 %v1945_v62  ;;  %v1934_v62 = vld [vmem:[%s4746_s9 + $0x90] sm:$0xff] }
 0x237   :  { %v4461_v63 = vmax.f32 %v1512_v58, 0.0 }
 0x238   :  { %2010 = vmatpush.msra.mxu1 %v1944_v31  ;;  %v1949_v31 = vld [vmem:[%s4746_s9 + $0x108] sm:$0xff] }
 0x239   :  { %v1675_v18 = vpack.c.bf16 %v4461_v63, %v4461_v63  ;;  %1829 = vmatpush.bf16.msrb.mxu0 %v1767_v30  ;;  %v1928_v30 = vld [vmem:[%s4746_s9 + $0x60] sm:$0xff] }
 0x23b   :  { %1792 = vmatmul.bf16.vlgmr.msrb.gmra.mxu3 %v1675_v18 }
 0x23c   :  { %v1602_v2 = vpop.f32.mrf.mxu2  ;;  %v1513_v6 = vpop.f32.mrf.mxu0 }
 0x23d   :  { %v1603_v33 = vadd.f32 %v1602_v2, %v4326_v45  ;;  %1830 = vmatpush.bf16.msrb.mxu0 %v1766_v10  ;;  %v2134_v6 = vmov 0   ;;  %v1976_v10 = vld [vmem:[%s4746_s9 + $0x1e0] sm:$0xff] }
 0x23e   :  { %2098 = vset.pattern.permute.xlu0 %v2134_v6  ;;  %v1922_v6 = vld [vmem:[%s4746_s9 + $0x30] sm:$0xff] }
 0x241   :  { %2094 = vmatpush.msk.msra.mxu0 %vm1983_vm4, %v1978_v23  ;;  %v1967_v23 = vld [vmem:[%s4746_s9 + $0x198] sm:$0xff] }
 0x243   :  { %2049 = vmatpush.msra.mxu0 %v1977_v48  ;;  %v1917_v48 = vld [vmem:[%s4746_s9 + $0x8] sm:$0xff] }
 0x244   :  { %v1604_v13 = vpop.f32.mrf.mxu2  ;;  %v1563_v51 = vpop.f32.mrf.mxu0 }
 0x245   :  { %v1564_v20 = vadd.f32 %v1563_v51, %v1551_v17  ;;  %v1963_v17 = vld [vmem:[%s4746_s9 + $0x178] sm:$0xff]  ;;  %2050 = vmatpush.msra.mxu0 %v1976_v10  ;;  %v1932_v10 = vld [vmem:[%s4746_s9 + $0x80] sm:$0xff] }
 0x246   :  { %2027 = vmatpush.msra.mxu2 %v1963_v17  ;;  %v1952_v17 = vld [vmem:[%s4746_s9 + $0x120] sm:$0xff] }
 0x247   :  { %v4497_v24 = vmax.f32 %v1564_v20, 0.0  ;;  %v1930_v20 = vld [vmem:[%s4746_s9 + $0x70] sm:$0xff] }
 0x248   :  { %1988 = vmatpush.msra.mxu3 %v1930_v20  ;;  %2028 = vmatpush.msra.mxu2 %v1962_v29  ;;  %v1919_v20 = vld [vmem:[%s4746_s9 + $0x18] sm:$0xff] }
 0x249   :  { %v1676_v52 = vpack.c.bf16 %v4497_v24, %v4497_v24  ;;  %v1951_v29 = vld [vmem:[%s4746_s9 + $0x118] sm:$0xff] }
 0x24a   :  { %2029 = vmatpush.msra.mxu2 %v1961_v26  ;;  %v1966_v26 = vld [vmem:[%s4746_s9 + $0x190] sm:$0xff] }
 0x24b   :  { %1805 = vmatmul.bf16.vlgmr.msrb.gmra.mxu1 %v1676_v52  ;;  %v1929_v52 = vld [vmem:[%s4746_s9 + $0x68] sm:$0xff] }
 0x24c   :  { %v1565_v28 = vpop.f32.mrf.mxu0  ;;  %1989 = vmatpush.msra.mxu3 %v1929_v52  ;;  %v1918_v52 = vld [vmem:[%s4746_s9 + $0x10] sm:$0xff] }
 0x24e   :  { %1990 = vmatpush.msra.mxu3 %v1928_v30  ;;  %v1933_v30 = vld [vmem:[%s4746_s9 + $0x88] sm:$0xff] }
 0x254   :  { %v1615_v12 = vpop.f32.mrf.mxu0 }
 0x255   :  { %v1616_v35 = vadd.f32 %v1615_v12, %v1603_v33  ;;  %v1960_v33 = vld [vmem:[%s4746_s9 + $0x160] sm:$0xff]  ;;  %v1927_v12 = vld [vmem:[%s4746_s9 + $0x58] sm:$0xff] }
 0x256   :  { %2030 = vmatpush.msra.mxu2 %v1960_v33  ;;  %1991 = vmatpush.msra.mxu3 %v1927_v12  ;;  %v1916_v33 = vld [vmem:[%s4746_s9] sm:$0xff] }
 0x257   :  { %v4514_v41 = vmax.f32 %v1616_v35, 0.0  ;;  %v1943_v35 = vld [vmem:[%s4746_s9 + $0xd8] sm:$0xff]  ;;  %v1948_v12 = vld [vmem:[%s4746_s9 + $0x100] sm:$0xff] }
 0x258   :  { %2011 = vmatpush.msra.mxu1 %v1943_v35  ;;  %v1964_v35 = vld [vmem:[%s4746_s9 + $0x180] sm:$0xff] }
 0x259   :  { %v1677_v42 = vpack.c.bf16 %v4514_v41, %v4514_v41 }
 0x25b   :  { %1818 = vmatmul.bf16.vlgmr.msrb.gmra.mxu2 %v1677_v42  ;;  %v1959_v42 = vld [vmem:[%s4746_s9 + $0x158] sm:$0xff] }
 0x25c   :  { %v1654_v37 = vpop.f32.mrf.mxu2  ;;  %v1617_v43 = vpop.f32.mrf.mxu0  ;;  %2031 = vmatpush.msra.mxu2 %v1959_v42 }
 0x25d   :  { %v1655_v44 = vadd.f32 %v1654_v37, %v4407_v27  ;;  %v2099_v27 = vld [vmem:[%s4743_s6] ss:$0 sm:$0xff]  ;;  %v1975_v43 = vld [vmem:[%s4746_s9 + $0x1d8] sm:$0xff] }
 0x25e   :  { %2051 = vmatpush.msra.mxu0 %v1975_v43 }
 0x264   :  { %v1656_v59 = vpop.f32.mrf.mxu2 }
 0x265   :  { %v1926_v59 = vld [vmem:[%s4746_s9 + $0x50] sm:$0xff] }
 0x266   :  { %1992 = vmatpush.msra.mxu3 %v1926_v59 }
 0x274   :  { %v1667_v47 = vpop.f32.mrf.mxu0 }
 0x275   :  { %v1668_v1 = vadd.f32 %v1667_v47, %v1655_v44  ;;  %v1942_v44 = vld [vmem:[%s4746_s9 + $0xd0] sm:$0xff] }
 0x276   :  { %2012 = vmatpush.msra.mxu1 %v1942_v44 }
 0x277   :  { %v4519_v19 = vmax.f32 %v1668_v1, 0.0  ;;  %v1958_v1 = vld [vmem:[%s4746_s9 + $0x150] sm:$0xff] }
 0x278   :  { %2032 = vmatpush.msra.mxu2 %v1958_v1 }
 0x279   :  { %v1678_v45 = vpack.c.bf16 %v4519_v19, %v4519_v19 }
 0x27b   :  { %2093 = vmatmul.msk.bf16.vlgmr.msrb.gmra.mxu0 %vm1446_vm2, %v1678_v45  ;;  %v1974_v45 = vld [vmem:[%s4746_s9 + $0x1d0] sm:$0xff] }
 0x27c   :  { %v1669_v49 = vpop.f32.mrf.mxu0  ;;  %2052 = vmatpush.msra.mxu0 %v1974_v45 }
 0x27d   :  { %v1925_v49 = vld [vmem:[%s4746_s9 + $0x48] sm:$0xff] }
 0x27e   :  { %1993 = vmatpush.msra.mxu3 %v1925_v49 }
 0x2be   :  { %v1793_v50 = vpop.f32.mrf.mxu3 }
 0x2bf   :  { %v1794_v25 = vadd.f32 %v2099_v27, %v1793_v50  ;;  %v1941_v50 = vld [vmem:[%s4746_s9 + $0xc8] sm:$0xff]  ;;  %v1956_v27 = vld [vmem:[%s4746_s9 + $0x140] sm:$0xff] }
 0x2c0   :  { %2013 = vmatpush.msra.mxu1 %v1941_v50 }
 0x2c6   :  { %v1795_v53 = vpop.f32.mrf.mxu3 }
 0x2c8   :  { %v1806_v34 = vpop.f32.mrf.mxu1 }
 0x2c9   :  { %v1807_v57 = vadd.f32 %v1806_v34, %v1794_v25  ;;  %v1957_v34 = vld [vmem:[%s4746_s9 + $0x148] sm:$0xff]  ;;  %v1972_v25 = vld [vmem:[%s4746_s9 + $0x1c0] sm:$0xff] }
 0x2ca   :  { %2033 = vmatpush.msra.mxu2 %v1957_v34 }
 0x2cc   :  { %2034 = vmatpush.msra.mxu2 %v1956_v27 }
 0x2d0   :  { %v1808_v54 = vpop.f32.mrf.mxu1 }
 0x2d1   :  { %v1973_v54 = vld [vmem:[%s4746_s9 + $0x1c8] sm:$0xff] }
 0x2d2   :  { %2053 = vmatpush.msra.mxu0 %v1973_v54 }
 0x2d4   :  { %2054 = vmatpush.msra.mxu0 %v1972_v25 }
 0x2de   :  { %v1819_v56 = vpop.f32.mrf.mxu2 }
 0x2df   :  { %v1820_v22 = vadd.f32 %v1819_v56, %v1807_v57  ;;  %v1924_v56 = vld [vmem:[%s4746_s9 + $0x40] sm:$0xff]  ;;  %v1923_v57 = vld [vmem:[%s4746_s9 + $0x38] sm:$0xff] }
 0x2e0   :  { %1994 = vmatpush.msra.mxu3 %v1924_v56 }
 0x2e2   :  { %1995 = vmatpush.msra.mxu3 %v1923_v57 }
 0x2e4   :  { %1996 = vmatpush.msra.mxu3 %v1922_v6 }
 0x2e6   :  { %v1821_v55 = vpop.f32.mrf.mxu2 }
 0x2e7   :  { %v1940_v55 = vld [vmem:[%s4746_s9 + $0xc0] sm:$0xff] }
 0x2e8   :  { %2014 = vmatpush.msra.mxu1 %v1940_v55 }
 0x2f8   :  { %v1832_v36 = vpop.f32.mrf.mxu0 }
 0x2f9   :  { %v1833_v58 = vadd.f32 %v1832_v36, %v1820_v22  ;;  %v1939_v22 = vld [vmem:[%s4746_s9 + $0xb8] sm:$0xff] }
 0x2fa   :  { %v1955_v36 = vld [vmem:[%s4746_s9 + $0x138] sm:$0xff]  ;;  %2015 = vmatpush.msra.mxu1 %v1939_v22 }
 0x2fb   :  { %2102 = vtanh.f32 %v1833_v58  ;;  %2035 = vmatpush.msra.mxu2 %v1955_v36 }
 0x300   :  { %v1834_v60 = vpop.f32.mrf.mxu0 }
 0x301   :  { %v2103_v61 = vpop.eup %2102 }
 0x302   :  { %v1841_v0 = vmul.f32 %v2103_v61, %v2100_v39 }
 0x304   :  { %1842 = vadd.xlane.f32.xlu0 %v1841_v0 }
 0x377   :  { %v1843_v38 = vpop.xlane.xlu0 %1842 }
 0x378   :  { %v1848_v18 = vadd.f32 %v2101_v46, %v1843_v38 }
 0x37a   :  { %v1850_v2 = vsel %vm1849_vm3, %v1848_v18, -inf }
 0x37b   :  { %v1851_v3 = vrot.slane %v1850_v2, 4 }
 0x37d   :  { %v1852_v4 = vmax.f32 %v1850_v2, %v1851_v3 }
 0x37f   :  { %v1853_v5 = vrot.slane %v1852_v4, 2 }
 0x381   :  { %v1854_v7 = vmax.f32 %v1852_v4, %v1853_v5  ;;  %v1971_v5 = vld [vmem:[%s4746_s9 + $0x1b8] sm:$0xff] }
 0x382   :  { %2055 = vmatpush.msra.mxu0 %v1971_v5 }
 0x383   :  { %v1855_v8 = vrot.slane %v1854_v7, 1 }
 0x385   :  { %v1856_v40 = vmax.f32 %v1854_v7, %v1855_v8  ;;  %v1938_v7 = vld [vmem:[%s4746_s9 + $0xb0] sm:$0xff] }
 0x386   :  { %v1954_v8 = vld [vmem:[%s4746_s9 + $0x130] sm:$0xff]  ;;  %2016 = vmatpush.msra.mxu1 %v1938_v7 }
 0x387   :  { %v1857_v9 = vsub.f32 %v1848_v18, %v1856_v40  ;;  %v1970_v40 = vld [vmem:[%s4746_s9 + $0x1b0] sm:$0xff]  ;;  %2036 = vmatpush.msra.mxu2 %v1954_v8 }
 0x388   :  { %2056 = vmatpush.msra.mxu0 %v1970_v40 }
 0x389   :  { %v1858_v11 = vmul.f32 1.442695, %v1857_v9  ;;  %v1921_v9 = vld [vmem:[%s4746_s9 + $0x28] sm:$0xff] }
 0x38a   :  { %1997 = vmatpush.msra.mxu3 %v1921_v9 }
 0x38b   :  { %2104 = vpow2.f32 %v1858_v11  ;;  %v1937_v11 = vld [vmem:[%s4746_s9 + $0xa8] sm:$0xff] }
 0x38c   :  { %2017 = vmatpush.msra.mxu1 %v1937_v11  ;;  %1998 = vmatpush.msra.mxu3 %v1920_v15 }
 0x38e   :  { %2018 = vmatpush.msra.mxu1 %v1936_v16  ;;  %1999 = vmatpush.msra.mxu3 %v1919_v20 }
 0x390   :  { %2019 = vmatpush.msra.mxu1 %v1935_v21  ;;  %2000 = vmatpush.msra.mxu3 %v1918_v52 }
 0x391   :  { %v4531_v13 = vpop.eup %2104 }
 0x392   :  { %v1860_v14 = vsel %vm1849_vm3, %v4531_v13, 0.0  ;;  %2020 = vmatpush.msra.mxu1 %v1934_v62  ;;  %2001 = vmatpush.msra.mxu3 %v1917_v48 }
 0x393   :  { %v1861_v51 = vrot.slane %v1860_v14, 4 }
 0x394   :  { %2021 = vmatpush.msra.mxu1 %v1933_v30  ;;  %2002 = vmatpush.msra.mxu3 %v1916_v33 }
 0x395   :  { %v1862_v28 = vadd.f32 %v1861_v51, %v1860_v14  ;;  %v1969_v14 = vld [vmem:[%s4746_s9 + $0x1a8] sm:$0xff]  ;;  %v1968_v51 = vld [vmem:[%s4746_s9 + $0x1a0] sm:$0xff] }
 0x396   :  { %2057 = vmatpush.msra.mxu0 %v1969_v14  ;;  %2022 = vmatpush.msra.mxu1 %v1932_v10 }
 0x397   :  { %v1863_v32 = vrot.slane %v1862_v28, 2 }
 0x398   :  { %2058 = vmatpush.msra.mxu0 %v1968_v51 }
 0x399   :  { %v1864_v37 = vadd.f32 %v1863_v32, %v1862_v28  ;;  %v1950_v28 = vld [vmem:[%s4746_s9 + $0x110] sm:$0xff]  ;;  %v1965_v32 = vld [vmem:[%s4746_s9 + $0x188] sm:$0xff] }
 0x39a   :  { %2059 = vmatpush.msra.mxu0 %v1967_v23 }
 0x39b   :  { %v1865_v47 = vrot.slane %v1864_v37, 1 }
 0x39c   :  { %2060 = vmatpush.msra.mxu0 %v1966_v26 }
 0x39d   :  { %v1866_v53 = vadd.f32 %v1865_v47, %v1864_v37 }
 0x39e   :  { %2061 = vmatpush.msra.mxu0 %v1965_v32 }
 0x39f   :  { %2106 = vrcp.f32 %v1866_v53  ;;  %v1878_v61 = vand.u32 2147483648, %v1866_v53  ;;  %v1876_v46 = vand.u32 2147483647, %v1866_v53  ;;  %vm1872_vm6 = vweird.f32 %v1866_v53 }
 0x3a0   :  { %2062 = vmatpush.msra.mxu0 %v1964_v35 }
 0x3a1   :  { %v1879_v18 = vor.u32 1.1754944e-38, %v1878_v61  ;;  %vm1877_vm8 = vcmp.eq.f32.partialorder %v1876_v46, 8.507059e+37 }
 0x3a5   :  { %v2107_v58 = vpop.eup %2106 }
 0x3a6   :  { %v1868_v39 = vmul.f32 %v2107_v58, %v1866_v53  ;;  %vm1873_vm5 = vweird.f32 %v2107_v58 }
 0x3a7   :  { %vm1874_vm7 = vmor %vm1872_vm6, %vm1873_vm5 }
 0x3a8   :  { %v1869_v60 = vsub.f32 1.0, %v1868_v39 }
 0x3aa   :  { %v1870_v0 = vmul.f32 %v2107_v58, %v1869_v60 }
 0x3ac   :  { %v1871_v38 = vadd.f32 %v2107_v58, %v1870_v0 }
 0x3ae   :  { %v1875_v2 = vsel %vm1874_vm7, %v2107_v58, %v1871_v38  ;;  %v1979_v38 = vld [vmem:[%s4747_s10] sm:$0x1] }
 0x3af   :  { %v1880_v3 = vsel %vm1877_vm8, %v1879_v18, %v1875_v2 }
 0x3b0   :  { %v1881_v4 = vmul.f32 %v4531_v13, %v1880_v3  ;;  %v1953_v13 = vld [vmem:[%s4746_s9 + $0x128] sm:$0xff] }
 0x3b1   :  { %2037 = vmatpush.msra.mxu2 %v1953_v13 }
 0x3b2   :  { %1884 = vperm.xlu0 %2098, %v1881_v4  }
 0x3b3   :  { %2038 = vmatpush.msra.mxu2 %v1952_v17 }
 0x3b5   :  { %2039 = vmatpush.msra.mxu2 %v1951_v29 }
 0x3b7   :  { %2040 = vmatpush.msra.mxu2 %v1950_v28 }
 0x3b9   :  { %2041 = vmatpush.msra.mxu2 %v1949_v31 }
 0x3bb   :  { %2042 = vmatpush.msra.mxu2 %v1948_v12 }
 0x424   :  { %v1885_v37 = vpop.permute.xlu0 %1884 }
 0x425   :  { %v1887_v42 = vmul.f32 %v1885_v37, %v4461_v63  ;;  %v1888_v43 = vmul.f32 %v1885_v37, %v4497_v24  ;;  %v1889_v59 = vmul.f32 %v1885_v37, %v4514_v41  ;;  %v1890_v44 = vmul.f32 %v1885_v37, %v4519_v19 }
 0x427   :  { %v1891_v47 = vrot.slane %v1887_v42, 4  ;;  %v1897_v1 = vrot.slane %v1888_v43, 4  ;;  %v1903_v45 = vrot.slane %v1889_v59, 4  ;;  %v1909_v49 = vsel %vm1446_vm2, %v1890_v44, 0.0 }
 0x428   :  { %v1910_v50 = vrot.slane %v1909_v49, 4 }
 0x429   :  { %v1892_v53 = vadd.f32 %v1891_v47, %v1887_v42  ;;  %v1898_v34 = vadd.f32 %v1897_v1, %v1888_v43  ;;  %v1904_v54 = vadd.f32 %v1903_v45, %v1889_v59 }
 0x42a   :  { %v1911_v56 = vadd.f32 %v1910_v50, %v1909_v49 }
 0x42b   :  { %v1893_v55 = vrot.slane %v1892_v53, 2  ;;  %v1899_v27 = vrot.slane %v1898_v34, 2  ;;  %v1905_v25 = vrot.slane %v1904_v54, 2 }
 0x42c   :  { %v1912_v63 = vrot.slane %v1911_v56, 2 }
 0x42d   :  { %v1894_v57 = vadd.f32 %v1893_v55, %v1892_v53  ;;  %v1900_v24 = vadd.f32 %v1899_v27, %v1898_v34  ;;  %v1906_v22 = vadd.f32 %v1905_v25, %v1904_v54 }
 0x42e   :  { %v1913_v41 = vadd.f32 %v1912_v63, %v1911_v56 }
 0x42f   :  { %v1895_v36 = vrot.slane %v1894_v57, 1  ;;  %v1901_v19 = vrot.slane %v1900_v24, 1  ;;  %v1907_v58 = vrot.slane %v1906_v22, 1 }
 0x430   :  { %v1914_v39 = vrot.slane %v1913_v41, 1 }
 0x431   :  { %v1896_v60 = vadd.f32 %v1895_v36, %v1894_v57  ;;  %v1902_v61 = vadd.f32 %v1901_v19, %v1900_v24  ;;  %v1908_v0 = vadd.f32 %v1907_v58, %v1906_v22 }
 0x432   :  { %v1915_v46 = vadd.f32 %v1914_v39, %v1913_v41 }
 0x433   :  { %2003 = vmatmul.f32.vlgmr.msra.gmra.mxu3 %v1896_v60  ;;  %2023 = vmatmul.f32.vlgmr.msra.gmra.mxu1 %v1902_v61 }
 0x434   :  { %2043 = vmatmul.f32.vlgmr.msra.gmra.mxu2 %v1908_v0  ;;  %2095 = vmatmul.msk.f32.vlgmr.msra.gmra.mxu0 %vm1446_vm2, %v1915_v46 }
 0x4b0   :  { %v2024_v3 = vpop.f32.mrf.mxu1 }
 0x4b1   :  { %v2064_v7 = vpop.f32.mrf.mxu0 }
 0x4b6   :  { %v2004_v18 = vpop.f32.mrf.mxu3 }
 0x4b7   :  { %v2005_v2 = vadd.f32 %v2004_v18, %v1979_v38  ;;  %v2044_v5 = vpop.f32.mrf.mxu2 }
 0x4b9   :  { %v2025_v4 = vadd.f32 %v2024_v3, %v2005_v2 }
 0x4bb   :  { %v2045_v6 = vadd.f32 %v2044_v5, %v2025_v4 }
 0x4bd   :  { %v2065_v8 = vadd.f32 %v2064_v7, %v2045_v6 }
 0x4bf   :  { %2068 = vst.msk [vmem:[#allocation3] sm:$0x1] %vm2067_vm9, %v2065_v8 }
 0x4c0   :  { %2079 = dma.vmem_to_hbm [thread:$0]  %s2075_s15, 16, %s2077_s17, [#allocation4]  }
 0x4c1   :  { %2132 = dma.done.wait [#allocation4], 16  }
 0x4c2   :  { %2133 = vsyncadd [#allocation4], 4294967280 }
 0x4c3   :  { %2084 = vsyncpa [#allocation4], 1 }

</bundles_post_ra>
